<compile_context>
chip_gen: v6e
topology: v6e:2x2x1
jax: 0.10.0
libtpu: 0.0.40
codegen_flags: <defaults>
</compile_context>

<pallas_src>
import jax
import jax.numpy as jnp
from jax import lax
from jax.experimental import pallas as pl
from jax.experimental.pallas import tpu as pltpu


# ----------------------------- model geometry ------------------------------
B = 2            # batch
H = W = 16       # spatial size (powers of two -> border masks are bit tests)
HW = H * W
M = B * HW       # 512 flattened pixels -> lane axis (multiple of 128)
CIN = 7          # logical channel width inside the attention blocks
CP = 8           # padded channel width (7 -> 8, zero-padded params)
MID = 16         # padded condenser mid_channels (14 / 6 -> 16)
OUT0 = 8         # padded condenser out_channels (3 / 7 -> 8)
C2 = 17          # conv2 output channels


# ------------------------- in-kernel building blocks ------------------------

def _dot(a, b):
    """MXU matmul: bf16 inputs, f32 accumulation (f32 epilogue everywhere)."""
    return jnp.dot(a.astype(jnp.bfloat16), b.astype(jnp.bfloat16),
                   preferred_element_type=jnp.float32)


def _shift_read(x, delta):
    """Value at lane (i + delta) along the flattened (b, h, w) pixel axis."""
    if delta == 0:
        return x
    return pltpu.roll(x, (-delta) % M, axis=1)


def _conv3x3_relu(x, w_all, b_col, edge):
    """'same' 3x3 conv + ReLU on a [Cin, M] slab, factored form (no im2col).

    w_all: [3 (kh), Cout, 3*Cin] (kw-major along K), b_col: [Cout, 1].
    edge:  {0,1}-valued f32 [1, M] border masks (zero padding at image borders).

    Horizontal taps are gathered into a stacked slab once (2 rolls + masks),
    then one matmul per kernel row, then 2 vertical rolls + row masks.
    """
    cin = x.shape[0]
    # Horizontally shifted & border-masked copies (destination-lane view).
    x_m1 = _shift_read(x, -1) * edge["w0"]   # source pixel (h, w-1)
    x_p1 = _shift_read(x, +1) * edge["wL"]   # source pixel (h, w+1)

    if cin == 1:
        # conv1: pure VPU broadcast-MACs (no point feeding K=3 to the MXU).
        cols = (x_m1, x, x_p1)
        rows = []
        for d in range(3):
            w_d = w_all[d]                                   # [Cout, 3] f32
            r = w_d[:, 0:1] * cols[0]
            r = r + w_d[:, 1:2] * cols[1]
            r = r + w_d[:, 2:3] * cols[2]
            rows.append(r)
    else:
        xs = jnp.concatenate([x_m1, x, x_p1], axis=0)        # [3*Cin, M] f32
        xs = xs.astype(jnp.bfloat16)
        rows = [jnp.dot(w_all[d], xs, preferred_element_type=jnp.float32)
                for d in range(3)]                           # 3x [Cout, M]

    acc = rows[1]                                            # kernel row dy = 0
    acc = acc + _shift_read(rows[0], -W) * edge["h0"]        # dy = -1 (needs h>0)
    acc = acc + _shift_read(rows[2], +W) * edge["hL"]        # dy = +1 (needs h<H-1)
    return jnp.maximum(acc + b_col, 0.0)


def _condenser(x, w1, b1, w2, b2, w3, b3, bn_s, bn_t, w_even, h_even):
    """Attention condenser + folded BatchNorm + ReLU, fully resident in VMEM.

    MaxPool(2,2) and the nearest-neighbor upsample are fused: every pixel gets
    the max of its own 2x2 window ("pooled, replicated"); running the per-pixel
    1x1 convs at full resolution is then identical to pool -> convs -> upsample.
    """
    right = _shift_read(x, 1)
    left = _shift_read(x, -1)
    m1 = jnp.maximum(x, jnp.where(w_even, right, left))        # horizontal pair max
    below = _shift_read(m1, W)
    above = _shift_read(m1, -W)
    pooled = jnp.maximum(m1, jnp.where(h_even, below, above))  # 2x2 window max

    a = jnp.maximum(_dot(w1, pooled) + b1, 0.0)    # embed   1x1 + ReLU   [MID,  M]
    a = _dot(w2, a) + b2                           # condense 1x1         [OUT0, M]
    z = _dot(w3, a) + b3                           # expand  1x1          [CP,   M]
    attn = 0.5 * (jnp.tanh(0.5 * z) + 1.0)         # sigmoid via EUP tanh (no inf)
    y = x * attn + x                               # selective attention + residual
    y = y * bn_s + bn_t                            # folded inference BatchNorm
    return jnp.maximum(y, 0.0)                     # ReLU


def _tinyspeech_kernel(x_ref, c1w_ref, c1b_ref,
                       w1_ref, b1_ref, w2_ref, b2_ref, w3_ref, b3_ref,
                       bns_ref, bnt_ref, c2w_ref, c2b_ref,
                       pm_ref, fcw_ref, fcb_ref, o_ref):
    # Lane-index derived masks (W, H are powers of two -> bit tests only).
    lane1 = lax.broadcasted_iota(jnp.int32, (1, M), 1)
    laneC = lax.broadcasted_iota(jnp.int32, (CP, M), 1)
    edge = {
        "w0": ((lane1 & (W - 1)) != 0).astype(jnp.float32),              # w > 0
        "wL": ((lane1 & (W - 1)) != (W - 1)).astype(jnp.float32),        # w < W-1
        "h0": ((lane1 & ((H - 1) * W)) != 0).astype(jnp.float32),        # h > 0
        "hL": ((lane1 & ((H - 1) * W)) != (H - 1) * W).astype(jnp.float32),
    }
    w_even = (laneC & 1) == 0        # [CP, M] pixel-column parity
    h_even = (laneC & W) == 0        # [CP, M] pixel-row    parity

    # conv1 (1 -> 7[pad 8], 3x3, pad 1) + ReLU
    x = _conv3x3_relu(x_ref[...], c1w_ref[...], c1b_ref[...], edge)

    # block1 + block2: four attention condensers (+ BN + ReLU), all in VMEM.
    for ci in range(4):
        x = _condenser(x, w1_ref[ci], b1_ref[ci], w2_ref[ci], b2_ref[ci],
                       w3_ref[ci], b3_ref[ci], bns_ref[ci], bnt_ref[ci],
                       w_even, h_even)

    # conv2 (7[8] -> 17, 3x3, pad 1) + ReLU
    x = _conv3x3_relu(x, c2w_ref[...], c2b_ref[...], edge)

    # AdaptiveAvgPool2d(1) (per image, via a pooling matrix) + Linear(17, nc).
    pooled = _dot(x, pm_ref[...])                                    # [17, B]
    o_ref[...] = (_dot(fcw_ref[...], pooled) + fcb_ref[...]).astype(o_ref.dtype)


# ------------------------------ host wrapper --------------------------------

def tinyspeech_zz_forward(packed, x_nchw):
    """Forward pass. x_nchw: [B, 1, H, W] float32 (NCHW, like the PyTorch module)."""
    assert x_nchw.shape == (B, 1, H, W), x_nchw.shape
    # Cin == 1, so NCHW flattens directly to the (b, h, w)-ordered lane axis.
    x2d = x_nchw.astype(jnp.float32).reshape(1, M)
    num_classes = packed["fcb"].shape[0]
    out = pl.pallas_call(
        _tinyspeech_kernel,
        out_shape=jax.ShapeDtypeStruct((num_classes, B), jnp.float32),
    )(x2d, packed["c1w"], packed["c1b"],
      packed["w1"], packed["b1"], packed["w2"], packed["b2"],
      packed["w3"], packed["b3"], packed["bns"], packed["bnt"],
      packed["c2w"], packed["c2b"], packed["pm"], packed["fcw"], packed["fcb"])
    # Layout plumbing only: [nc, B] -> [B, nc].
    # (nn.Softmax is defined in the PyTorch module but never applied in forward.)
    return out.T


# ----------------------- parameter packing (one-time) ------------------------

def pack_params(params):
    """Pack 'natural'-layout params into kernel layouts: channel-major weights,
    kernel-row-major conv filters (kw folded into K), column biases, zero-padded
    to CP/MID/OUT0."""
    f32, bf16 = jnp.float32, jnp.bfloat16

    def conv_rows(w_hwio, co_pad, ci_pad, dtype):
        # [kh, kw, ci, co] -> [3 (kh), co_pad, 3*ci_pad] with K index = kw*ci_pad + ci
        kh, kw, ci, co = w_hwio.shape
        w = jnp.pad(w_hwio, ((0, 0), (0, 0), (0, ci_pad - ci), (0, co_pad - co)))
        w = jnp.transpose(w, (0, 3, 1, 2)).reshape(kh, co_pad, kw * ci_pad)
        return w.astype(dtype)

    def col(v, rows=None):
        v = v.reshape(-1, 1).astype(f32)
        if rows is not None and v.shape[0] < rows:
            v = jnp.pad(v, ((0, rows - v.shape[0]), (0, 0)))
        return v

    def pad2(w, r, c):
        return jnp.pad(w, ((0, r - w.shape[0]), (0, c - w.shape[1])))

    w1s, b1s, w2s, b2s, w3s, b3s, bnss, bnts = ([] for _ in range(8))
    for blk in ("block1", "block2"):
        for ac, bn in (("ac0", "bn0"), ("ac1", "bn1")):
            p, b = params[blk][ac], params[blk][bn]
            w1s.append(pad2(p["w1"].T, MID, CP))     # [MID,  CP]
            b1s.append(col(p["b1"], MID))
            w2s.append(pad2(p["w2"].T, OUT0, MID))   # [OUT0, MID]
            b2s.append(col(p["b2"], OUT0))
            w3s.append(pad2(p["w3"].T, CP, OUT0))    # [CP,   OUT0]
            b3s.append(col(p["b3"], CP))
            bnss.append(col(b["scale"], CP))
            bnts.append(col(b["shift"], CP))

    # Per-image mean over HW pixels as a [M, B] matrix (1/HW is exact in bf16).
    pool_mat = jnp.repeat(jnp.eye(B, dtype=f32), HW, axis=0) / float(HW)

    return dict(
        c1w=conv_rows(params["conv1_w"], CP, 1, f32),     # [3, 8, 3]   (VPU path)
        c1b=col(params["conv1_b"], CP),                   # [8, 1]
        w1=jnp.stack(w1s).astype(bf16), b1=jnp.stack(b1s),
        w2=jnp.stack(w2s).astype(bf16), b2=jnp.stack(b2s),
        w3=jnp.stack(w3s).astype(bf16), b3=jnp.stack(b3s),
        bns=jnp.stack(bnss), bnt=jnp.stack(bnts),
        c2w=conv_rows(params["conv2_w"], C2, CP, bf16),   # [3, 17, 24] (MXU path)
        c2b=col(params["conv2_b"]),                       # [17, 1]
        pm=pool_mat.astype(bf16),                         # [M, B]
        fcw=params["fc_w"].T.astype(bf16),                # [nc, 17]
        fcb=col(params["fc_b"]),                          # [nc, 1]
    )


# ------------------------- deterministic parameters --------------------------

def _init_condenser(key, cin, mid, cout):
    ks = jax.random.split(key, 6)
    n = lambda k, s, sc: sc * jax.random.normal(k, s, jnp.float32)
    return dict(w1=n(ks[0], (cin, mid), 0.3), b1=n(ks[1], (mid,), 0.1),
                w2=n(ks[2], (mid, cout), 0.3), b2=n(ks[3], (cout,), 0.1),
                w3=n(ks[4], (cout, cin), 0.3), b3=n(ks[5], (cin,), 0.1))


def _init_bn(key, c, eps=1e-5):
    ks = jax.random.split(key, 4)
    gamma = 1.0 + 0.1 * jax.random.normal(ks[0], (c,), jnp.float32)
    beta = 0.1 * jax.random.normal(ks[1], (c,), jnp.float32)
    mean = 0.1 * jax.random.normal(ks[2], (c,), jnp.float32)
    var = jax.random.uniform(ks[3], (c,), jnp.float32, 0.5, 1.5)
    scale = gamma / jnp.sqrt(var + eps)
    return dict(scale=scale, shift=beta - mean * scale)


def _init_block(key, cin, mid0, out0, mid1, out1):
    ks = jax.random.split(key, 4)
    return dict(ac0=_init_condenser(ks[0], cin, mid0, out0), bn0=_init_bn(ks[1], cin),
                ac1=_init_condenser(ks[2], cin, mid1, out1), bn1=_init_bn(ks[3], cin))


def init_params(key, num_classes):
    ks = jax.random.split(key, 8)
    n = lambda k, s, sc: sc * jax.random.normal(k, s, jnp.float32)
    return dict(
        conv1_w=n(ks[0], (3, 3, 1, CIN), 0.3), conv1_b=n(ks[1], (CIN,), 0.1),
        block1=_init_block(ks[2], CIN, 14, 3, 6, 7),
        block2=_init_block(ks[3], CIN, 14, 3, 6, 7),
        conv2_w=n(ks[4], (3, 3, CIN, C2), 0.3), conv2_b=n(ks[5], (C2,), 0.1),
        fc_w=n(ks[6], (C2, num_classes), 0.3), fc_b=n(ks[7], (num_classes,), 0.1),
    )


# ----------------------------------- main ------------------------------------

if __name__ == "__main__":
    num_classes = 10
    key = jax.random.PRNGKey(0)
    pkey, xkey = jax.random.split(key)
    params = init_params(pkey, num_classes)
    packed = pack_params(params)          # one-time layout packing, outside jit

    # NCHW input, like the PyTorch module (single-channel spectrogram-like).
    x = jax.random.normal(xkey, (B, 1, H, W), jnp.float32)

    fwd = jax.jit(tinyspeech_zz_forward)
    logits = fwd(packed, x)
    jax.block_until_ready(logits)

    assert logits.shape == (B, num_classes), logits.shape
    assert bool(jnp.all(jnp.isfinite(logits)))
    print("KERNEL_OK")
</pallas_src>

<mosaic_0001>
module attributes {stable_mosaic.version = 11 : i64} {
  func.func @_tinyspeech_kernel(%arg0: memref<1x512xf32, #tpu.memory_space<vmem>>, %arg1: memref<3x8x3xf32, #tpu.memory_space<vmem>>, %arg2: memref<8x1xf32, #tpu.memory_space<vmem>>, %arg3: memref<4x16x8xbf16, #tpu.memory_space<vmem>>, %arg4: memref<4x16x1xf32, #tpu.memory_space<vmem>>, %arg5: memref<4x8x16xbf16, #tpu.memory_space<vmem>>, %arg6: memref<4x8x1xf32, #tpu.memory_space<vmem>>, %arg7: memref<4x8x8xbf16, #tpu.memory_space<vmem>>, %arg8: memref<4x8x1xf32, #tpu.memory_space<vmem>>, %arg9: memref<4x8x1xf32, #tpu.memory_space<vmem>>, %arg10: memref<4x8x1xf32, #tpu.memory_space<vmem>>, %arg11: memref<3x17x24xbf16, #tpu.memory_space<vmem>>, %arg12: memref<17x1xf32, #tpu.memory_space<vmem>>, %arg13: memref<512x2xbf16, #tpu.memory_space<vmem>>, %arg14: memref<10x17xbf16, #tpu.memory_space<vmem>>, %arg15: memref<10x1xf32, #tpu.memory_space<vmem>>, %arg16: memref<10x2xf32, #tpu.memory_space<vmem>>) attributes {dimension_semantics = [], scalar_prefetch = 0 : i64, scratch_operands = 0 : i64, tpu.core_type = #tpu.core_type<tc>} {
    %0 = tpu.iota {dimensions = array<i32: 1>} : vector<1x512xi32>
    %1 = tpu.iota {dimensions = array<i32: 1>} : vector<8x512xi32>
    %c15_i32 = arith.constant 15 : i32
    %2 = vector.broadcast %c15_i32 : i32 to vector<1x512xi32>
    %3 = arith.andi %0, %2 : vector<1x512xi32>
    %c0_i32 = arith.constant 0 : i32
    %4 = vector.broadcast %c0_i32 : i32 to vector<1x512xi32>
    %5 = arith.cmpi ne, %3, %4 : vector<1x512xi32>
    %6 = arith.extui %5 : vector<1x512xi1> to vector<1x512xi32>
    %7 = arith.sitofp %6 : vector<1x512xi32> to vector<1x512xf32>
    %c15_i32_0 = arith.constant 15 : i32
    %8 = vector.broadcast %c15_i32_0 : i32 to vector<1x512xi32>
    %9 = arith.andi %0, %8 : vector<1x512xi32>
    %c15_i32_1 = arith.constant 15 : i32
    %10 = vector.broadcast %c15_i32_1 : i32 to vector<1x512xi32>
    %11 = arith.cmpi ne, %9, %10 : vector<1x512xi32>
    %12 = arith.extui %11 : vector<1x512xi1> to vector<1x512xi32>
    %13 = arith.sitofp %12 : vector<1x512xi32> to vector<1x512xf32>
    %c240_i32 = arith.constant 240 : i32
    %14 = vector.broadcast %c240_i32 : i32 to vector<1x512xi32>
    %15 = arith.andi %0, %14 : vector<1x512xi32>
    %c0_i32_2 = arith.constant 0 : i32
    %16 = vector.broadcast %c0_i32_2 : i32 to vector<1x512xi32>
    %17 = arith.cmpi ne, %15, %16 : vector<1x512xi32>
    %18 = arith.extui %17 : vector<1x512xi1> to vector<1x512xi32>
    %19 = arith.sitofp %18 : vector<1x512xi32> to vector<1x512xf32>
    %c240_i32_3 = arith.constant 240 : i32
    %20 = vector.broadcast %c240_i32_3 : i32 to vector<1x512xi32>
    %21 = arith.andi %0, %20 : vector<1x512xi32>
    %c240_i32_4 = arith.constant 240 : i32
    %22 = vector.broadcast %c240_i32_4 : i32 to vector<1x512xi32>
    %23 = arith.cmpi ne, %21, %22 : vector<1x512xi32>
    %24 = arith.extui %23 : vector<1x512xi1> to vector<1x512xi32>
    %25 = arith.sitofp %24 : vector<1x512xi32> to vector<1x512xf32>
    %c1_i32 = arith.constant 1 : i32
    %26 = vector.broadcast %c1_i32 : i32 to vector<8x512xi32>
    %27 = arith.andi %1, %26 : vector<8x512xi32>
    %c0_i32_5 = arith.constant 0 : i32
    %28 = vector.broadcast %c0_i32_5 : i32 to vector<8x512xi32>
    %29 = arith.cmpi eq, %27, %28 : vector<8x512xi32>
    %c16_i32 = arith.constant 16 : i32
    %30 = vector.broadcast %c16_i32 : i32 to vector<8x512xi32>
    %31 = arith.andi %1, %30 : vector<8x512xi32>
    %c0_i32_6 = arith.constant 0 : i32
    %32 = vector.broadcast %c0_i32_6 : i32 to vector<8x512xi32>
    %33 = arith.cmpi eq, %31, %32 : vector<8x512xi32>
    %c0 = arith.constant 0 : index
    %c0_7 = arith.constant 0 : index
    %34 = vector.load %arg0[%c0, %c0_7] : memref<1x512xf32, #tpu.memory_space<vmem>>, vector<1x512xf32>
    %c0_8 = arith.constant 0 : index
    %c0_9 = arith.constant 0 : index
    %c0_10 = arith.constant 0 : index
    %35 = vector.load %arg1[%c0_8, %c0_9, %c0_10] : memref<3x8x3xf32, #tpu.memory_space<vmem>>, vector<3x8x3xf32>
    %c0_11 = arith.constant 0 : index
    %c0_12 = arith.constant 0 : index
    %36 = vector.load %arg2[%c0_11, %c0_12] : memref<8x1xf32, #tpu.memory_space<vmem>>, vector<8x1xf32>
    %c1_i32_13 = arith.constant 1 : i32
    %37 = tpu.dynamic_rotate %34 by %c1_i32_13 dim 1 : vector<1x512xf32>, i32 -> vector<1x512xf32>
    %38 = arith.mulf %37, %7 : vector<1x512xf32>
    %c511_i32 = arith.constant 511 : i32
    %39 = tpu.dynamic_rotate %34 by %c511_i32 dim 1 : vector<1x512xf32>, i32 -> vector<1x512xf32>
    %40 = arith.mulf %39, %13 : vector<1x512xf32>
    %41 = vector.extract_strided_slice %35 {offsets = [0, 0, 0], sizes = [1, 8, 3], strides = [1, 1, 1]} : vector<3x8x3xf32> to vector<1x8x3xf32>
    %42 = vector.shape_cast %41 : vector<1x8x3xf32> to vector<8x3xf32>
    %43 = vector.extract_strided_slice %42 {offsets = [0, 0], sizes = [8, 1], strides = [1, 1]} : vector<8x3xf32> to vector<8x1xf32>
    %44 = vector.broadcast %43 : vector<8x1xf32> to vector<8x512xf32>
    %45 = vector.broadcast %38 : vector<1x512xf32> to vector<8x512xf32>
    %46 = arith.mulf %44, %45 : vector<8x512xf32>
    %47 = vector.extract_strided_slice %42 {offsets = [0, 1], sizes = [8, 1], strides = [1, 1]} : vector<8x3xf32> to vector<8x1xf32>
    %48 = vector.broadcast %47 : vector<8x1xf32> to vector<8x512xf32>
    %49 = vector.broadcast %34 : vector<1x512xf32> to vector<8x512xf32>
    %50 = arith.mulf %48, %49 : vector<8x512xf32>
    %51 = arith.addf %46, %50 : vector<8x512xf32>
    %52 = vector.extract_strided_slice %42 {offsets = [0, 2], sizes = [8, 1], strides = [1, 1]} : vector<8x3xf32> to vector<8x1xf32>
    %53 = vector.broadcast %52 : vector<8x1xf32> to vector<8x512xf32>
    %54 = vector.broadcast %40 : vector<1x512xf32> to vector<8x512xf32>
    %55 = arith.mulf %53, %54 : vector<8x512xf32>
    %56 = arith.addf %51, %55 : vector<8x512xf32>
    %57 = vector.extract_strided_slice %35 {offsets = [1, 0, 0], sizes = [1, 8, 3], strides = [1, 1, 1]} : vector<3x8x3xf32> to vector<1x8x3xf32>
    %58 = vector.shape_cast %57 : vector<1x8x3xf32> to vector<8x3xf32>
    %59 = vector.extract_strided_slice %58 {offsets = [0, 0], sizes = [8, 1], strides = [1, 1]} : vector<8x3xf32> to vector<8x1xf32>
    %60 = vector.broadcast %59 : vector<8x1xf32> to vector<8x512xf32>
    %61 = vector.broadcast %38 : vector<1x512xf32> to vector<8x512xf32>
    %62 = arith.mulf %60, %61 : vector<8x512xf32>
    %63 = vector.extract_strided_slice %58 {offsets = [0, 1], sizes = [8, 1], strides = [1, 1]} : vector<8x3xf32> to vector<8x1xf32>
    %64 = vector.broadcast %63 : vector<8x1xf32> to vector<8x512xf32>
    %65 = vector.broadcast %34 : vector<1x512xf32> to vector<8x512xf32>
    %66 = arith.mulf %64, %65 : vector<8x512xf32>
    %67 = arith.addf %62, %66 : vector<8x512xf32>
    %68 = vector.extract_strided_slice %58 {offsets = [0, 2], sizes = [8, 1], strides = [1, 1]} : vector<8x3xf32> to vector<8x1xf32>
    %69 = vector.broadcast %68 : vector<8x1xf32> to vector<8x512xf32>
    %70 = vector.broadcast %40 : vector<1x512xf32> to vector<8x512xf32>
    %71 = arith.mulf %69, %70 : vector<8x512xf32>
    %72 = arith.addf %67, %71 : vector<8x512xf32>
    %73 = vector.extract_strided_slice %35 {offsets = [2, 0, 0], sizes = [1, 8, 3], strides = [1, 1, 1]} : vector<3x8x3xf32> to vector<1x8x3xf32>
    %74 = vector.shape_cast %73 : vector<1x8x3xf32> to vector<8x3xf32>
    %75 = vector.extract_strided_slice %74 {offsets = [0, 0], sizes = [8, 1], strides = [1, 1]} : vector<8x3xf32> to vector<8x1xf32>
    %76 = vector.broadcast %75 : vector<8x1xf32> to vector<8x512xf32>
    %77 = vector.broadcast %38 : vector<1x512xf32> to vector<8x512xf32>
    %78 = arith.mulf %76, %77 : vector<8x512xf32>
    %79 = vector.extract_strided_slice %74 {offsets = [0, 1], sizes = [8, 1], strides = [1, 1]} : vector<8x3xf32> to vector<8x1xf32>
    %80 = vector.broadcast %79 : vector<8x1xf32> to vector<8x512xf32>
    %81 = vector.broadcast %34 : vector<1x512xf32> to vector<8x512xf32>
    %82 = arith.mulf %80, %81 : vector<8x512xf32>
    %83 = arith.addf %78, %82 : vector<8x512xf32>
    %84 = vector.extract_strided_slice %74 {offsets = [0, 2], sizes = [8, 1], strides = [1, 1]} : vector<8x3xf32> to vector<8x1xf32>
    %85 = vector.broadcast %84 : vector<8x1xf32> to vector<8x512xf32>
    %86 = vector.broadcast %40 : vector<1x512xf32> to vector<8x512xf32>
    %87 = arith.mulf %85, %86 : vector<8x512xf32>
    %88 = arith.addf %83, %87 : vector<8x512xf32>
    %c16_i32_14 = arith.constant 16 : i32
    %89 = tpu.dynamic_rotate %56 by %c16_i32_14 dim 1 : vector<8x512xf32>, i32 -> vector<8x512xf32>
    %90 = vector.broadcast %19 : vector<1x512xf32> to vector<8x512xf32>
    %91 = arith.mulf %89, %90 : vector<8x512xf32>
    %92 = arith.addf %72, %91 : vector<8x512xf32>
    %c496_i32 = arith.constant 496 : i32
    %93 = tpu.dynamic_rotate %88 by %c496_i32 dim 1 : vector<8x512xf32>, i32 -> vector<8x512xf32>
    %94 = vector.broadcast %25 : vector<1x512xf32> to vector<8x512xf32>
    %95 = arith.mulf %93, %94 : vector<8x512xf32>
    %96 = arith.addf %92, %95 : vector<8x512xf32>
    %97 = vector.broadcast %36 : vector<8x1xf32> to vector<8x512xf32>
    %98 = arith.addf %96, %97 : vector<8x512xf32>
    %cst = arith.constant 0.000000e+00 : f32
    %99 = vector.broadcast %cst : f32 to vector<8x512xf32>
    %100 = arith.maximumf %98, %99 : vector<8x512xf32>
    %c0_15 = arith.constant 0 : index
    %c0_16 = arith.constant 0 : index
    %c0_17 = arith.constant 0 : index
    %101 = vector.load %arg3[%c0_15, %c0_16, %c0_17] : memref<4x16x8xbf16, #tpu.memory_space<vmem>>, vector<1x16x8xbf16>
    %102 = vector.shape_cast %101 : vector<1x16x8xbf16> to vector<16x8xbf16>
    %c0_18 = arith.constant 0 : index
    %c0_19 = arith.constant 0 : index
    %c0_20 = arith.constant 0 : index
    %103 = vector.load %arg4[%c0_18, %c0_19, %c0_20] : memref<4x16x1xf32, #tpu.memory_space<vmem>>, vector<1x16x1xf32>
    %104 = vector.shape_cast %103 : vector<1x16x1xf32> to vector<16x1xf32>
    %c0_21 = arith.constant 0 : index
    %c0_22 = arith.constant 0 : index
    %c0_23 = arith.constant 0 : index
    %105 = vector.load %arg5[%c0_21, %c0_22, %c0_23] : memref<4x8x16xbf16, #tpu.memory_space<vmem>>, vector<1x8x16xbf16>
    %106 = vector.shape_cast %105 : vector<1x8x16xbf16> to vector<8x16xbf16>
    %c0_24 = arith.constant 0 : index
    %c0_25 = arith.constant 0 : index
    %c0_26 = arith.constant 0 : index
    %107 = vector.load %arg6[%c0_24, %c0_25, %c0_26] : memref<4x8x1xf32, #tpu.memory_space<vmem>>, vector<1x8x1xf32>
    %108 = vector.shape_cast %107 : vector<1x8x1xf32> to vector<8x1xf32>
    %c0_27 = arith.constant 0 : index
    %c0_28 = arith.constant 0 : index
    %c0_29 = arith.constant 0 : index
    %109 = vector.load %arg7[%c0_27, %c0_28, %c0_29] : memref<4x8x8xbf16, #tpu.memory_space<vmem>>, vector<1x8x8xbf16>
    %110 = vector.shape_cast %109 : vector<1x8x8xbf16> to vector<8x8xbf16>
    %c0_30 = arith.constant 0 : index
    %c0_31 = arith.constant 0 : index
    %c0_32 = arith.constant 0 : index
    %111 = vector.load %arg8[%c0_30, %c0_31, %c0_32] : memref<4x8x1xf32, #tpu.memory_space<vmem>>, vector<1x8x1xf32>
    %112 = vector.shape_cast %111 : vector<1x8x1xf32> to vector<8x1xf32>
    %c0_33 = arith.constant 0 : index
    %c0_34 = arith.constant 0 : index
    %c0_35 = arith.constant 0 : index
    %113 = vector.load %arg9[%c0_33, %c0_34, %c0_35] : memref<4x8x1xf32, #tpu.memory_space<vmem>>, vector<1x8x1xf32>
    %114 = vector.shape_cast %113 : vector<1x8x1xf32> to vector<8x1xf32>
    %c0_36 = arith.constant 0 : index
    %c0_37 = arith.constant 0 : index
    %c0_38 = arith.constant 0 : index
    %115 = vector.load %arg10[%c0_36, %c0_37, %c0_38] : memref<4x8x1xf32, #tpu.memory_space<vmem>>, vector<1x8x1xf32>
    %116 = vector.shape_cast %115 : vector<1x8x1xf32> to vector<8x1xf32>
    %c511_i32_39 = arith.constant 511 : i32
    %117 = tpu.dynamic_rotate %100 by %c511_i32_39 dim 1 : vector<8x512xf32>, i32 -> vector<8x512xf32>
    %c1_i32_40 = arith.constant 1 : i32
    %118 = tpu.dynamic_rotate %100 by %c1_i32_40 dim 1 : vector<8x512xf32>, i32 -> vector<8x512xf32>
    %119 = arith.select %29, %117, %118 : vector<8x512xi1>, vector<8x512xf32>
    %120 = arith.maximumf %100, %119 : vector<8x512xf32>
    %c496_i32_41 = arith.constant 496 : i32
    %121 = tpu.dynamic_rotate %120 by %c496_i32_41 dim 1 : vector<8x512xf32>, i32 -> vector<8x512xf32>
    %c16_i32_42 = arith.constant 16 : i32
    %122 = tpu.dynamic_rotate %120 by %c16_i32_42 dim 1 : vector<8x512xf32>, i32 -> vector<8x512xf32>
    %123 = arith.select %33, %121, %122 : vector<8x512xi1>, vector<8x512xf32>
    %124 = arith.maximumf %120, %123 : vector<8x512xf32>
    %125 = arith.truncf %124 : vector<8x512xf32> to vector<8x512xbf16>
    %cst_43 = arith.constant dense<0.000000e+00> : vector<16x512xf32>
    %126 = tpu.matmul %102, %125, %cst_43 {dimension_numbers = #tpu.dot_dimension_numbers<[1], [0], [0], [1], [0, 0, 1, 1], [], []>} : vector<16x8xbf16>, vector<8x512xbf16>, vector<16x512xf32> -> vector<16x512xf32>
    %127 = vector.broadcast %104 : vector<16x1xf32> to vector<16x512xf32>
    %128 = arith.addf %126, %127 : vector<16x512xf32>
    %cst_44 = arith.constant 0.000000e+00 : f32
    %129 = vector.broadcast %cst_44 : f32 to vector<16x512xf32>
    %130 = arith.maximumf %128, %129 : vector<16x512xf32>
    %131 = arith.truncf %130 : vector<16x512xf32> to vector<16x512xbf16>
    %cst_45 = arith.constant dense<0.000000e+00> : vector<8x512xf32>
    %132 = tpu.matmul %106, %131, %cst_45 {dimension_numbers = #tpu.dot_dimension_numbers<[1], [0], [0], [1], [0, 0, 1, 1], [], []>} : vector<8x16xbf16>, vector<16x512xbf16>, vector<8x512xf32> -> vector<8x512xf32>
    %133 = vector.broadcast %108 : vector<8x1xf32> to vector<8x512xf32>
    %134 = arith.addf %132, %133 : vector<8x512xf32>
    %135 = arith.truncf %134 : vector<8x512xf32> to vector<8x512xbf16>
    %cst_46 = arith.constant dense<0.000000e+00> : vector<8x512xf32>
    %136 = tpu.matmul %110, %135, %cst_46 {dimension_numbers = #tpu.dot_dimension_numbers<[1], [0], [0], [1], [0, 0, 1, 1], [], []>} : vector<8x8xbf16>, vector<8x512xbf16>, vector<8x512xf32> -> vector<8x512xf32>
    %137 = vector.broadcast %112 : vector<8x1xf32> to vector<8x512xf32>
    %138 = arith.addf %136, %137 : vector<8x512xf32>
    %cst_47 = arith.constant 5.000000e-01 : f32
    %139 = vector.broadcast %cst_47 : f32 to vector<8x512xf32>
    %140 = arith.mulf %139, %138 : vector<8x512xf32>
    %141 = math.tanh %140 : vector<8x512xf32>
    %cst_48 = arith.constant 1.000000e+00 : f32
    %142 = vector.broadcast %cst_48 : f32 to vector<8x512xf32>
    %143 = arith.addf %141, %142 : vector<8x512xf32>
    %cst_49 = arith.constant 5.000000e-01 : f32
    %144 = vector.broadcast %cst_49 : f32 to vector<8x512xf32>
    %145 = arith.mulf %144, %143 : vector<8x512xf32>
    %146 = arith.mulf %100, %145 : vector<8x512xf32>
    %147 = arith.addf %146, %100 : vector<8x512xf32>
    %148 = vector.broadcast %114 : vector<8x1xf32> to vector<8x512xf32>
    %149 = arith.mulf %147, %148 : vector<8x512xf32>
    %150 = vector.broadcast %116 : vector<8x1xf32> to vector<8x512xf32>
    %151 = arith.addf %149, %150 : vector<8x512xf32>
    %cst_50 = arith.constant 0.000000e+00 : f32
    %152 = vector.broadcast %cst_50 : f32 to vector<8x512xf32>
    %153 = arith.maximumf %151, %152 : vector<8x512xf32>
    %c1 = arith.constant 1 : index
    %c0_51 = arith.constant 0 : index
    %c0_52 = arith.constant 0 : index
    %154 = vector.load %arg3[%c1, %c0_51, %c0_52] : memref<4x16x8xbf16, #tpu.memory_space<vmem>>, vector<1x16x8xbf16>
    %155 = vector.shape_cast %154 : vector<1x16x8xbf16> to vector<16x8xbf16>
    %c1_53 = arith.constant 1 : index
    %c0_54 = arith.constant 0 : index
    %c0_55 = arith.constant 0 : index
    %156 = vector.load %arg4[%c1_53, %c0_54, %c0_55] : memref<4x16x1xf32, #tpu.memory_space<vmem>>, vector<1x16x1xf32>
    %157 = vector.shape_cast %156 : vector<1x16x1xf32> to vector<16x1xf32>
    %c1_56 = arith.constant 1 : index
    %c0_57 = arith.constant 0 : index
    %c0_58 = arith.constant 0 : index
    %158 = vector.load %arg5[%c1_56, %c0_57, %c0_58] : memref<4x8x16xbf16, #tpu.memory_space<vmem>>, vector<1x8x16xbf16>
    %159 = vector.shape_cast %158 : vector<1x8x16xbf16> to vector<8x16xbf16>
    %c1_59 = arith.constant 1 : index
    %c0_60 = arith.constant 0 : index
    %c0_61 = arith.constant 0 : index
    %160 = vector.load %arg6[%c1_59, %c0_60, %c0_61] : memref<4x8x1xf32, #tpu.memory_space<vmem>>, vector<1x8x1xf32>
    %161 = vector.shape_cast %160 : vector<1x8x1xf32> to vector<8x1xf32>
    %c1_62 = arith.constant 1 : index
    %c0_63 = arith.constant 0 : index
    %c0_64 = arith.constant 0 : index
    %162 = vector.load %arg7[%c1_62, %c0_63, %c0_64] : memref<4x8x8xbf16, #tpu.memory_space<vmem>>, vector<1x8x8xbf16>
    %163 = vector.shape_cast %162 : vector<1x8x8xbf16> to vector<8x8xbf16>
    %c1_65 = arith.constant 1 : index
    %c0_66 = arith.constant 0 : index
    %c0_67 = arith.constant 0 : index
    %164 = vector.load %arg8[%c1_65, %c0_66, %c0_67] : memref<4x8x1xf32, #tpu.memory_space<vmem>>, vector<1x8x1xf32>
    %165 = vector.shape_cast %164 : vector<1x8x1xf32> to vector<8x1xf32>
    %c1_68 = arith.constant 1 : index
    %c0_69 = arith.constant 0 : index
    %c0_70 = arith.constant 0 : index
    %166 = vector.load %arg9[%c1_68, %c0_69, %c0_70] : memref<4x8x1xf32, #tpu.memory_space<vmem>>, vector<1x8x1xf32>
    %167 = vector.shape_cast %166 : vector<1x8x1xf32> to vector<8x1xf32>
    %c1_71 = arith.constant 1 : index
    %c0_72 = arith.constant 0 : index
    %c0_73 = arith.constant 0 : index
    %168 = vector.load %arg10[%c1_71, %c0_72, %c0_73] : memref<4x8x1xf32, #tpu.memory_space<vmem>>, vector<1x8x1xf32>
    %169 = vector.shape_cast %168 : vector<1x8x1xf32> to vector<8x1xf32>
    %c511_i32_74 = arith.constant 511 : i32
    %170 = tpu.dynamic_rotate %153 by %c511_i32_74 dim 1 : vector<8x512xf32>, i32 -> vector<8x512xf32>
    %c1_i32_75 = arith.constant 1 : i32
    %171 = tpu.dynamic_rotate %153 by %c1_i32_75 dim 1 : vector<8x512xf32>, i32 -> vector<8x512xf32>
    %172 = arith.select %29, %170, %171 : vector<8x512xi1>, vector<8x512xf32>
    %173 = arith.maximumf %153, %172 : vector<8x512xf32>
    %c496_i32_76 = arith.constant 496 : i32
    %174 = tpu.dynamic_rotate %173 by %c496_i32_76 dim 1 : vector<8x512xf32>, i32 -> vector<8x512xf32>
    %c16_i32_77 = arith.constant 16 : i32
    %175 = tpu.dynamic_rotate %173 by %c16_i32_77 dim 1 : vector<8x512xf32>, i32 -> vector<8x512xf32>
    %176 = arith.select %33, %174, %175 : vector<8x512xi1>, vector<8x512xf32>
    %177 = arith.maximumf %173, %176 : vector<8x512xf32>
    %178 = arith.truncf %177 : vector<8x512xf32> to vector<8x512xbf16>
    %cst_78 = arith.constant dense<0.000000e+00> : vector<16x512xf32>
    %179 = tpu.matmul %155, %178, %cst_78 {dimension_numbers = #tpu.dot_dimension_numbers<[1], [0], [0], [1], [0, 0, 1, 1], [], []>} : vector<16x8xbf16>, vector<8x512xbf16>, vector<16x512xf32> -> vector<16x512xf32>
    %180 = vector.broadcast %157 : vector<16x1xf32> to vector<16x512xf32>
    %181 = arith.addf %179, %180 : vector<16x512xf32>
    %cst_79 = arith.constant 0.000000e+00 : f32
    %182 = vector.broadcast %cst_79 : f32 to vector<16x512xf32>
    %183 = arith.maximumf %181, %182 : vector<16x512xf32>
    %184 = arith.truncf %183 : vector<16x512xf32> to vector<16x512xbf16>
    %cst_80 = arith.constant dense<0.000000e+00> : vector<8x512xf32>
    %185 = tpu.matmul %159, %184, %cst_80 {dimension_numbers = #tpu.dot_dimension_numbers<[1], [0], [0], [1], [0, 0, 1, 1], [], []>} : vector<8x16xbf16>, vector<16x512xbf16>, vector<8x512xf32> -> vector<8x512xf32>
    %186 = vector.broadcast %161 : vector<8x1xf32> to vector<8x512xf32>
    %187 = arith.addf %185, %186 : vector<8x512xf32>
    %188 = arith.truncf %187 : vector<8x512xf32> to vector<8x512xbf16>
    %cst_81 = arith.constant dense<0.000000e+00> : vector<8x512xf32>
    %189 = tpu.matmul %163, %188, %cst_81 {dimension_numbers = #tpu.dot_dimension_numbers<[1], [0], [0], [1], [0, 0, 1, 1], [], []>} : vector<8x8xbf16>, vector<8x512xbf16>, vector<8x512xf32> -> vector<8x512xf32>
    %190 = vector.broadcast %165 : vector<8x1xf32> to vector<8x512xf32>
    %191 = arith.addf %189, %190 : vector<8x512xf32>
    %cst_82 = arith.constant 5.000000e-01 : f32
    %192 = vector.broadcast %cst_82 : f32 to vector<8x512xf32>
    %193 = arith.mulf %192, %191 : vector<8x512xf32>
    %194 = math.tanh %193 : vector<8x512xf32>
    %cst_83 = arith.constant 1.000000e+00 : f32
    %195 = vector.broadcast %cst_83 : f32 to vector<8x512xf32>
    %196 = arith.addf %194, %195 : vector<8x512xf32>
    %cst_84 = arith.constant 5.000000e-01 : f32
    %197 = vector.broadcast %cst_84 : f32 to vector<8x512xf32>
    %198 = arith.mulf %197, %196 : vector<8x512xf32>
    %199 = arith.mulf %153, %198 : vector<8x512xf32>
    %200 = arith.addf %199, %153 : vector<8x512xf32>
    %201 = vector.broadcast %167 : vector<8x1xf32> to vector<8x512xf32>
    %202 = arith.mulf %200, %201 : vector<8x512xf32>
    %203 = vector.broadcast %169 : vector<8x1xf32> to vector<8x512xf32>
    %204 = arith.addf %202, %203 : vector<8x512xf32>
    %cst_85 = arith.constant 0.000000e+00 : f32
    %205 = vector.broadcast %cst_85 : f32 to vector<8x512xf32>
    %206 = arith.maximumf %204, %205 : vector<8x512xf32>
    %c2 = arith.constant 2 : index
    %c0_86 = arith.constant 0 : index
    %c0_87 = arith.constant 0 : index
    %207 = vector.load %arg3[%c2, %c0_86, %c0_87] : memref<4x16x8xbf16, #tpu.memory_space<vmem>>, vector<1x16x8xbf16>
    %208 = vector.shape_cast %207 : vector<1x16x8xbf16> to vector<16x8xbf16>
    %c2_88 = arith.constant 2 : index
    %c0_89 = arith.constant 0 : index
    %c0_90 = arith.constant 0 : index
    %209 = vector.load %arg4[%c2_88, %c0_89, %c0_90] : memref<4x16x1xf32, #tpu.memory_space<vmem>>, vector<1x16x1xf32>
    %210 = vector.shape_cast %209 : vector<1x16x1xf32> to vector<16x1xf32>
    %c2_91 = arith.constant 2 : index
    %c0_92 = arith.constant 0 : index
    %c0_93 = arith.constant 0 : index
    %211 = vector.load %arg5[%c2_91, %c0_92, %c0_93] : memref<4x8x16xbf16, #tpu.memory_space<vmem>>, vector<1x8x16xbf16>
    %212 = vector.shape_cast %211 : vector<1x8x16xbf16> to vector<8x16xbf16>
    %c2_94 = arith.constant 2 : index
    %c0_95 = arith.constant 0 : index
    %c0_96 = arith.constant 0 : index
    %213 = vector.load %arg6[%c2_94, %c0_95, %c0_96] : memref<4x8x1xf32, #tpu.memory_space<vmem>>, vector<1x8x1xf32>
    %214 = vector.shape_cast %213 : vector<1x8x1xf32> to vector<8x1xf32>
    %c2_97 = arith.constant 2 : index
    %c0_98 = arith.constant 0 : index
    %c0_99 = arith.constant 0 : index
    %215 = vector.load %arg7[%c2_97, %c0_98, %c0_99] : memref<4x8x8xbf16, #tpu.memory_space<vmem>>, vector<1x8x8xbf16>
    %216 = vector.shape_cast %215 : vector<1x8x8xbf16> to vector<8x8xbf16>
    %c2_100 = arith.constant 2 : index
    %c0_101 = arith.constant 0 : index
    %c0_102 = arith.constant 0 : index
    %217 = vector.load %arg8[%c2_100, %c0_101, %c0_102] : memref<4x8x1xf32, #tpu.memory_space<vmem>>, vector<1x8x1xf32>
    %218 = vector.shape_cast %217 : vector<1x8x1xf32> to vector<8x1xf32>
    %c2_103 = arith.constant 2 : index
    %c0_104 = arith.constant 0 : index
    %c0_105 = arith.constant 0 : index
    %219 = vector.load %arg9[%c2_103, %c0_104, %c0_105] : memref<4x8x1xf32, #tpu.memory_space<vmem>>, vector<1x8x1xf32>
    %220 = vector.shape_cast %219 : vector<1x8x1xf32> to vector<8x1xf32>
    %c2_106 = arith.constant 2 : index
    %c0_107 = arith.constant 0 : index
    %c0_108 = arith.constant 0 : index
    %221 = vector.load %arg10[%c2_106, %c0_107, %c0_108] : memref<4x8x1xf32, #tpu.memory_space<vmem>>, vector<1x8x1xf32>
    %222 = vector.shape_cast %221 : vector<1x8x1xf32> to vector<8x1xf32>
    %c511_i32_109 = arith.constant 511 : i32
    %223 = tpu.dynamic_rotate %206 by %c511_i32_109 dim 1 : vector<8x512xf32>, i32 -> vector<8x512xf32>
    %c1_i32_110 = arith.constant 1 : i32
    %224 = tpu.dynamic_rotate %206 by %c1_i32_110 dim 1 : vector<8x512xf32>, i32 -> vector<8x512xf32>
    %225 = arith.select %29, %223, %224 : vector<8x512xi1>, vector<8x512xf32>
    %226 = arith.maximumf %206, %225 : vector<8x512xf32>
    %c496_i32_111 = arith.constant 496 : i32
    %227 = tpu.dynamic_rotate %226 by %c496_i32_111 dim 1 : vector<8x512xf32>, i32 -> vector<8x512xf32>
    %c16_i32_112 = arith.constant 16 : i32
    %228 = tpu.dynamic_rotate %226 by %c16_i32_112 dim 1 : vector<8x512xf32>, i32 -> vector<8x512xf32>
    %229 = arith.select %33, %227, %228 : vector<8x512xi1>, vector<8x512xf32>
    %230 = arith.maximumf %226, %229 : vector<8x512xf32>
    %231 = arith.truncf %230 : vector<8x512xf32> to vector<8x512xbf16>
    %cst_113 = arith.constant dense<0.000000e+00> : vector<16x512xf32>
    %232 = tpu.matmul %208, %231, %cst_113 {dimension_numbers = #tpu.dot_dimension_numbers<[1], [0], [0], [1], [0, 0, 1, 1], [], []>} : vector<16x8xbf16>, vector<8x512xbf16>, vector<16x512xf32> -> vector<16x512xf32>
    %233 = vector.broadcast %210 : vector<16x1xf32> to vector<16x512xf32>
    %234 = arith.addf %232, %233 : vector<16x512xf32>
    %cst_114 = arith.constant 0.000000e+00 : f32
    %235 = vector.broadcast %cst_114 : f32 to vector<16x512xf32>
    %236 = arith.maximumf %234, %235 : vector<16x512xf32>
    %237 = arith.truncf %236 : vector<16x512xf32> to vector<16x512xbf16>
    %cst_115 = arith.constant dense<0.000000e+00> : vector<8x512xf32>
    %238 = tpu.matmul %212, %237, %cst_115 {dimension_numbers = #tpu.dot_dimension_numbers<[1], [0], [0], [1], [0, 0, 1, 1], [], []>} : vector<8x16xbf16>, vector<16x512xbf16>, vector<8x512xf32> -> vector<8x512xf32>
    %239 = vector.broadcast %214 : vector<8x1xf32> to vector<8x512xf32>
    %240 = arith.addf %238, %239 : vector<8x512xf32>
    %241 = arith.truncf %240 : vector<8x512xf32> to vector<8x512xbf16>
    %cst_116 = arith.constant dense<0.000000e+00> : vector<8x512xf32>
    %242 = tpu.matmul %216, %241, %cst_116 {dimension_numbers = #tpu.dot_dimension_numbers<[1], [0], [0], [1], [0, 0, 1, 1], [], []>} : vector<8x8xbf16>, vector<8x512xbf16>, vector<8x512xf32> -> vector<8x512xf32>
    %243 = vector.broadcast %218 : vector<8x1xf32> to vector<8x512xf32>
    %244 = arith.addf %242, %243 : vector<8x512xf32>
    %cst_117 = arith.constant 5.000000e-01 : f32
    %245 = vector.broadcast %cst_117 : f32 to vector<8x512xf32>
    %246 = arith.mulf %245, %244 : vector<8x512xf32>
    %247 = math.tanh %246 : vector<8x512xf32>
    %cst_118 = arith.constant 1.000000e+00 : f32
    %248 = vector.broadcast %cst_118 : f32 to vector<8x512xf32>
    %249 = arith.addf %247, %248 : vector<8x512xf32>
    %cst_119 = arith.constant 5.000000e-01 : f32
    %250 = vector.broadcast %cst_119 : f32 to vector<8x512xf32>
    %251 = arith.mulf %250, %249 : vector<8x512xf32>
    %252 = arith.mulf %206, %251 : vector<8x512xf32>
    %253 = arith.addf %252, %206 : vector<8x512xf32>
    %254 = vector.broadcast %220 : vector<8x1xf32> to vector<8x512xf32>
    %255 = arith.mulf %253, %254 : vector<8x512xf32>
    %256 = vector.broadcast %222 : vector<8x1xf32> to vector<8x512xf32>
    %257 = arith.addf %255, %256 : vector<8x512xf32>
    %cst_120 = arith.constant 0.000000e+00 : f32
    %258 = vector.broadcast %cst_120 : f32 to vector<8x512xf32>
    %259 = arith.maximumf %257, %258 : vector<8x512xf32>
    %c3 = arith.constant 3 : index
    %c0_121 = arith.constant 0 : index
    %c0_122 = arith.constant 0 : index
    %260 = vector.load %arg3[%c3, %c0_121, %c0_122] : memref<4x16x8xbf16, #tpu.memory_space<vmem>>, vector<1x16x8xbf16>
    %261 = vector.shape_cast %260 : vector<1x16x8xbf16> to vector<16x8xbf16>
    %c3_123 = arith.constant 3 : index
    %c0_124 = arith.constant 0 : index
    %c0_125 = arith.constant 0 : index
    %262 = vector.load %arg4[%c3_123, %c0_124, %c0_125] : memref<4x16x1xf32, #tpu.memory_space<vmem>>, vector<1x16x1xf32>
    %263 = vector.shape_cast %262 : vector<1x16x1xf32> to vector<16x1xf32>
    %c3_126 = arith.constant 3 : index
    %c0_127 = arith.constant 0 : index
    %c0_128 = arith.constant 0 : index
    %264 = vector.load %arg5[%c3_126, %c0_127, %c0_128] : memref<4x8x16xbf16, #tpu.memory_space<vmem>>, vector<1x8x16xbf16>
    %265 = vector.shape_cast %264 : vector<1x8x16xbf16> to vector<8x16xbf16>
    %c3_129 = arith.constant 3 : index
    %c0_130 = arith.constant 0 : index
    %c0_131 = arith.constant 0 : index
    %266 = vector.load %arg6[%c3_129, %c0_130, %c0_131] : memref<4x8x1xf32, #tpu.memory_space<vmem>>, vector<1x8x1xf32>
    %267 = vector.shape_cast %266 : vector<1x8x1xf32> to vector<8x1xf32>
    %c3_132 = arith.constant 3 : index
    %c0_133 = arith.constant 0 : index
    %c0_134 = arith.constant 0 : index
    %268 = vector.load %arg7[%c3_132, %c0_133, %c0_134] : memref<4x8x8xbf16, #tpu.memory_space<vmem>>, vector<1x8x8xbf16>
    %269 = vector.shape_cast %268 : vector<1x8x8xbf16> to vector<8x8xbf16>
    %c3_135 = arith.constant 3 : index
    %c0_136 = arith.constant 0 : index
    %c0_137 = arith.constant 0 : index
    %270 = vector.load %arg8[%c3_135, %c0_136, %c0_137] : memref<4x8x1xf32, #tpu.memory_space<vmem>>, vector<1x8x1xf32>
    %271 = vector.shape_cast %270 : vector<1x8x1xf32> to vector<8x1xf32>
    %c3_138 = arith.constant 3 : index
    %c0_139 = arith.constant 0 : index
    %c0_140 = arith.constant 0 : index
    %272 = vector.load %arg9[%c3_138, %c0_139, %c0_140] : memref<4x8x1xf32, #tpu.memory_space<vmem>>, vector<1x8x1xf32>
    %273 = vector.shape_cast %272 : vector<1x8x1xf32> to vector<8x1xf32>
    %c3_141 = arith.constant 3 : index
    %c0_142 = arith.constant 0 : index
    %c0_143 = arith.constant 0 : index
    %274 = vector.load %arg10[%c3_141, %c0_142, %c0_143] : memref<4x8x1xf32, #tpu.memory_space<vmem>>, vector<1x8x1xf32>
    %275 = vector.shape_cast %274 : vector<1x8x1xf32> to vector<8x1xf32>
    %c511_i32_144 = arith.constant 511 : i32
    %276 = tpu.dynamic_rotate %259 by %c511_i32_144 dim 1 : vector<8x512xf32>, i32 -> vector<8x512xf32>
    %c1_i32_145 = arith.constant 1 : i32
    %277 = tpu.dynamic_rotate %259 by %c1_i32_145 dim 1 : vector<8x512xf32>, i32 -> vector<8x512xf32>
    %278 = arith.select %29, %276, %277 : vector<8x512xi1>, vector<8x512xf32>
    %279 = arith.maximumf %259, %278 : vector<8x512xf32>
    %c496_i32_146 = arith.constant 496 : i32
    %280 = tpu.dynamic_rotate %279 by %c496_i32_146 dim 1 : vector<8x512xf32>, i32 -> vector<8x512xf32>
    %c16_i32_147 = arith.constant 16 : i32
    %281 = tpu.dynamic_rotate %279 by %c16_i32_147 dim 1 : vector<8x512xf32>, i32 -> vector<8x512xf32>
    %282 = arith.select %33, %280, %281 : vector<8x512xi1>, vector<8x512xf32>
    %283 = arith.maximumf %279, %282 : vector<8x512xf32>
    %284 = arith.truncf %283 : vector<8x512xf32> to vector<8x512xbf16>
    %cst_148 = arith.constant dense<0.000000e+00> : vector<16x512xf32>
    %285 = tpu.matmul %261, %284, %cst_148 {dimension_numbers = #tpu.dot_dimension_numbers<[1], [0], [0], [1], [0, 0, 1, 1], [], []>} : vector<16x8xbf16>, vector<8x512xbf16>, vector<16x512xf32> -> vector<16x512xf32>
    %286 = vector.broadcast %263 : vector<16x1xf32> to vector<16x512xf32>
    %287 = arith.addf %285, %286 : vector<16x512xf32>
    %cst_149 = arith.constant 0.000000e+00 : f32
    %288 = vector.broadcast %cst_149 : f32 to vector<16x512xf32>
    %289 = arith.maximumf %287, %288 : vector<16x512xf32>
    %290 = arith.truncf %289 : vector<16x512xf32> to vector<16x512xbf16>
    %cst_150 = arith.constant dense<0.000000e+00> : vector<8x512xf32>
    %291 = tpu.matmul %265, %290, %cst_150 {dimension_numbers = #tpu.dot_dimension_numbers<[1], [0], [0], [1], [0, 0, 1, 1], [], []>} : vector<8x16xbf16>, vector<16x512xbf16>, vector<8x512xf32> -> vector<8x512xf32>
    %292 = vector.broadcast %267 : vector<8x1xf32> to vector<8x512xf32>
    %293 = arith.addf %291, %292 : vector<8x512xf32>
    %294 = arith.truncf %293 : vector<8x512xf32> to vector<8x512xbf16>
    %cst_151 = arith.constant dense<0.000000e+00> : vector<8x512xf32>
    %295 = tpu.matmul %269, %294, %cst_151 {dimension_numbers = #tpu.dot_dimension_numbers<[1], [0], [0], [1], [0, 0, 1, 1], [], []>} : vector<8x8xbf16>, vector<8x512xbf16>, vector<8x512xf32> -> vector<8x512xf32>
    %296 = vector.broadcast %271 : vector<8x1xf32> to vector<8x512xf32>
    %297 = arith.addf %295, %296 : vector<8x512xf32>
    %cst_152 = arith.constant 5.000000e-01 : f32
    %298 = vector.broadcast %cst_152 : f32 to vector<8x512xf32>
    %299 = arith.mulf %298, %297 : vector<8x512xf32>
    %300 = math.tanh %299 : vector<8x512xf32>
    %cst_153 = arith.constant 1.000000e+00 : f32
    %301 = vector.broadcast %cst_153 : f32 to vector<8x512xf32>
    %302 = arith.addf %300, %301 : vector<8x512xf32>
    %cst_154 = arith.constant 5.000000e-01 : f32
    %303 = vector.broadcast %cst_154 : f32 to vector<8x512xf32>
    %304 = arith.mulf %303, %302 : vector<8x512xf32>
    %305 = arith.mulf %259, %304 : vector<8x512xf32>
    %306 = arith.addf %305, %259 : vector<8x512xf32>
    %307 = vector.broadcast %273 : vector<8x1xf32> to vector<8x512xf32>
    %308 = arith.mulf %306, %307 : vector<8x512xf32>
    %309 = vector.broadcast %275 : vector<8x1xf32> to vector<8x512xf32>
    %310 = arith.addf %308, %309 : vector<8x512xf32>
    %cst_155 = arith.constant 0.000000e+00 : f32
    %311 = vector.broadcast %cst_155 : f32 to vector<8x512xf32>
    %312 = arith.maximumf %310, %311 : vector<8x512xf32>
    %c0_156 = arith.constant 0 : index
    %c0_157 = arith.constant 0 : index
    %c0_158 = arith.constant 0 : index
    %313 = vector.load %arg11[%c0_156, %c0_157, %c0_158] : memref<3x17x24xbf16, #tpu.memory_space<vmem>>, vector<3x17x24xbf16>
    %c0_159 = arith.constant 0 : index
    %c0_160 = arith.constant 0 : index
    %314 = vector.load %arg12[%c0_159, %c0_160] : memref<17x1xf32, #tpu.memory_space<vmem>>, vector<17x1xf32>
    %c1_i32_161 = arith.constant 1 : i32
    %315 = tpu.dynamic_rotate %312 by %c1_i32_161 dim 1 : vector<8x512xf32>, i32 -> vector<8x512xf32>
    %316 = vector.broadcast %7 : vector<1x512xf32> to vector<8x512xf32>
    %317 = arith.mulf %315, %316 : vector<8x512xf32>
    %c511_i32_162 = arith.constant 511 : i32
    %318 = tpu.dynamic_rotate %312 by %c511_i32_162 dim 1 : vector<8x512xf32>, i32 -> vector<8x512xf32>
    %319 = vector.broadcast %13 : vector<1x512xf32> to vector<8x512xf32>
    %320 = arith.mulf %318, %319 : vector<8x512xf32>
    %321 = tpu.concatenate %317, %312, %320 in 0 : vector<8x512xf32>, vector<8x512xf32>, vector<8x512xf32> -> vector<24x512xf32>
    %322 = arith.truncf %321 : vector<24x512xf32> to vector<24x512xbf16>
    %323 = vector.extract_strided_slice %313 {offsets = [0, 0, 0], sizes = [1, 17, 24], strides = [1, 1, 1]} : vector<3x17x24xbf16> to vector<1x17x24xbf16>
    %324 = vector.shape_cast %323 : vector<1x17x24xbf16> to vector<17x24xbf16>
    %cst_163 = arith.constant dense<0.000000e+00> : vector<17x512xf32>
    %325 = tpu.matmul %324, %322, %cst_163 {dimension_numbers = #tpu.dot_dimension_numbers<[1], [0], [0], [1], [0, 0, 1, 1], [], []>} : vector<17x24xbf16>, vector<24x512xbf16>, vector<17x512xf32> -> vector<17x512xf32>
    %326 = vector.extract_strided_slice %313 {offsets = [1, 0, 0], sizes = [1, 17, 24], strides = [1, 1, 1]} : vector<3x17x24xbf16> to vector<1x17x24xbf16>
    %327 = vector.shape_cast %326 : vector<1x17x24xbf16> to vector<17x24xbf16>
    %cst_164 = arith.constant dense<0.000000e+00> : vector<17x512xf32>
    %328 = tpu.matmul %327, %322, %cst_164 {dimension_numbers = #tpu.dot_dimension_numbers<[1], [0], [0], [1], [0, 0, 1, 1], [], []>} : vector<17x24xbf16>, vector<24x512xbf16>, vector<17x512xf32> -> vector<17x512xf32>
    %329 = vector.extract_strided_slice %313 {offsets = [2, 0, 0], sizes = [1, 17, 24], strides = [1, 1, 1]} : vector<3x17x24xbf16> to vector<1x17x24xbf16>
    %330 = vector.shape_cast %329 : vector<1x17x24xbf16> to vector<17x24xbf16>
    %cst_165 = arith.constant dense<0.000000e+00> : vector<17x512xf32>
    %331 = tpu.matmul %330, %322, %cst_165 {dimension_numbers = #tpu.dot_dimension_numbers<[1], [0], [0], [1], [0, 0, 1, 1], [], []>} : vector<17x24xbf16>, vector<24x512xbf16>, vector<17x512xf32> -> vector<17x512xf32>
    %c16_i32_166 = arith.constant 16 : i32
    %332 = tpu.dynamic_rotate %325 by %c16_i32_166 dim 1 : vector<17x512xf32>, i32 -> vector<17x512xf32>
    %333 = vector.broadcast %19 : vector<1x512xf32> to vector<17x512xf32>
    %334 = arith.mulf %332, %333 : vector<17x512xf32>
    %335 = arith.addf %328, %334 : vector<17x512xf32>
    %c496_i32_167 = arith.constant 496 : i32
    %336 = tpu.dynamic_rotate %331 by %c496_i32_167 dim 1 : vector<17x512xf32>, i32 -> vector<17x512xf32>
    %337 = vector.broadcast %25 : vector<1x512xf32> to vector<17x512xf32>
    %338 = arith.mulf %336, %337 : vector<17x512xf32>
    %339 = arith.addf %335, %338 : vector<17x512xf32>
    %340 = vector.broadcast %314 : vector<17x1xf32> to vector<17x512xf32>
    %341 = arith.addf %339, %340 : vector<17x512xf32>
    %cst_168 = arith.constant 0.000000e+00 : f32
    %342 = vector.broadcast %cst_168 : f32 to vector<17x512xf32>
    %343 = arith.maximumf %341, %342 : vector<17x512xf32>
    %c0_169 = arith.constant 0 : index
    %c0_170 = arith.constant 0 : index
    %344 = vector.load %arg13[%c0_169, %c0_170] : memref<512x2xbf16, #tpu.memory_space<vmem>>, vector<512x2xbf16>
    %345 = arith.truncf %343 : vector<17x512xf32> to vector<17x512xbf16>
    %cst_171 = arith.constant dense<0.000000e+00> : vector<17x2xf32>
    %346 = tpu.matmul %345, %344, %cst_171 {dimension_numbers = #tpu.dot_dimension_numbers<[1], [0], [0], [1], [0, 0, 1, 1], [], []>} : vector<17x512xbf16>, vector<512x2xbf16>, vector<17x2xf32> -> vector<17x2xf32>
    %c0_172 = arith.constant 0 : index
    %c0_173 = arith.constant 0 : index
    %347 = vector.load %arg14[%c0_172, %c0_173] : memref<10x17xbf16, #tpu.memory_space<vmem>>, vector<10x17xbf16>
    %348 = arith.truncf %346 : vector<17x2xf32> to vector<17x2xbf16>
    %cst_174 = arith.constant dense<0.000000e+00> : vector<10x2xf32>
    %349 = tpu.matmul %347, %348, %cst_174 {dimension_numbers = #tpu.dot_dimension_numbers<[1], [0], [0], [1], [0, 0, 1, 1], [], []>} : vector<10x17xbf16>, vector<17x2xbf16>, vector<10x2xf32> -> vector<10x2xf32>
    %c0_175 = arith.constant 0 : index
    %c0_176 = arith.constant 0 : index
    %350 = vector.load %arg15[%c0_175, %c0_176] : memref<10x1xf32, #tpu.memory_space<vmem>>, vector<10x1xf32>
    %351 = vector.broadcast %350 : vector<10x1xf32> to vector<10x2xf32>
    %352 = arith.addf %349, %351 : vector<10x2xf32>
    %c0_177 = arith.constant 0 : index
    %c0_178 = arith.constant 0 : index
    %353 = vector.load %arg16[%c0_177, %c0_178] : memref<10x2xf32, #tpu.memory_space<vmem>>, vector<10x2xf32>
    tpu.vector_store %arg16[%c0_177, %c0_178], %352 {strides = array<i32>} : memref<10x2xf32, #tpu.memory_space<vmem>>, vector<10x2xf32>,
    return
  }
}

</mosaic_0001>

<bundles_post_ra>
// kernel: tinyspeech_zz_forward.1
= control target key start
LH: loop header
LB: loop body
LE: loop exit
PB: predicated region body
PF: predicated region fallthrough
CT: control target
= control target key end

     0   :  { %v54_v0 = vlaneseq  ;;  %v3660_v1 = vmov 1   ;;  %v3661_v3 = vmov 0   ;;  %v3662_v12 = vmov 2   ;;  %s3663_s26 = smov 1   ;;  %s3667_s17 = smov 112   ;;  %s4873_s1 = inlined_call_operand.vmem [shape: f32[3,8,3], index: 1, kind: input, shape index: {}]   ;;  %s4874_s0 = inlined_call_operand.vmem [shape: f32[1,512], index: 0, kind: input, shape index: {}]   ;;  %s4875_s2 = inlined_call_operand.vmem [shape: f32[8,1], index: 2, kind: input, shape index: {}]   ;;  %s4876_s4 = inlined_call_operand.vmem [shape: f32[4,16,1], index: 4, kind: input, shape index: {}]   ;;  %s4877_s3 = inlined_call_operand.vmem [shape: bf16[4,16,8], index: 3, kind: input, shape index: {}]   ;;  %s4878_s6 = inlined_call_operand.vmem [shape: f32[4,8,1], index: 6, kind: input, shape index: {}]   ;;  %s4879_s9 = inlined_call_operand.vmem [shape: f32[4,8,1], index: 9, kind: input, shape index: {}]   ;;  %s4880_s8 = inlined_call_operand.vmem [shape: f32[4,8,1], index: 8, kind: input, shape index: {}]   ;;  %s4881_s10 = inlined_call_operand.vmem [shape: f32[4,8,1], index: 10, kind: input, shape index: {}]   ;;  %s4882_s5 = inlined_call_operand.vmem [shape: bf16[4,8,16], index: 5, kind: input, shape index: {}]   ;;  %s4883_s7 = inlined_call_operand.vmem [shape: bf16[4,8,8], index: 7, kind: input, shape index: {}]   ;;  %s4884_s11 = inlined_call_operand.vmem [shape: bf16[3,17,24], index: 11, kind: input, shape index: {}]   ;;  %s4885_s12 = inlined_call_operand.vmem [shape: f32[17,1], index: 12, kind: input, shape index: {}]   ;;  %s4886_s13 = inlined_call_operand.vmem [shape: bf16[512,2], index: 13, kind: input, shape index: {}]   ;;  %s4887_s15 = inlined_call_operand.vmem [shape: f32[10,1], index: 15, kind: input, shape index: {}]   ;;  %s4888_s14 = inlined_call_operand.vmem [shape: bf16[10,17], index: 14, kind: input, shape index: {}]   ;;  %s4889_s16 = inlined_call_operand.vmem [shape: f32[10,2], index: 16, kind: output, shape index: {}]  }
   0x1   :  { %4891 = sst [smem:[#allocation2_spill]] %s4873_s1  ;;  %3417 = vset.pattern.permute.xlu1 %v3660_v1  ;;  %3416 = vset.pattern.permute.xlu0 %v3661_v3  ;;  %v131_v5 = vld [vmem:[%s4874_s0] sm:$0xf]  ;;  %s3664_s0 = smov 127   ;;  %v3665_v29 = vmov 0.0  }
   0x2   :  { %s4892_s23 = sld [smem:[#allocation2_spill]]  ;;  %v138_v4 = vshrl.u32 %v54_v0, 7  ;;  %519 = vmatprep.mubr.bf16.mxu0 %v3661_v3  ;;  %562 = vmatprep.mubr.bf16.mxu1 %v3661_v3  ;;  %v3799_v17 = vand.u32 127, %v54_v0  ;;  %s3666_s1 = smov 16  }
   0x4   :  { %v3763_v6 = vsub.s32 0, %v138_v4  ;;  %v147_v7 = vsub.s32 2, %v138_v4  ;;  %v151_v8 = vsub.s32 3, %v138_v4  ;;  %v143_v9 = vsub.s32 1, %v138_v4 }
   0x5   :  { %v3802_v18 = vadd.s32 128, %v3799_v17  ;;  %v3807_v20 = vadd.s32 384, %v3799_v17  ;;  %v59_v22 = vand.u32 15, %v3799_v17  ;;  %v3811_v23 = vadd.s32 256, %v3799_v17 }
   0x6   :  { %v3765_v10 = vrot.slane %v131_v5, %v147_v7  ;;  %v3768_v11 = vrot.slane %v131_v5, %v3763_v6  ;;  %v3774_v13 = vrot.slane %v131_v5, %v151_v8  ;;  %v3776_v14 = vrot.slane %v131_v5, %v143_v9 }
   0x7   :  { %v60_v24 = vand.u32 15, %v3802_v18  ;;  %v62_v26 = vand.u32 15, %v3807_v20  ;;  %vm63_vm0 = vcmp.ne.s32.totalorder %v59_v22, 0  ;;  %v61_v27 = vand.u32 15, %v3811_v23 }
   0x8   :  { %v132_v2 = vld [vmem:[%s4892_s23] sm:$0xff]  ;;  %157 = vrot.lane.b32.xlu0 %v3768_v11, %s3663_s26  ;;  %v134_v15 = vld [vmem:[%s4892_s23 + $0x10] sm:$0xff]  ;;  %v133_v16 = vld [vmem:[%s4892_s23 + $0x8] sm:$0xff]  ;;  %vm165_vm1 = vcmp.lt.s32.totalorder %v3799_v17, 1  ;;  %v3818_v30 = vsel %vm63_vm0, 1.0, %v3665_v29  ;;  %vm75_vm5 = vcmp.ne.s32.totalorder %v59_v22, 15 }
   0x9   :  { %217 = vperm.xlu1 %3417, %v132_v2   ;;  %vm64_vm2 = vcmp.ne.s32.totalorder %v60_v24, 0  ;;  %vm66_vm3 = vcmp.ne.s32.totalorder %v62_v26, 0  ;;  %vm65_vm4 = vcmp.ne.s32.totalorder %v61_v27, 0  ;;  %vm76_vm6 = vcmp.ne.s32.totalorder %v60_v24, 15 }
   0xa   :  { %v3823_v33 = vsel %vm64_vm2, 1.0, %v3665_v29  ;;  %v3828_v35 = vsel %vm66_vm3, 1.0, %v3665_v29  ;;  %v3835_v40 = vsel %vm65_vm4, 1.0, %v3665_v29  ;;  %vm182_vm7 = vcmp.lt.s32.totalorder %v3799_v17, 127 }
   0xb   :  { %v3849_v47 = vsel %vm75_vm5, 1.0, %v3665_v29  ;;  %v3852_v48 = vsel %vm76_vm6, 1.0, %v3665_v29  ;;  %vm77_vm8 = vcmp.ne.s32.totalorder %v61_v27, 15  ;;  %vm78_vm9 = vcmp.ne.s32.totalorder %v62_v26, 15 }
   0xc   :  { %159 = vrot.lane.b32.xlu0 %v3776_v14, %s3663_s26  ;;  %v3869_v59 = vsel %vm77_vm8, 1.0, %v3665_v29  ;;  %v3872_v60 = vsel %vm78_vm9, 1.0, %v3665_v29  ;;  %vm330_vm11 = vcmp.lt.s32.totalorder %v3799_v17, 16  ;;  %vm351_vm15 = vcmp.lt.s32.totalorder %v3799_v17, 112 }
   0xd   :  { %3418 = vset.pattern.permute.xlu1 %v3662_v12 }
   0xe   :  { %161 = vrot.lane.b32.xlu1 %v3765_v10, %s3663_s26 }
  0x10   :  { %193 = vperm.xlu0 %3416, %v132_v2  }
  0x12   :  { %163 = vrot.lane.b32.xlu1 %v3774_v13, %s3663_s26 }
  0x14   :  { %176 = vrot.lane.b32.xlu0 %v3776_v14, %s3664_s0 }
  0x16   :  { %174 = vrot.lane.b32.xlu1 %v3768_v11, %s3664_s0 }
  0x18   :  { %180 = vrot.lane.b32.xlu0 %v3774_v13, %s3664_s0 }
  0x1a   :  { %178 = vrot.lane.b32.xlu1 %v3765_v10, %s3664_s0 }
  0x1c   :  { %291 = vperm.xlu0 %3416, %v134_v15  }
  0x1e   :  { %229 = vperm.xlu1 %3418, %v132_v2  }
  0x20   :  { %3420 = vset.pattern.permute.xlu0 %v3662_v12 }
  0x21   :  { %311 = vperm.xlu0 %3420, %v134_v15  }
  0x22   :  { %3419 = vset.pattern.permute.xlu1 %v3660_v1 }
  0x23   :  { %299 = vperm.xlu1 %3419, %v134_v15  }
  0x25   :  { %278 = vperm.xlu0 %3420, %v133_v16  }
  0x27   :  { %3421 = vset.pattern.permute.xlu1 %v3661_v3 }
  0x28   :  { %258 = vperm.xlu1 %3421, %v133_v16  }
  0x29   :  { %3464 = vset.pattern.permute.xlu0 %v3661_v3 }
  0x2c   :  { %3422 = vset.pattern.permute.xlu1 %v3660_v1 }
  0x2d   :  { %266 = vperm.xlu1 %3422, %v133_v16  }
  0x31   :  { %3423 = vset.pattern.permute.xlu1 %v3661_v3 }
  0x7a   :  { %v158_v21 = vpop.permute.xlu0 %157 }
  0x7e   :  { %v160_v28 = vpop.permute.xlu0 %159 }
  0x7f   :  { %v168_v34 = vsel %vm165_vm1, %v158_v21, %v160_v28 }
  0x80   :  { %v171_v39 = vmul.f32 %v3823_v33, %v168_v34 }
  0x82   :  { %v3846_v46 = vrot.slane %v171_v39, %v3763_v6 }
  0x84   :  { %v3804_v19 = vpop.permute.xlu1 %217 }
  0x85   :  { %v221_v61 = vmul.f32 %v3804_v19, %v3776_v14  ;;  %v220_v62 = vmul.f32 %v3804_v19, %v3768_v11  ;;  %v223_v24 = vmul.f32 %v3804_v19, %v3774_v13 }
  0x88   :  { %v162_v25 = vpop.permute.xlu1 %161 }
  0x89   :  { %v167_v41 = vsel %vm165_vm1, %v160_v28, %v162_v25 }
  0x8a   :  { %v172_v45 = vmul.f32 %v3835_v40, %v167_v41 }
  0x8b   :  { %v194_v43 = vpop.permute.xlu0 %193 }
  0x8c   :  { %v164_v31 = vpop.permute.xlu1 %163  ;;  %v213_v54 = vmul.f32 %v3846_v46, %v194_v43  ;;  %v3864_v56 = vrot.slane %v172_v45, %v3763_v6 }
  0x8d   :  { %v169_v32 = vsel %vm165_vm1, %v164_v31, %v158_v21  ;;  %v166_v36 = vsel %vm165_vm1, %v162_v25, %v164_v31  ;;  %v222_v25 = vmul.f32 %v3804_v19, %v3765_v10 }
  0x8e   :  { %v170_v37 = vmul.f32 %v3818_v30, %v169_v32  ;;  %v173_v42 = vmul.f32 %v3828_v35, %v166_v36  ;;  %v214_v5 = vmul.f32 %v3864_v56, %v194_v43  ;;  %v225_v9 = vadd.f32 %v221_v61, %v213_v54 }
  0x8f   :  { %v177_v51 = vpop.permute.xlu0 %176 }
  0x90   :  { %v175_v38 = vpop.permute.xlu1 %174  ;;  %v3841_v44 = vrot.slane %v170_v37, %v3763_v6  ;;  %v3855_v49 = vrot.slane %v173_v42, %v3763_v6  ;;  %v226_v37 = vadd.f32 %v222_v25, %v214_v5 }
  0x91   :  { %v185_v53 = vsel %vm182_vm7, %v175_v38, %v177_v51 }
  0x92   :  { %v212_v55 = vmul.f32 %v3841_v44, %v194_v43  ;;  %v187_v57 = vmul.f32 %v3849_v47, %v185_v53  ;;  %v215_v4 = vmul.f32 %v3855_v49, %v194_v43 }
  0x93   :  { %v181_v1 = vpop.permute.xlu0 %180 }
  0x94   :  { %v179_v50 = vpop.permute.xlu1 %178  ;;  %v3879_v63 = vrot.slane %v187_v57, %v3763_v6  ;;  %v186_v8 = vsel %vm182_vm7, %v181_v1, %v175_v38  ;;  %v224_v12 = vadd.f32 %v220_v62, %v212_v55  ;;  %v227_v36 = vadd.f32 %v223_v24, %v215_v4 }
  0x95   :  { %v184_v52 = vsel %vm182_vm7, %v177_v51, %v179_v50  ;;  %v183_v7 = vsel %vm182_vm7, %v179_v50, %v181_v1  ;;  %v190_v16 = vmul.f32 %v3872_v60, %v186_v8 }
  0x96   :  { %v188_v58 = vmul.f32 %v3852_v48, %v184_v52  ;;  %v189_v15 = vmul.f32 %v3869_v59, %v183_v7 }
  0x97   :  { %v247_v27 = vrot.slane %v190_v16, %v3763_v6  ;;  %v292_v28 = vpop.permute.xlu0 %291 }
  0x98   :  { %v3882_v0 = vrot.slane %v188_v58, %v3763_v6  ;;  %v243_v26 = vrot.slane %v189_v15, %v3763_v6  ;;  %v295_v38 = vmul.f32 %v292_v28, %v3846_v46  ;;  %v294_v39 = vmul.f32 %v292_v28, %v3841_v44 }
  0x99   :  { %v230_v2 = vpop.permute.xlu1 %229  ;;  %v297_v50 = vmul.f32 %v292_v28, %v3855_v49  ;;  %v296_v54 = vmul.f32 %v292_v28, %v3864_v56 }
  0x9a   :  { %v249_v21 = vmul.f32 %v3882_v0, %v230_v2  ;;  %v248_v22 = vmul.f32 %v3879_v63, %v230_v2  ;;  %v251_v19 = vmul.f32 %v247_v27, %v230_v2  ;;  %v250_v41 = vmul.f32 %v243_v26, %v230_v2 }
  0x9c   :  { %v253_v31 = vadd.f32 %v249_v21, %v225_v9  ;;  %v252_v32 = vadd.f32 %v248_v22, %v224_v12  ;;  %v255_v43 = vadd.f32 %v251_v19, %v227_v36  ;;  %v254_v45 = vadd.f32 %v250_v41, %v226_v37  ;;  %v312_v51 = vpop.permute.xlu0 %311 }
  0x9d   :  { %v315_v58 = vmul.f32 %v312_v51, %v3882_v0  ;;  %v314_v62 = vmul.f32 %v312_v51, %v3879_v63  ;;  %v317_v1 = vmul.f32 %v312_v51, %v247_v27  ;;  %v316_v5 = vmul.f32 %v312_v51, %v243_v26 }
  0x9e   :  { %v300_v34 = vpop.permute.xlu1 %299  ;;  %324 = vrot.lane.b32.xlu0 %v253_v31, %s3666_s1  ;;  %322 = vrot.lane.b32.xlu1 %v252_v32, %s3666_s1 }
  0x9f   :  { %v303_v42 = vmul.f32 %v300_v34, %v3776_v14  ;;  %v302_v6 = vmul.f32 %v300_v34, %v3768_v11  ;;  %v305_v53 = vmul.f32 %v300_v34, %v3774_v13  ;;  %v304_v55 = vmul.f32 %v300_v34, %v3765_v10 }
  0xa0   :  { %v279_v12 = vpop.permute.xlu0 %278 }
  0xa1   :  { %v307_v52 = vadd.f32 %v303_v42, %v295_v38  ;;  %v306_v61 = vadd.f32 %v302_v6, %v294_v39  ;;  %v309_v7 = vadd.f32 %v305_v53, %v297_v50  ;;  %v308_v8 = vadd.f32 %v304_v55, %v296_v54 }
  0xa2   :  { %328 = vrot.lane.b32.xlu0 %v255_v43, %s3666_s1  ;;  %326 = vrot.lane.b32.xlu1 %v254_v45, %s3666_s1  ;;  %v281_v34 = vmul.f32 %v279_v12, %v3879_v63  ;;  %v282_v36 = vmul.f32 %v279_v12, %v3882_v0  ;;  %v283_v38 = vmul.f32 %v279_v12, %v243_v26  ;;  %v87_v42 = vand.u32 240, %v3799_v17 }
  0xa3   :  { %v259_v57 = vpop.permute.xlu1 %258  ;;  %v319_v2 = vadd.f32 %v315_v58, %v307_v52  ;;  %v318_v4 = vadd.f32 %v314_v62, %v306_v61  ;;  %v321_v22 = vadd.f32 %v317_v1, %v309_v7  ;;  %v320_v24 = vadd.f32 %v316_v5, %v308_v8 }
  0xa4   :  { %v261_v9 = vmul.f32 %v259_v57, %v3841_v44  ;;  %v262_v15 = vmul.f32 %v259_v57, %v3846_v46  ;;  %v264_v16 = vmul.f32 %v259_v57, %v3855_v49  ;;  %v263_v32 = vmul.f32 %v259_v57, %v3864_v56 }
  0xa5   :  { %v284_v46 = vmul.f32 %v279_v12, %v247_v27  ;;  %v89_v6 = vand.u32 240, %v3811_v23  ;;  %vm91_vm10 = vcmp.ne.s32.totalorder %v87_v42, 0  ;;  %v90_v45 = vand.u32 240, %v3807_v20 }
  0xa6   :  { %345 = vrot.lane.b32.xlu0 %v319_v2, %s3667_s17  ;;  %343 = vrot.lane.b32.xlu1 %v318_v4, %s3667_s17  ;;  %v88_v50 = vand.u32 240, %v3802_v18  ;;  %v3937_v51 = vsel %vm91_vm10, 1.0, %v3665_v29  ;;  %vm474_vm10 = vcmask 1043456  }
  0xa7   :  { %vm93_vm12 = vcmp.ne.s32.totalorder %v89_v6, 0  ;;  %vm106_vm13 = vcmp.ne.s32.totalorder %v90_v45, 240 }
  0xa8   :  { %v267_v21 = vpop.permute.xlu1 %266  ;;  %vm104_vm14 = vcmp.ne.s32.totalorder %v88_v50, 240  ;;  %v3942_v55 = vsel %vm93_vm12, 1.0, %v3665_v29  ;;  %v3949_v61 = vsel %vm106_vm13, 1.0, %v3665_v29  ;;  %vm470_vm12 = vcmask 64512   ;;  %v3263_v50 = vld [vmem:[%s4876_s4 + $0x30] sm:$0xff] }
  0xa9   :  { %v269_v25 = vmul.f32 %v267_v21, %v3768_v11  ;;  %v270_v28 = vmul.f32 %v267_v21, %v3776_v14  ;;  %v271_v31 = vmul.f32 %v267_v21, %v3765_v10  ;;  %v272_v44 = vmul.f32 %v267_v21, %v3774_v13  ;;  %v135_v10 = vld [vmem:[%s4875_s2] sm:$0xff] }
  0xaa   :  { %349 = vrot.lane.b32.xlu0 %v321_v22, %s3667_s17  ;;  %347 = vrot.lane.b32.xlu1 %v320_v24, %s3667_s17  ;;  %v3954_v1 = vsel %vm104_vm14, 1.0, %v3665_v29  ;;  %vm590_vm13 = vcmask 130048   ;;  %vm3137_vm14 = vcmask 138240  }
  0xab   :  { %v274_v49 = vadd.f32 %v270_v28, %v262_v15  ;;  %v273_v37 = vadd.f32 %v269_v25, %v261_v9  ;;  %v276_v11 = vadd.f32 %v272_v44, %v264_v16  ;;  %v275_v13 = vadd.f32 %v271_v31, %v263_v32 }
  0xad   :  { %v286_v14 = vadd.f32 %v282_v36, %v274_v49  ;;  %v285_v56 = vadd.f32 %v281_v34, %v273_v37  ;;  %v288_v39 = vadd.f32 %v284_v46, %v276_v11  ;;  %v287_v63 = vadd.f32 %v283_v38, %v275_v13 }
  0xae   :  { %366 = vperm.xlu1 %3423, %v135_v10  }
 0x110   :  { %v325_v0 = vpop.permute.xlu0 %324  ;;  %v323_v27 = vpop.permute.xlu1 %322 }
 0x111   :  { %v333_v5 = vsel %vm330_vm11, %v323_v27, %v325_v0 }
 0x112   :  { %v340_v21 = vadd.f32 %v333_v5, %v286_v14 }
 0x114   :  { %v329_v19 = vpop.permute.xlu0 %328  ;;  %v327_v41 = vpop.permute.xlu1 %326 }
 0x115   :  { %v334_v52 = vsel %vm330_vm11, %v329_v19, %v323_v27  ;;  %v332_v57 = vsel %vm330_vm11, %v325_v0, %v327_v41  ;;  %v331_v7 = vsel %vm330_vm11, %v327_v41, %v329_v19  ;;  %v115_v0 = vand.u32 1, %v3799_v17 }
 0x116   :  { %v335_v58 = vmul.f32 %v3937_v51, %v334_v52  ;;  %v337_v4 = vmul.f32 %v3942_v55, %v332_v57  ;;  %v342_v22 = vadd.f32 %v331_v7, %v288_v39  ;;  %v116_v27 = vand.u32 1, %v3802_v18 }
 0x117   :  { %v117_v19 = vand.u32 1, %v3811_v23  ;;  %vm3993_vm2 = vcmp.eq.s32.totalorder %v115_v0, 0 }
 0x118   :  { %v346_v43 = vpop.permute.xlu0 %345  ;;  %v344_v26 = vpop.permute.xlu1 %343  ;;  %v339_v8 = vadd.f32 %v335_v58, %v285_v56  ;;  %v341_v24 = vadd.f32 %v337_v4, %v287_v63  ;;  %v118_v63 = vand.u32 1, %v3807_v20  ;;  %vm3997_vm3 = vcmp.eq.s32.totalorder %v116_v27, 0 }
 0x119   :  { %v354_v15 = vsel %vm351_vm15, %v344_v26, %v346_v43  ;;  %vm4001_vm4 = vcmp.eq.s32.totalorder %v117_v19, 0  ;;  %v124_v27 = vand.u32 16, %v3802_v18  ;;  %v126_v19 = vand.u32 16, %v3807_v20  ;;  %v3588_v18 = vld [vmem:[%s4877_s3 + $0x18] sm:$0xff]  }
 0x11a   :  { %v360_v25 = vadd.f32 %v354_v15, %v339_v8  ;;  %vm3989_vm0 = vcmp.eq.s32.totalorder %v118_v63, 0 }
 0x11b   :  { %vm4062_vm5 = vcmp.eq.s32.totalorder %v124_v27, 0  ;;  %vm4066_vm6 = vcmp.eq.s32.totalorder %v126_v19, 0 }
 0x11c   :  { %v350_v53 = vpop.permute.xlu0 %349  ;;  %v348_v54 = vpop.permute.xlu1 %347 }
 0x11d   :  { %v355_v62 = vsel %vm351_vm15, %v350_v53, %v344_v26  ;;  %v353_v2 = vsel %vm351_vm15, %v346_v43, %v348_v54  ;;  %v352_v16 = vsel %vm351_vm15, %v348_v54, %v350_v53  ;;  %v3264_v26 = vld [vmem:[%s4876_s4 + $0x38] sm:$0xff] }
 0x11e   :  { %v359_v9 = vmul.f32 %v3949_v61, %v355_v62  ;;  %v357_v12 = vmul.f32 %v3954_v1, %v353_v2  ;;  %v362_v44 = vadd.f32 %v352_v16, %v341_v24  ;;  %v3268_v53 = vld [vmem:[%s4880_s8 + $0x18] sm:$0xff] }
 0x120   :  { %v363_v28 = vadd.f32 %v359_v9, %v342_v22  ;;  %v361_v31 = vadd.f32 %v357_v12, %v340_v21 }
 0x129   :  { %v367_v32 = vpop.permute.xlu1 %366 }
 0x12a   :  { %v369_v34 = vadd.f32 %v367_v32, %v360_v25  ;;  %v370_v36 = vadd.f32 %v367_v32, %v361_v31  ;;  %v371_v46 = vadd.f32 %v367_v32, %v362_v44  ;;  %v372_v49 = vadd.f32 %v367_v32, %v363_v28 }
 0x12c   :  { %v3969_v37 = vmax.f32 %v369_v34, 0.0  ;;  %v3971_v11 = vmax.f32 %v370_v36, 0.0  ;;  %v3973_v38 = vmax.f32 %v371_v46, 0.0  ;;  %v3975_v10 = vmax.f32 %v372_v49, 0.0  ;;  %v380_v46 = vld [vmem:[%s4876_s4 + $0x8] sm:$0xff]  ;;  %v382_v49 = vld [vmem:[%s4878_s6] sm:$0xff] }
 0x12e   :  { %v3429_v13 = vpack.i.bf16 %v3975_v10, %v3973_v38  ;;  %v3424_v14 = vpack.i.bf16 %v3971_v11, %v3969_v37 }
 0x130   :  { %3430 = vrot.lane.b32.xlu1 %v3429_v13, %s3664_s0  ;;  %3425 = vrot.lane.b32.xlu0 %v3424_v14, %s3664_s0 }
 0x134   :  { %3440 = vrot.lane.b32.xlu1 %v3429_v13, %s3663_s26  ;;  %3435 = vrot.lane.b32.xlu0 %v3424_v14, %s3663_s26  ;;  %v379_v13 = vld [vmem:[%s4876_s4] sm:$0xff] }
 0x135   :  { %v385_v14 = vld [vmem:[%s4879_s9] sm:$0xff] }
 0x1a2   :  { %v3431_v56 = vpop.permute.xlu1 %3430  ;;  %v3426_v39 = vpop.permute.xlu0 %3425 }
 0x1a3   :  { %v3433_v41 = vunpack.i.h.bf16 %v3431_v56  ;;  %v3432_v42 = vunpack.i.l.bf16 %v3431_v56  ;;  %v3428_v6 = vunpack.i.h.bf16 %v3426_v39  ;;  %v3427_v43 = vunpack.i.l.bf16 %v3426_v39  ;;  %v384_v56 = vld [vmem:[%s4880_s8] sm:$0xff] }
 0x1a4   :  { %v386_v39 = vld [vmem:[%s4881_s10] sm:$0xff] }
 0x1a5   :  { %v395_v4 = vsel %vm182_vm7, %v3432_v42, %v3433_v41  ;;  %v396_v5 = vsel %vm182_vm7, %v3428_v6, %v3432_v42  ;;  %v397_v7 = vsel %vm182_vm7, %v3427_v43, %v3428_v6  ;;  %v398_v8 = vsel %vm182_vm7, %v3433_v41, %v3427_v43 }
 0x1a6   :  { %v3441_v45 = vpop.permute.xlu1 %3440  ;;  %v3436_v54 = vpop.permute.xlu0 %3435  ;;  %v123_v41 = vand.u32 16, %v3799_v17  ;;  %v125_v42 = vand.u32 16, %v3811_v23 }
 0x1a7   :  { %v3443_v57 = vunpack.i.h.bf16 %v3441_v45  ;;  %v3442_v58 = vunpack.i.l.bf16 %v3441_v45  ;;  %v3438_v62 = vunpack.i.h.bf16 %v3436_v54  ;;  %v3437_v2 = vunpack.i.l.bf16 %v3436_v54 }
 0x1a8   :  { %vm4070_vm8 = vcmp.eq.s32.totalorder %v123_v41, 0  ;;  %vm4074_vm9 = vcmp.eq.s32.totalorder %v125_v42, 0 }
 0x1a9   :  { %v407_v9 = vsel %vm165_vm1, %v3442_v58, %v3443_v57  ;;  %v408_v12 = vsel %vm165_vm1, %v3438_v62, %v3442_v58  ;;  %v409_v15 = vsel %vm165_vm1, %v3437_v2, %v3438_v62  ;;  %v410_v16 = vsel %vm165_vm1, %v3443_v57, %v3437_v2 }
 0x1aa   :  { %v414_v21 = vsel %vm3989_vm0, %v398_v8, %v407_v9  ;;  %v413_v22 = vsel %vm4001_vm4, %v395_v4, %v408_v12  ;;  %v411_v24 = vsel %vm3993_vm2, %v397_v7, %v410_v16  ;;  %v412_v25 = vsel %vm3997_vm3, %v396_v5, %v409_v15 }
 0x1ab   :  { %v4030_v28 = vmax.f32 %v3973_v38, %v413_v22  ;;  %v418_v31 = vmax.f32 %v3975_v10, %v414_v21  ;;  %v415_v44 = vmax.f32 %v3969_v37, %v411_v24  ;;  %v416_v32 = vmax.f32 %v3971_v11, %v412_v25 }
 0x1ad   :  { %v3449_v34 = vpack.i.bf16 %v418_v31, %v4030_v28  ;;  %v3444_v36 = vpack.i.bf16 %v416_v32, %v415_v44 }
 0x1af   :  { %3450 = vrot.lane.b32.xlu1 %v3449_v34, %s3667_s17  ;;  %3445 = vrot.lane.b32.xlu0 %v3444_v36, %s3667_s17 }
 0x1b3   :  { %3460 = vrot.lane.b32.xlu1 %v3449_v34, %s3666_s1  ;;  %3455 = vrot.lane.b32.xlu0 %v3444_v36, %s3666_s1 }
 0x1b7   :  { %462 = vperm.xlu1 %3423, %v380_v46   ;;  %457 = vperm.xlu0 %3464, %v379_v13  }
 0x1bb   :  { %587 = vperm.xlu1 %3423, %v382_v49   ;;  %682 = vperm.xlu0 %3464, %v384_v56  }
 0x1bf   :  { %808 = vperm.xlu1 %3423, %v385_v14   ;;  %817 = vperm.xlu0 %3464, %v386_v39  }
 0x221   :  { %v3451_v63 = vpop.permute.xlu1 %3450  ;;  %v3446_v0 = vpop.permute.xlu0 %3445 }
 0x222   :  { %v3453_v6 = vunpack.i.h.bf16 %v3451_v63  ;;  %v3452_v43 = vunpack.i.l.bf16 %v3451_v63  ;;  %v3448_v45 = vunpack.i.h.bf16 %v3446_v0  ;;  %v3447_v54 = vunpack.i.l.bf16 %v3446_v0 }
 0x224   :  { %v428_v8 = vsel %vm351_vm15, %v3448_v45, %v3452_v43  ;;  %v430_v9 = vsel %vm351_vm15, %v3453_v6, %v3447_v54  ;;  %v429_v12 = vsel %vm351_vm15, %v3447_v54, %v3448_v45  ;;  %v427_v15 = vsel %vm351_vm15, %v3452_v43, %v3453_v6 }
 0x225   :  { %v3461_v57 = vpop.permute.xlu1 %3460  ;;  %v3456_v58 = vpop.permute.xlu0 %3455 }
 0x226   :  { %v3463_v23 = vunpack.i.h.bf16 %v3461_v57  ;;  %v3462_v4 = vunpack.i.l.bf16 %v3461_v57  ;;  %v3458_v5 = vunpack.i.h.bf16 %v3456_v58  ;;  %v3457_v7 = vunpack.i.l.bf16 %v3456_v58 }
 0x228   :  { %v441_v16 = vsel %vm330_vm11, %v3457_v7, %v3458_v5  ;;  %v439_v21 = vsel %vm330_vm11, %v3462_v4, %v3463_v23  ;;  %v442_v22 = vsel %vm330_vm11, %v3463_v23, %v3457_v7  ;;  %v440_v24 = vsel %vm330_vm11, %v3458_v5, %v3462_v4 }
 0x229   :  { %v444_v25 = vsel %vm4062_vm5, %v428_v8, %v441_v16  ;;  %v446_v34 = vsel %vm4066_vm6, %v430_v9, %v439_v21  ;;  %v443_v36 = vsel %vm4070_vm8, %v429_v12, %v442_v22  ;;  %v445_v46 = vsel %vm4074_vm9, %v427_v15, %v440_v24 }
 0x22a   :  { %v448_v49 = vmax.f32 %v416_v32, %v444_v25  ;;  %v450_v13 = vmax.f32 %v418_v31, %v446_v34  ;;  %v447_v14 = vmax.f32 %v415_v44, %v443_v36  ;;  %v449_v56 = vmax.f32 %v4030_v28, %v445_v46  ;;  %v3585_v31 = vld [vmem:[%s4877_s3] sm:$0xff]  }
 0x22c   :  { %v452_v39 = vpack.c.bf16 %v448_v49, %v448_v49  ;;  %v454_v63 = vpack.c.bf16 %v450_v13, %v450_v13  ;;  %v451_v0 = vpack.c.bf16 %v447_v14, %v447_v14  ;;  %v453_v27 = vpack.c.bf16 %v449_v56, %v449_v56 }
 0x22e   :  { %3209 = vmatprep.subr.msk.bf16.mxu0 %vm474_vm10, %v452_v39  ;;  %3211 = vmatprep.subr.msk.bf16.mxu1 %vm474_vm10, %v454_v63  ;;  %v476_v19 = vsel %vm474_vm10, %v451_v0, 0  ;;  %v482_v41 = vsel %vm474_vm10, %v453_v27, 0  ;;  %v381_v39 = vld [vmem:[%s4882_s5] sm:$0xf] }
 0x22f   :  { %502 = vmatpush1.bf16.msra.mxu0 %v476_v19  ;;  %545 = vmatpush1.bf16.msra.mxu1 %v482_v41 }
 0x232   :  { %3210 = vmatmul.mubr.msk.bf16.vlgmr.msra.gmra.mxu0 %vm470_vm12, %v3585_v31  ;;  %3212 = vmatmul.mubr.msk.bf16.vlgmr.msra.gmra.mxu1 %vm470_vm12, %v3585_v31  ;;  %v463_v6 = vpop.permute.xlu1 %462  ;;  %v458_v43 = vpop.permute.xlu0 %457 }
 0x233   :  { %626 = vmatprep.mubr.bf16.mxu0 %v3661_v3  ;;  %667 = vmatprep.mubr.bf16.mxu1 %v3661_v3 }
 0x236   :  { %v588_v63 = vpop.permute.xlu1 %587 }
 0x2f2   :  { %v521_v28 = vpop.f32.mrf.mxu0  ;;  %v564_v44 = vpop.f32.mrf.mxu1 }
 0x2f3   :  { %v522_v5 = vadd.f32 %v521_v28, %v458_v43  ;;  %v565_v7 = vadd.f32 %v564_v44, %v458_v43 }
 0x2f4   :  { %v523_v32 = vpop.f32.mrf.mxu0  ;;  %v566_v42 = vpop.f32.mrf.mxu1 }
 0x2f5   :  { %v524_v57 = vadd.f32 %v523_v32, %v458_v43  ;;  %v567_v58 = vadd.f32 %v566_v42, %v458_v43  ;;  %v573_v36 = vmax.f32 %v522_v5, 0.0  ;;  %v575_v46 = vmax.f32 %v565_v7, 0.0  ;;  %v383_v7 = vld [vmem:[%s4883_s7] sm:$0xf] }
 0x2f6   :  { %v525_v45 = vpop.f32.mrf.mxu0  ;;  %v568_v54 = vpop.f32.mrf.mxu1 }
 0x2f7   :  { %v526_v23 = vadd.f32 %v525_v45, %v463_v6  ;;  %v569_v4 = vadd.f32 %v568_v54, %v463_v6  ;;  %v574_v22 = vmax.f32 %v524_v57, 0.0  ;;  %v576_v24 = vmax.f32 %v567_v58, 0.0 }
 0x2f8   :  { %v527_v8 = vpop.f32.mrf.mxu0  ;;  %v570_v9 = vpop.f32.mrf.mxu1 }
 0x2f9   :  { %v528_v12 = vadd.f32 %v527_v8, %v463_v6  ;;  %v571_v15 = vadd.f32 %v570_v9, %v463_v6  ;;  %v577_v16 = vmax.f32 %v526_v23, 0.0  ;;  %v579_v21 = vmax.f32 %v569_v4, 0.0  ;;  %v683_v8 = vpop.permute.xlu0 %682 }
 0x2fb   :  { %v578_v25 = vmax.f32 %v528_v12, 0.0  ;;  %v580_v34 = vmax.f32 %v571_v15, 0.0  ;;  %v581_v14 = vpack.c.bf16 %v577_v16, %v573_v36  ;;  %v583_v56 = vpack.c.bf16 %v579_v21, %v575_v46 }
 0x2fd   :  { %v582_v49 = vpack.c.bf16 %v578_v25, %v574_v22  ;;  %v584_v13 = vpack.c.bf16 %v580_v34, %v576_v24 }
 0x2ff   :  { %608 = vmatprep.subr.bf16.mxu0 %v582_v49  ;;  %649 = vmatprep.subr.bf16.mxu1 %v584_v13 }
 0x300   :  { %609 = vmatpush1.bf16.msra.mxu0 %v581_v14  ;;  %650 = vmatpush1.bf16.msra.mxu1 %v583_v56 }
 0x303   :  { %3213 = vmatmul.mubr.msk.bf16.vlgmr.msra.gmra.mxu0 %vm590_vm13, %v381_v39  ;;  %3214 = vmatmul.mubr.msk.bf16.vlgmr.msra.gmra.mxu1 %vm590_vm13, %v381_v39 }
 0x304   :  { %732 = vmatprep.mubr.bf16.mxu0 %v3661_v3  ;;  %773 = vmatprep.mubr.bf16.mxu1 %v3661_v3 }
 0x3c3   :  { %v628_v0 = vpop.f32.mrf.mxu0  ;;  %v669_v27 = vpop.f32.mrf.mxu1 }
 0x3c4   :  { %v629_v19 = vadd.f32 %v628_v0, %v588_v63  ;;  %v670_v41 = vadd.f32 %v669_v27, %v588_v63 }
 0x3c5   :  { %v630_v31 = vpop.f32.mrf.mxu0  ;;  %v671_v28 = vpop.f32.mrf.mxu1 }
 0x3c6   :  { %v676_v44 = vpack.c.bf16 %v629_v19, %v629_v19  ;;  %v678_v32 = vpack.c.bf16 %v670_v41, %v670_v41  ;;  %v631_v42 = vadd.f32 %v630_v31, %v588_v63  ;;  %v672_v6 = vadd.f32 %v671_v28, %v588_v63 }
 0x3c7   :  { %v632_v43 = vpop.f32.mrf.mxu0  ;;  %v673_v45 = vpop.f32.mrf.mxu1 }
 0x3c8   :  { %v677_v54 = vpack.c.bf16 %v631_v42, %v631_v42  ;;  %v679_v57 = vpack.c.bf16 %v672_v6, %v672_v6  ;;  %v689_v4 = vsel %vm474_vm10, %v676_v44, 0  ;;  %v695_v5 = vsel %vm474_vm10, %v678_v32, 0 }
 0x3c9   :  { %v633_v58 = vpop.f32.mrf.mxu0  ;;  %v674_v23 = vpop.f32.mrf.mxu1 }
 0x3ca   :  { %3215 = vmatprep.subr.msk.bf16.mxu0 %vm474_vm10, %v677_v54  ;;  %3217 = vmatprep.subr.msk.bf16.mxu1 %vm474_vm10, %v679_v57  ;;  %v809_v23 = vpop.permute.xlu1 %808 }
 0x3cb   :  { %715 = vmatpush1.bf16.msra.mxu0 %v689_v4  ;;  %756 = vmatpush1.bf16.msra.mxu1 %v695_v5 }
 0x3ce   :  { %3216 = vmatmul.mubr.msk.bf16.vlgmr.msra.gmra.mxu0 %vm470_vm12, %v383_v7  ;;  %3218 = vmatmul.mubr.msk.bf16.vlgmr.msra.gmra.mxu1 %vm470_vm12, %v383_v7 }
 0x3cf   :  { %976 = vmatprep.mubr.bf16.mxu0 %v3661_v3  ;;  %1019 = vmatprep.mubr.bf16.mxu1 %v3661_v3 }
 0x48e   :  { %v734_v9 = vpop.f32.mrf.mxu0  ;;  %v775_v12 = vpop.f32.mrf.mxu1 }
 0x48f   :  { %v735_v15 = vadd.f32 %v734_v9, %v683_v8  ;;  %v776_v16 = vadd.f32 %v775_v12, %v683_v8  ;;  %v818_v9 = vpop.permute.xlu0 %817 }
 0x490   :  { %v736_v21 = vpop.f32.mrf.mxu0  ;;  %v777_v22 = vpop.f32.mrf.mxu1 }
 0x491   :  { %v782_v24 = vmul.f32 0.5, %v735_v15  ;;  %v784_v25 = vmul.f32 0.5, %v776_v16  ;;  %v737_v34 = vadd.f32 %v736_v21, %v683_v8  ;;  %v778_v36 = vadd.f32 %v777_v22, %v683_v8 }
 0x492   :  { %v738_v46 = vpop.f32.mrf.mxu0  ;;  %v779_v49 = vpop.f32.mrf.mxu1 }
 0x493   :  { %3628 = vtanh.f32 %v782_v24  ;;  %v783_v13 = vmul.f32 0.5, %v737_v34  ;;  %v785_v14 = vmul.f32 0.5, %v778_v36 }
 0x494   :  { %3630 = vtanh.f32 %v784_v25  ;;  %v739_v56 = vpop.f32.mrf.mxu0  ;;  %v780_v39 = vpop.f32.mrf.mxu1 }
 0x495   :  { %3632 = vtanh.f32 %v783_v13 }
 0x496   :  { %3634 = vtanh.f32 %v785_v14 }
 0x4a0   :  { %v3629_v63 = vpop.eup %3628 }
 0x4a1   :  { %v3631_v0 = vpop.eup %3630  ;;  %v790_v27 = vadd.f32 1.0, %v3629_v63 }
 0x4a2   :  { %v3633_v19 = vpop.eup %3632  ;;  %v792_v41 = vadd.f32 1.0, %v3631_v0 }
 0x4a3   :  { %v3635_v31 = vpop.eup %3634  ;;  %v794_v28 = vmul.f32 0.5, %v790_v27  ;;  %v791_v44 = vadd.f32 1.0, %v3633_v19 }
 0x4a4   :  { %v796_v32 = vmul.f32 0.5, %v792_v41  ;;  %v793_v42 = vadd.f32 1.0, %v3635_v31 }
 0x4a5   :  { %v798_v6 = vmul.f32 %v794_v28, %v3969_v37  ;;  %v795_v43 = vmul.f32 0.5, %v791_v44 }
 0x4a6   :  { %v800_v45 = vmul.f32 %v796_v32, %v3973_v38  ;;  %v797_v54 = vmul.f32 0.5, %v793_v42 }
 0x4a7   :  { %v802_v57 = vadd.f32 %v798_v6, %v3969_v37  ;;  %v799_v58 = vmul.f32 %v795_v43, %v3971_v11 }
 0x4a8   :  { %v804_v4 = vadd.f32 %v800_v45, %v3973_v38  ;;  %v801_v5 = vmul.f32 %v797_v54, %v3975_v10 }
 0x4a9   :  { %v811_v7 = vmul.f32 %v809_v23, %v802_v57  ;;  %v803_v8 = vadd.f32 %v799_v58, %v3971_v11 }
 0x4aa   :  { %v813_v12 = vmul.f32 %v809_v23, %v804_v4  ;;  %v805_v15 = vadd.f32 %v801_v5, %v3975_v10 }
 0x4ab   :  { %v820_v16 = vadd.f32 %v818_v9, %v811_v7  ;;  %v812_v21 = vmul.f32 %v809_v23, %v803_v8 }
 0x4ac   :  { %v822_v22 = vadd.f32 %v818_v9, %v813_v12  ;;  %v814_v24 = vmul.f32 %v809_v23, %v805_v15 }
 0x4ad   :  { %v821_v25 = vadd.f32 %v818_v9, %v812_v21  ;;  %v4140_v34 = vmax.f32 %v820_v16, 0.0  ;;  %v3222_v21 = vld [vmem:[%s4876_s4 + $0x18] sm:$0xff] }
 0x4ae   :  { %v823_v37 = vadd.f32 %v818_v9, %v814_v24  ;;  %v4144_v38 = vmax.f32 %v822_v22, 0.0  ;;  %v3221_v22 = vld [vmem:[%s4876_s4 + $0x10] sm:$0xff]  ;;  %v3226_v24 = vld [vmem:[%s4880_s8 + $0x8] sm:$0xff] }
 0x4af   :  { %v4142_v36 = vmax.f32 %v821_v25, 0.0  ;;  %v3224_v25 = vld [vmem:[%s4878_s6 + $0x8] sm:$0xff] }
 0x4b0   :  { %v4146_v46 = vmax.f32 %v823_v37, 0.0  ;;  %v3228_v37 = vld [vmem:[%s4881_s10 + $0x8] sm:$0xff] }
 0x4b1   :  { %v3465_v11 = vpack.i.bf16 %v4142_v36, %v4140_v34 }
 0x4b2   :  { %v3470_v10 = vpack.i.bf16 %v4146_v46, %v4144_v38 }
 0x4b3   :  { %3466 = vrot.lane.b32.xlu1 %v3465_v11, %s3664_s0 }
 0x4b4   :  { %3471 = vrot.lane.b32.xlu0 %v3470_v10, %s3664_s0 }
 0x4b7   :  { %3476 = vrot.lane.b32.xlu1 %v3465_v11, %s3663_s26  ;;  %v3227_v11 = vld [vmem:[%s4879_s9 + $0x8] sm:$0xff] }
 0x4b8   :  { %3481 = vrot.lane.b32.xlu0 %v3470_v10, %s3663_s26 }
 0x525   :  { %v3467_v49 = vpop.permute.xlu1 %3466 }
 0x526   :  { %v3472_v13 = vpop.permute.xlu0 %3471  ;;  %v3469_v14 = vunpack.i.h.bf16 %v3467_v49  ;;  %v3468_v56 = vunpack.i.l.bf16 %v3467_v49 }
 0x527   :  { %v3474_v39 = vunpack.i.h.bf16 %v3472_v13  ;;  %v3473_v63 = vunpack.i.l.bf16 %v3472_v13 }
 0x528   :  { %v856_v31 = vsel %vm182_vm7, %v3468_v56, %v3469_v14 }
 0x529   :  { %v3477_v0 = vpop.permute.xlu1 %3476  ;;  %v854_v32 = vsel %vm182_vm7, %v3473_v63, %v3474_v39  ;;  %v855_v42 = vsel %vm182_vm7, %v3469_v14, %v3473_v63  ;;  %v857_v6 = vsel %vm182_vm7, %v3474_v39, %v3468_v56 }
 0x52a   :  { %v3482_v27 = vpop.permute.xlu0 %3481  ;;  %v3479_v19 = vunpack.i.h.bf16 %v3477_v0  ;;  %v3478_v41 = vunpack.i.l.bf16 %v3477_v0 }
 0x52b   :  { %v3484_v28 = vunpack.i.h.bf16 %v3482_v27  ;;  %v3483_v44 = vunpack.i.l.bf16 %v3482_v27 }
 0x52c   :  { %v868_v43 = vsel %vm165_vm1, %v3478_v41, %v3479_v19 }
 0x52d   :  { %v866_v45 = vsel %vm165_vm1, %v3483_v44, %v3484_v28  ;;  %v867_v54 = vsel %vm165_vm1, %v3479_v19, %v3483_v44  ;;  %v869_v57 = vsel %vm165_vm1, %v3484_v28, %v3478_v41  ;;  %v871_v58 = vsel %vm3997_vm3, %v855_v42, %v868_v43 }
 0x52e   :  { %v873_v23 = vsel %vm3989_vm0, %v857_v6, %v866_v45  ;;  %v872_v4 = vsel %vm4001_vm4, %v854_v32, %v867_v54  ;;  %v870_v5 = vsel %vm3993_vm2, %v856_v31, %v869_v57  ;;  %v875_v7 = vmax.f32 %v4142_v36, %v871_v58 }
 0x52f   :  { %v876_v8 = vmax.f32 %v4144_v38, %v872_v4  ;;  %v877_v9 = vmax.f32 %v4146_v46, %v873_v23  ;;  %v874_v12 = vmax.f32 %v4140_v34, %v870_v5 }
 0x531   :  { %v3490_v15 = vpack.i.bf16 %v877_v9, %v876_v8  ;;  %v3485_v16 = vpack.i.bf16 %v875_v7, %v874_v12 }
 0x533   :  { %3491 = vrot.lane.b32.xlu0 %v3490_v15, %s3667_s17  ;;  %3486 = vrot.lane.b32.xlu1 %v3485_v16, %s3667_s17 }
 0x537   :  { %3501 = vrot.lane.b32.xlu0 %v3490_v15, %s3666_s1  ;;  %3496 = vrot.lane.b32.xlu1 %v3485_v16, %s3666_s1 }
 0x53b   :  { %921 = vperm.xlu0 %3464, %v3222_v21   ;;  %916 = vperm.xlu1 %3423, %v3221_v22  }
 0x53f   :  { %1138 = vperm.xlu0 %3464, %v3226_v24   ;;  %1044 = vperm.xlu1 %3423, %v3224_v25  }
 0x543   :  { %1273 = vperm.xlu0 %3464, %v3228_v37   ;;  %1264 = vperm.xlu1 %3423, %v3227_v11  }
 0x5a5   :  { %v3492_v10 = vpop.permute.xlu0 %3491  ;;  %v3487_v49 = vpop.permute.xlu1 %3486 }
 0x5a6   :  { %v3494_v13 = vunpack.i.h.bf16 %v3492_v10  ;;  %v3493_v14 = vunpack.i.l.bf16 %v3492_v10  ;;  %v3489_v56 = vunpack.i.h.bf16 %v3487_v49  ;;  %v3488_v39 = vunpack.i.l.bf16 %v3487_v49  ;;  %v3586_v49 = vld [vmem:[%s4877_s3 + $0x8] sm:$0xff]  }
 0x5a8   :  { %v886_v28 = vsel %vm351_vm15, %v3493_v14, %v3494_v13  ;;  %v887_v44 = vsel %vm351_vm15, %v3489_v56, %v3493_v14  ;;  %v888_v32 = vsel %vm351_vm15, %v3488_v39, %v3489_v56  ;;  %v889_v42 = vsel %vm351_vm15, %v3494_v13, %v3488_v39 }
 0x5a9   :  { %v3502_v63 = vpop.permute.xlu0 %3501  ;;  %v3497_v0 = vpop.permute.xlu1 %3496 }
 0x5aa   :  { %v3504_v27 = vunpack.i.h.bf16 %v3502_v63  ;;  %v3503_v19 = vunpack.i.l.bf16 %v3502_v63  ;;  %v3499_v41 = vunpack.i.h.bf16 %v3497_v0  ;;  %v3498_v31 = vunpack.i.l.bf16 %v3497_v0 }
 0x5ac   :  { %v898_v6 = vsel %vm330_vm11, %v3503_v19, %v3504_v27  ;;  %v899_v43 = vsel %vm330_vm11, %v3499_v41, %v3503_v19  ;;  %v900_v45 = vsel %vm330_vm11, %v3498_v31, %v3499_v41  ;;  %v901_v54 = vsel %vm330_vm11, %v3504_v27, %v3498_v31 }
 0x5ad   :  { %v905_v57 = vsel %vm4066_vm6, %v889_v42, %v898_v6  ;;  %v903_v58 = vsel %vm4062_vm5, %v887_v44, %v900_v45  ;;  %v902_v23 = vsel %vm4070_vm8, %v888_v32, %v901_v54  ;;  %v904_v4 = vsel %vm4074_vm9, %v886_v28, %v899_v43 }
 0x5ae   :  { %v907_v5 = vmax.f32 %v875_v7, %v903_v58  ;;  %v909_v15 = vmax.f32 %v877_v9, %v905_v57  ;;  %v906_v16 = vmax.f32 %v874_v12, %v902_v23  ;;  %v908_v21 = vmax.f32 %v876_v8, %v904_v4 }
 0x5b0   :  { %v911_v22 = vpack.c.bf16 %v907_v5, %v907_v5  ;;  %v913_v24 = vpack.c.bf16 %v909_v15, %v909_v15  ;;  %v910_v25 = vpack.c.bf16 %v906_v16, %v906_v16  ;;  %v912_v37 = vpack.c.bf16 %v908_v21, %v908_v21 }
 0x5b2   :  { %3230 = vmatprep.subr.msk.bf16.mxu0 %vm474_vm10, %v911_v22  ;;  %3232 = vmatprep.subr.msk.bf16.mxu1 %vm474_vm10, %v913_v24  ;;  %v933_v11 = vsel %vm474_vm10, %v910_v25, 0  ;;  %v939_v10 = vsel %vm474_vm10, %v912_v37, 0  ;;  %v3223_v22 = vld [vmem:[%s4882_s5 + $0x4] sm:$0xf] }
 0x5b3   :  { %959 = vmatpush1.bf16.msra.mxu0 %v933_v11  ;;  %1002 = vmatpush1.bf16.msra.mxu1 %v939_v10 }
 0x5b6   :  { %3231 = vmatmul.mubr.msk.bf16.vlgmr.msra.gmra.mxu0 %vm470_vm12, %v3586_v49  ;;  %3233 = vmatmul.mubr.msk.bf16.vlgmr.msra.gmra.mxu1 %vm470_vm12, %v3586_v49  ;;  %v922_v13 = vpop.permute.xlu0 %921  ;;  %v917_v14 = vpop.permute.xlu1 %916 }
 0x5b7   :  { %1082 = vmatprep.mubr.bf16.mxu0 %v3661_v3  ;;  %1123 = vmatprep.mubr.bf16.mxu1 %v3661_v3 }
 0x5ba   :  { %v1045_v24 = vpop.permute.xlu1 %1044 }
 0x676   :  { %v978_v7 = vpop.f32.mrf.mxu0  ;;  %v1021_v8 = vpop.f32.mrf.mxu1 }
 0x677   :  { %v979_v41 = vadd.f32 %v978_v7, %v917_v14  ;;  %v1022_v31 = vadd.f32 %v1021_v8, %v917_v14 }
 0x678   :  { %v980_v9 = vpop.f32.mrf.mxu0  ;;  %v1023_v12 = vpop.f32.mrf.mxu1 }
 0x679   :  { %v981_v63 = vadd.f32 %v980_v9, %v917_v14  ;;  %v1024_v0 = vadd.f32 %v1023_v12, %v917_v14  ;;  %v1030_v23 = vmax.f32 %v979_v41, 0.0  ;;  %v1032_v4 = vmax.f32 %v1022_v31, 0.0  ;;  %v3225_v31 = vld [vmem:[%s4883_s7 + $0x4] sm:$0xf] }
 0x67a   :  { %v982_v56 = vpop.f32.mrf.mxu0  ;;  %v1025_v39 = vpop.f32.mrf.mxu1 }
 0x67b   :  { %v983_v27 = vadd.f32 %v982_v56, %v922_v13  ;;  %v1026_v19 = vadd.f32 %v1025_v39, %v922_v13  ;;  %v1031_v45 = vmax.f32 %v981_v63, 0.0  ;;  %v1033_v54 = vmax.f32 %v1024_v0, 0.0 }
 0x67c   :  { %v984_v28 = vpop.f32.mrf.mxu0  ;;  %v1027_v44 = vpop.f32.mrf.mxu1 }
 0x67d   :  { %v985_v32 = vadd.f32 %v984_v28, %v922_v13  ;;  %v1028_v42 = vadd.f32 %v1027_v44, %v922_v13  ;;  %v1034_v6 = vmax.f32 %v983_v27, 0.0  ;;  %v1036_v43 = vmax.f32 %v1026_v19, 0.0  ;;  %v1139_v28 = vpop.permute.xlu0 %1138 }
 0x67f   :  { %v1035_v57 = vmax.f32 %v985_v32, 0.0  ;;  %v1037_v58 = vmax.f32 %v1028_v42, 0.0  ;;  %v1038_v16 = vpack.c.bf16 %v1034_v6, %v1030_v23  ;;  %v1040_v21 = vpack.c.bf16 %v1036_v43, %v1032_v4 }
 0x681   :  { %v1039_v5 = vpack.c.bf16 %v1035_v57, %v1031_v45  ;;  %v1041_v15 = vpack.c.bf16 %v1037_v58, %v1033_v54 }
 0x683   :  { %1064 = vmatprep.subr.bf16.mxu0 %v1039_v5  ;;  %1105 = vmatprep.subr.bf16.mxu1 %v1041_v15 }
 0x684   :  { %1065 = vmatpush1.bf16.msra.mxu0 %v1038_v16  ;;  %1106 = vmatpush1.bf16.msra.mxu1 %v1040_v21 }
 0x687   :  { %3234 = vmatmul.mubr.msk.bf16.vlgmr.msra.gmra.mxu0 %vm590_vm13, %v3223_v22  ;;  %3235 = vmatmul.mubr.msk.bf16.vlgmr.msra.gmra.mxu1 %vm590_vm13, %v3223_v22 }
 0x688   :  { %1188 = vmatprep.mubr.bf16.mxu0 %v3661_v3  ;;  %1229 = vmatprep.mubr.bf16.mxu1 %v3661_v3 }
 0x747   :  { %v1084_v25 = vpop.f32.mrf.mxu0  ;;  %v1125_v37 = vpop.f32.mrf.mxu1 }
 0x748   :  { %v1085_v11 = vadd.f32 %v1084_v25, %v1045_v24  ;;  %v1126_v10 = vadd.f32 %v1125_v37, %v1045_v24 }
 0x749   :  { %v1086_v49 = vpop.f32.mrf.mxu0  ;;  %v1127_v7 = vpop.f32.mrf.mxu1 }
 0x74a   :  { %v1132_v8 = vpack.c.bf16 %v1085_v11, %v1085_v11  ;;  %v1134_v9 = vpack.c.bf16 %v1126_v10, %v1126_v10  ;;  %v1087_v12 = vadd.f32 %v1086_v49, %v1045_v24  ;;  %v1128_v13 = vadd.f32 %v1127_v7, %v1045_v24 }
 0x74b   :  { %v1088_v14 = vpop.f32.mrf.mxu0  ;;  %v1129_v56 = vpop.f32.mrf.mxu1 }
 0x74c   :  { %v1133_v39 = vpack.c.bf16 %v1087_v12, %v1087_v12  ;;  %v1135_v63 = vpack.c.bf16 %v1128_v13, %v1128_v13  ;;  %v1145_v19 = vsel %vm474_vm10, %v1132_v8, 0  ;;  %v1151_v41 = vsel %vm474_vm10, %v1134_v9, 0 }
 0x74d   :  { %v1089_v0 = vpop.f32.mrf.mxu0  ;;  %v1130_v27 = vpop.f32.mrf.mxu1 }
 0x74e   :  { %3236 = vmatprep.subr.msk.bf16.mxu0 %vm474_vm10, %v1133_v39  ;;  %3238 = vmatprep.subr.msk.bf16.mxu1 %vm474_vm10, %v1135_v63  ;;  %v1265_v27 = vpop.permute.xlu1 %1264 }
 0x74f   :  { %1171 = vmatpush1.bf16.msra.mxu0 %v1145_v19  ;;  %1212 = vmatpush1.bf16.msra.mxu1 %v1151_v41 }
 0x752   :  { %3237 = vmatmul.mubr.msk.bf16.vlgmr.msra.gmra.mxu0 %vm470_vm12, %v3225_v31  ;;  %3239 = vmatmul.mubr.msk.bf16.vlgmr.msra.gmra.mxu1 %vm470_vm12, %v3225_v31 }
 0x753   :  { %1432 = vmatprep.mubr.bf16.mxu0 %v3661_v3  ;;  %1475 = vmatprep.mubr.bf16.mxu1 %v3661_v3 }
 0x812   :  { %v1190_v44 = vpop.f32.mrf.mxu0  ;;  %v1231_v32 = vpop.f32.mrf.mxu1 }
 0x813   :  { %v1191_v42 = vadd.f32 %v1190_v44, %v1139_v28  ;;  %v1232_v6 = vadd.f32 %v1231_v32, %v1139_v28  ;;  %v1274_v44 = vpop.permute.xlu0 %1273 }
 0x814   :  { %v1192_v43 = vpop.f32.mrf.mxu0  ;;  %v1233_v45 = vpop.f32.mrf.mxu1 }
 0x815   :  { %v1238_v54 = vmul.f32 0.5, %v1191_v42  ;;  %v1240_v57 = vmul.f32 0.5, %v1232_v6  ;;  %v1193_v58 = vadd.f32 %v1192_v43, %v1139_v28  ;;  %v1234_v23 = vadd.f32 %v1233_v45, %v1139_v28 }
 0x816   :  { %v1194_v4 = vpop.f32.mrf.mxu0  ;;  %v1235_v5 = vpop.f32.mrf.mxu1 }
 0x817   :  { %3636 = vtanh.f32 %v1238_v54  ;;  %v1239_v15 = vmul.f32 0.5, %v1193_v58  ;;  %v1241_v16 = vmul.f32 0.5, %v1234_v23 }
 0x818   :  { %3638 = vtanh.f32 %v1240_v57  ;;  %v1195_v21 = vpop.f32.mrf.mxu0  ;;  %v1236_v22 = vpop.f32.mrf.mxu1 }
 0x819   :  { %3640 = vtanh.f32 %v1239_v15 }
 0x81a   :  { %3642 = vtanh.f32 %v1241_v16 }
 0x824   :  { %v3637_v24 = vpop.eup %3636 }
 0x825   :  { %v3639_v25 = vpop.eup %3638  ;;  %v1246_v37 = vadd.f32 1.0, %v3637_v24 }
 0x826   :  { %v3641_v11 = vpop.eup %3640  ;;  %v1248_v10 = vadd.f32 1.0, %v3639_v25 }
 0x827   :  { %v3643_v49 = vpop.eup %3642  ;;  %v1250_v7 = vmul.f32 0.5, %v1246_v37  ;;  %v1247_v8 = vadd.f32 1.0, %v3641_v11 }
 0x828   :  { %v1252_v9 = vmul.f32 0.5, %v1248_v10  ;;  %v1249_v12 = vadd.f32 1.0, %v3643_v49 }
 0x829   :  { %v1254_v13 = vmul.f32 %v1250_v7, %v4140_v34  ;;  %v1251_v14 = vmul.f32 0.5, %v1247_v8 }
 0x82a   :  { %v1256_v56 = vmul.f32 %v1252_v9, %v4144_v38  ;;  %v1253_v39 = vmul.f32 0.5, %v1249_v12 }
 0x82b   :  { %v1258_v63 = vadd.f32 %v1254_v13, %v4140_v34  ;;  %v1255_v0 = vmul.f32 %v1251_v14, %v4142_v36 }
 0x82c   :  { %v1260_v19 = vadd.f32 %v1256_v56, %v4144_v38  ;;  %v1257_v41 = vmul.f32 %v1253_v39, %v4146_v46 }
 0x82d   :  { %v1267_v31 = vmul.f32 %v1265_v27, %v1258_v63  ;;  %v1259_v28 = vadd.f32 %v1255_v0, %v4142_v36 }
 0x82e   :  { %v1269_v32 = vmul.f32 %v1265_v27, %v1260_v19  ;;  %v1261_v42 = vadd.f32 %v1257_v41, %v4146_v46 }
 0x82f   :  { %v1276_v6 = vadd.f32 %v1274_v44, %v1267_v31  ;;  %v1268_v43 = vmul.f32 %v1265_v27, %v1259_v28 }
 0x830   :  { %v1278_v45 = vadd.f32 %v1274_v44, %v1269_v32  ;;  %v1270_v54 = vmul.f32 %v1265_v27, %v1261_v42 }
 0x831   :  { %v1277_v57 = vadd.f32 %v1274_v44, %v1268_v43  ;;  %v4267_v58 = vmax.f32 %v1276_v6, 0.0  ;;  %v3243_v43 = vld [vmem:[%s4876_s4 + $0x28] sm:$0xff] }
 0x832   :  { %v1279_v34 = vadd.f32 %v1274_v44, %v1270_v54  ;;  %v4271_v38 = vmax.f32 %v1278_v45, 0.0  ;;  %v3242_v45 = vld [vmem:[%s4876_s4 + $0x20] sm:$0xff]  ;;  %v3247_v54 = vld [vmem:[%s4880_s8 + $0x10] sm:$0xff] }
 0x833   :  { %v4269_v23 = vmax.f32 %v1277_v57, 0.0  ;;  %v3245_v57 = vld [vmem:[%s4878_s6 + $0x10] sm:$0xff] }
 0x834   :  { %v4273_v4 = vmax.f32 %v1279_v34, 0.0  ;;  %v3249_v34 = vld [vmem:[%s4881_s10 + $0x10] sm:$0xff] }
 0x835   :  { %v3505_v36 = vpack.i.bf16 %v4269_v23, %v4267_v58 }
 0x836   :  { %v3510_v46 = vpack.i.bf16 %v4273_v4, %v4271_v38 }
 0x837   :  { %3506 = vrot.lane.b32.xlu1 %v3505_v36, %s3664_s0 }
 0x838   :  { %3511 = vrot.lane.b32.xlu0 %v3510_v46, %s3664_s0 }
 0x83b   :  { %3516 = vrot.lane.b32.xlu1 %v3505_v36, %s3663_s26  ;;  %v3248_v36 = vld [vmem:[%s4879_s9 + $0x10] sm:$0xff] }
 0x83c   :  { %3521 = vrot.lane.b32.xlu0 %v3510_v46, %s3663_s26 }
 0x8a9   :  { %v3507_v5 = vpop.permute.xlu1 %3506 }
 0x8aa   :  { %v3512_v15 = vpop.permute.xlu0 %3511  ;;  %v3509_v16 = vunpack.i.h.bf16 %v3507_v5  ;;  %v3508_v21 = vunpack.i.l.bf16 %v3507_v5 }
 0x8ab   :  { %v3514_v22 = vunpack.i.h.bf16 %v3512_v15  ;;  %v3513_v24 = vunpack.i.l.bf16 %v3512_v15 }
 0x8ac   :  { %v1312_v49 = vsel %vm182_vm7, %v3508_v21, %v3509_v16 }
 0x8ad   :  { %v3517_v25 = vpop.permute.xlu1 %3516  ;;  %v1310_v9 = vsel %vm182_vm7, %v3513_v24, %v3514_v22  ;;  %v1311_v12 = vsel %vm182_vm7, %v3509_v16, %v3513_v24  ;;  %v1313_v13 = vsel %vm182_vm7, %v3514_v22, %v3508_v21 }
 0x8ae   :  { %v3522_v37 = vpop.permute.xlu0 %3521  ;;  %v3519_v11 = vunpack.i.h.bf16 %v3517_v25  ;;  %v3518_v10 = vunpack.i.l.bf16 %v3517_v25 }
 0x8af   :  { %v3524_v7 = vunpack.i.h.bf16 %v3522_v37  ;;  %v3523_v8 = vunpack.i.l.bf16 %v3522_v37 }
 0x8b0   :  { %v1324_v14 = vsel %vm165_vm1, %v3518_v10, %v3519_v11 }
 0x8b1   :  { %v1322_v56 = vsel %vm165_vm1, %v3523_v8, %v3524_v7  ;;  %v1323_v39 = vsel %vm165_vm1, %v3519_v11, %v3523_v8  ;;  %v1325_v63 = vsel %vm165_vm1, %v3524_v7, %v3518_v10  ;;  %v1327_v0 = vsel %vm3997_vm3, %v1311_v12, %v1324_v14 }
 0x8b2   :  { %v1329_v27 = vsel %vm3989_vm0, %v1313_v13, %v1322_v56  ;;  %v1328_v19 = vsel %vm4001_vm4, %v1310_v9, %v1323_v39  ;;  %v1326_v41 = vsel %vm3993_vm2, %v1312_v49, %v1325_v63  ;;  %v1331_v31 = vmax.f32 %v4269_v23, %v1327_v0 }
 0x8b3   :  { %v1332_v28 = vmax.f32 %v4271_v38, %v1328_v19  ;;  %v1333_v44 = vmax.f32 %v4273_v4, %v1329_v27  ;;  %v1330_v32 = vmax.f32 %v4267_v58, %v1326_v41 }
 0x8b5   :  { %v3530_v42 = vpack.i.bf16 %v1333_v44, %v1332_v28  ;;  %v3525_v6 = vpack.i.bf16 %v1331_v31, %v1330_v32 }
 0x8b7   :  { %3531 = vrot.lane.b32.xlu0 %v3530_v42, %s3667_s17  ;;  %3526 = vrot.lane.b32.xlu1 %v3525_v6, %s3667_s17 }
 0x8bb   :  { %3541 = vrot.lane.b32.xlu0 %v3530_v42, %s3666_s1  ;;  %3536 = vrot.lane.b32.xlu1 %v3525_v6, %s3666_s1 }
 0x8bf   :  { %1377 = vperm.xlu0 %3464, %v3243_v43   ;;  %1372 = vperm.xlu1 %3423, %v3242_v45  }
 0x8c3   :  { %1594 = vperm.xlu0 %3464, %v3247_v54   ;;  %1500 = vperm.xlu1 %3423, %v3245_v57  }
 0x8c7   :  { %1729 = vperm.xlu0 %3464, %v3249_v34   ;;  %1720 = vperm.xlu1 %3423, %v3248_v36  }
 0x929   :  { %v3532_v46 = vpop.permute.xlu0 %3531  ;;  %v3527_v5 = vpop.permute.xlu1 %3526 }
 0x92a   :  { %v3534_v15 = vunpack.i.h.bf16 %v3532_v46  ;;  %v3533_v16 = vunpack.i.l.bf16 %v3532_v46  ;;  %v3529_v21 = vunpack.i.h.bf16 %v3527_v5  ;;  %v3528_v22 = vunpack.i.l.bf16 %v3527_v5  ;;  %v3587_v5 = vld [vmem:[%s4877_s3 + $0x10] sm:$0xff]  }
 0x92c   :  { %v1342_v7 = vsel %vm351_vm15, %v3533_v16, %v3534_v15  ;;  %v1343_v8 = vsel %vm351_vm15, %v3529_v21, %v3533_v16  ;;  %v1344_v9 = vsel %vm351_vm15, %v3528_v22, %v3529_v21  ;;  %v1345_v12 = vsel %vm351_vm15, %v3534_v15, %v3528_v22 }
 0x92d   :  { %v3542_v24 = vpop.permute.xlu0 %3541  ;;  %v3537_v25 = vpop.permute.xlu1 %3536 }
 0x92e   :  { %v3544_v37 = vunpack.i.h.bf16 %v3542_v24  ;;  %v3543_v11 = vunpack.i.l.bf16 %v3542_v24  ;;  %v3539_v10 = vunpack.i.h.bf16 %v3537_v25  ;;  %v3538_v49 = vunpack.i.l.bf16 %v3537_v25 }
 0x930   :  { %v1354_v13 = vsel %vm330_vm11, %v3543_v11, %v3544_v37  ;;  %v1355_v14 = vsel %vm330_vm11, %v3539_v10, %v3543_v11  ;;  %v1356_v56 = vsel %vm330_vm11, %v3538_v49, %v3539_v10  ;;  %v1357_v39 = vsel %vm330_vm11, %v3544_v37, %v3538_v49 }
 0x931   :  { %v1361_v63 = vsel %vm4066_vm6, %v1345_v12, %v1354_v13  ;;  %v1359_v0 = vsel %vm4062_vm5, %v1343_v8, %v1356_v56  ;;  %v1358_v27 = vsel %vm4070_vm8, %v1344_v9, %v1357_v39  ;;  %v1360_v19 = vsel %vm4074_vm9, %v1342_v7, %v1355_v14 }
 0x932   :  { %v1363_v41 = vmax.f32 %v1331_v31, %v1359_v0  ;;  %v1365_v42 = vmax.f32 %v1333_v44, %v1361_v63  ;;  %v1362_v6 = vmax.f32 %v1330_v32, %v1358_v27  ;;  %v1364_v43 = vmax.f32 %v1332_v28, %v1360_v19 }
 0x934   :  { %v1367_v45 = vpack.c.bf16 %v1363_v41, %v1363_v41  ;;  %v1369_v54 = vpack.c.bf16 %v1365_v42, %v1365_v42  ;;  %v1366_v57 = vpack.c.bf16 %v1362_v6, %v1362_v6  ;;  %v1368_v34 = vpack.c.bf16 %v1364_v43, %v1364_v43 }
 0x936   :  { %3251 = vmatprep.subr.msk.bf16.mxu0 %vm474_vm10, %v1367_v45  ;;  %3253 = vmatprep.subr.msk.bf16.mxu1 %vm474_vm10, %v1369_v54  ;;  %v1389_v36 = vsel %vm474_vm10, %v1366_v57, 0  ;;  %v1395_v46 = vsel %vm474_vm10, %v1368_v34, 0  ;;  %v3244_v45 = vld [vmem:[%s4882_s5 + $0x8] sm:$0xf] }
 0x937   :  { %1415 = vmatpush1.bf16.msra.mxu0 %v1389_v36  ;;  %1458 = vmatpush1.bf16.msra.mxu1 %v1395_v46 }
 0x93a   :  { %3252 = vmatmul.mubr.msk.bf16.vlgmr.msra.gmra.mxu0 %vm470_vm12, %v3587_v5  ;;  %3254 = vmatmul.mubr.msk.bf16.vlgmr.msra.gmra.mxu1 %vm470_vm12, %v3587_v5  ;;  %v1378_v15 = vpop.permute.xlu0 %1377  ;;  %v1373_v16 = vpop.permute.xlu1 %1372 }
 0x93b   :  { %1538 = vmatprep.mubr.bf16.mxu0 %v3661_v3  ;;  %1579 = vmatprep.mubr.bf16.mxu1 %v3661_v3 }
 0x93e   :  { %v1501_v54 = vpop.permute.xlu1 %1500 }
 0x9fa   :  { %v1434_v31 = vpop.f32.mrf.mxu0  ;;  %v1477_v28 = vpop.f32.mrf.mxu1 }
 0x9fb   :  { %v1435_v10 = vadd.f32 %v1434_v31, %v1373_v16  ;;  %v1478_v49 = vadd.f32 %v1477_v28, %v1373_v16 }
 0x9fc   :  { %v1436_v44 = vpop.f32.mrf.mxu0  ;;  %v1479_v32 = vpop.f32.mrf.mxu1 }
 0x9fd   :  { %v1437_v24 = vadd.f32 %v1436_v44, %v1373_v16  ;;  %v1480_v25 = vadd.f32 %v1479_v32, %v1373_v16  ;;  %v1486_v27 = vmax.f32 %v1435_v10, 0.0  ;;  %v1488_v19 = vmax.f32 %v1478_v49, 0.0  ;;  %v3246_v49 = vld [vmem:[%s4883_s7 + $0x8] sm:$0xf] }
 0x9fe   :  { %v1438_v21 = vpop.f32.mrf.mxu0  ;;  %v1481_v22 = vpop.f32.mrf.mxu1 }
 0x9ff   :  { %v1439_v37 = vadd.f32 %v1438_v21, %v1378_v15  ;;  %v1482_v11 = vadd.f32 %v1481_v22, %v1378_v15  ;;  %v1487_v56 = vmax.f32 %v1437_v24, 0.0  ;;  %v1489_v39 = vmax.f32 %v1480_v25, 0.0 }
 0xa00   :  { %v1440_v7 = vpop.f32.mrf.mxu0  ;;  %v1483_v8 = vpop.f32.mrf.mxu1 }
 0xa01   :  { %v1441_v9 = vadd.f32 %v1440_v7, %v1378_v15  ;;  %v1484_v12 = vadd.f32 %v1483_v8, %v1378_v15  ;;  %v1490_v13 = vmax.f32 %v1439_v37, 0.0  ;;  %v1492_v14 = vmax.f32 %v1482_v11, 0.0  ;;  %v1595_v7 = vpop.permute.xlu0 %1594 }
 0xa03   :  { %v1491_v63 = vmax.f32 %v1441_v9, 0.0  ;;  %v1493_v0 = vmax.f32 %v1484_v12, 0.0  ;;  %v1494_v6 = vpack.c.bf16 %v1490_v13, %v1486_v27  ;;  %v1496_v43 = vpack.c.bf16 %v1492_v14, %v1488_v19 }
 0xa05   :  { %v1495_v41 = vpack.c.bf16 %v1491_v63, %v1487_v56  ;;  %v1497_v42 = vpack.c.bf16 %v1493_v0, %v1489_v39 }
 0xa07   :  { %1520 = vmatprep.subr.bf16.mxu0 %v1495_v41  ;;  %1561 = vmatprep.subr.bf16.mxu1 %v1497_v42 }
 0xa08   :  { %1521 = vmatpush1.bf16.msra.mxu0 %v1494_v6  ;;  %1562 = vmatpush1.bf16.msra.mxu1 %v1496_v43 }
 0xa0b   :  { %3255 = vmatmul.mubr.msk.bf16.vlgmr.msra.gmra.mxu0 %vm590_vm13, %v3244_v45  ;;  %3256 = vmatmul.mubr.msk.bf16.vlgmr.msra.gmra.mxu1 %vm590_vm13, %v3244_v45 }
 0xa0c   :  { %1644 = vmatprep.mubr.bf16.mxu0 %v3661_v3  ;;  %1685 = vmatprep.mubr.bf16.mxu1 %v3661_v3 }
 0xacb   :  { %v1540_v57 = vpop.f32.mrf.mxu0  ;;  %v1581_v34 = vpop.f32.mrf.mxu1 }
 0xacc   :  { %v1541_v36 = vadd.f32 %v1540_v57, %v1501_v54  ;;  %v1582_v46 = vadd.f32 %v1581_v34, %v1501_v54 }
 0xacd   :  { %v1542_v5 = vpop.f32.mrf.mxu0  ;;  %v1583_v31 = vpop.f32.mrf.mxu1 }
 0xace   :  { %v1588_v28 = vpack.c.bf16 %v1541_v36, %v1541_v36  ;;  %v1590_v44 = vpack.c.bf16 %v1582_v46, %v1582_v46  ;;  %v1543_v32 = vadd.f32 %v1542_v5, %v1501_v54  ;;  %v1584_v15 = vadd.f32 %v1583_v31, %v1501_v54 }
 0xacf   :  { %v1544_v16 = vpop.f32.mrf.mxu0  ;;  %v1585_v21 = vpop.f32.mrf.mxu1 }
 0xad0   :  { %v1589_v22 = vpack.c.bf16 %v1543_v32, %v1543_v32  ;;  %v1591_v24 = vpack.c.bf16 %v1584_v15, %v1584_v15  ;;  %v1601_v11 = vsel %vm474_vm10, %v1588_v28, 0  ;;  %v1607_v10 = vsel %vm474_vm10, %v1590_v44, 0 }
 0xad1   :  { %v1545_v25 = vpop.f32.mrf.mxu0  ;;  %v1586_v37 = vpop.f32.mrf.mxu1 }
 0xad2   :  { %3257 = vmatprep.subr.msk.bf16.mxu0 %vm474_vm10, %v1589_v22  ;;  %3259 = vmatprep.subr.msk.bf16.mxu1 %vm474_vm10, %v1591_v24  ;;  %v1721_v37 = vpop.permute.xlu1 %1720 }
 0xad3   :  { %1627 = vmatpush1.bf16.msra.mxu0 %v1601_v11  ;;  %1668 = vmatpush1.bf16.msra.mxu1 %v1607_v10 }
 0xad6   :  { %3258 = vmatmul.mubr.msk.bf16.vlgmr.msra.gmra.mxu0 %vm470_vm12, %v3246_v49  ;;  %3260 = vmatmul.mubr.msk.bf16.vlgmr.msra.gmra.mxu1 %vm470_vm12, %v3246_v49 }
 0xad7   :  { %1888 = vmatprep.mubr.bf16.mxu0 %v3661_v3  ;;  %1931 = vmatprep.mubr.bf16.mxu1 %v3661_v3 }
 0xb96   :  { %v1646_v8 = vpop.f32.mrf.mxu0  ;;  %v1687_v9 = vpop.f32.mrf.mxu1 }
 0xb97   :  { %v1647_v12 = vadd.f32 %v1646_v8, %v1595_v7  ;;  %v1688_v13 = vadd.f32 %v1687_v9, %v1595_v7  ;;  %v1730_v8 = vpop.permute.xlu0 %1729 }
 0xb98   :  { %v1648_v14 = vpop.f32.mrf.mxu0  ;;  %v1689_v56 = vpop.f32.mrf.mxu1 }
 0xb99   :  { %v1694_v39 = vmul.f32 0.5, %v1647_v12  ;;  %v1696_v63 = vmul.f32 0.5, %v1688_v13  ;;  %v1649_v0 = vadd.f32 %v1648_v14, %v1595_v7  ;;  %v1690_v27 = vadd.f32 %v1689_v56, %v1595_v7 }
 0xb9a   :  { %v1650_v19 = vpop.f32.mrf.mxu0  ;;  %v1691_v41 = vpop.f32.mrf.mxu1 }
 0xb9b   :  { %3644 = vtanh.f32 %v1694_v39  ;;  %v1695_v42 = vmul.f32 0.5, %v1649_v0  ;;  %v1697_v6 = vmul.f32 0.5, %v1690_v27 }
 0xb9c   :  { %3646 = vtanh.f32 %v1696_v63  ;;  %v1651_v43 = vpop.f32.mrf.mxu0  ;;  %v1692_v45 = vpop.f32.mrf.mxu1 }
 0xb9d   :  { %3648 = vtanh.f32 %v1695_v42 }
 0xb9e   :  { %3650 = vtanh.f32 %v1697_v6 }
 0xba8   :  { %v3645_v54 = vpop.eup %3644 }
 0xba9   :  { %v3647_v57 = vpop.eup %3646  ;;  %v1702_v34 = vadd.f32 1.0, %v3645_v54 }
 0xbaa   :  { %v3649_v36 = vpop.eup %3648  ;;  %v1704_v46 = vadd.f32 1.0, %v3647_v57 }
 0xbab   :  { %v3651_v5 = vpop.eup %3650  ;;  %v1706_v31 = vmul.f32 0.5, %v1702_v34  ;;  %v1703_v28 = vadd.f32 1.0, %v3649_v36 }
 0xbac   :  { %v1708_v44 = vmul.f32 0.5, %v1704_v46  ;;  %v1705_v32 = vadd.f32 1.0, %v3651_v5 }
 0xbad   :  { %v1710_v15 = vmul.f32 %v1706_v31, %v4267_v58  ;;  %v1707_v16 = vmul.f32 0.5, %v1703_v28 }
 0xbae   :  { %v1712_v21 = vmul.f32 %v1708_v44, %v4271_v38  ;;  %v1709_v22 = vmul.f32 0.5, %v1705_v32 }
 0xbaf   :  { %v1714_v24 = vadd.f32 %v1710_v15, %v4267_v58  ;;  %v1711_v25 = vmul.f32 %v1707_v16, %v4269_v23 }
 0xbb0   :  { %v1716_v11 = vadd.f32 %v1712_v21, %v4271_v38  ;;  %v1713_v10 = vmul.f32 %v1709_v22, %v4273_v4 }
 0xbb1   :  { %v1723_v49 = vmul.f32 %v1721_v37, %v1714_v24  ;;  %v1715_v7 = vadd.f32 %v1711_v25, %v4269_v23 }
 0xbb2   :  { %v1725_v9 = vmul.f32 %v1721_v37, %v1716_v11  ;;  %v1717_v12 = vadd.f32 %v1713_v10, %v4273_v4 }
 0xbb3   :  { %v1732_v13 = vadd.f32 %v1730_v8, %v1723_v49  ;;  %v1724_v14 = vmul.f32 %v1721_v37, %v1715_v7 }
 0xbb4   :  { %v1734_v56 = vadd.f32 %v1730_v8, %v1725_v9  ;;  %v1726_v39 = vmul.f32 %v1721_v37, %v1717_v12 }
 0xbb5   :  { %v1733_v63 = vadd.f32 %v1730_v8, %v1724_v14  ;;  %v4394_v0 = vmax.f32 %v1732_v13, 0.0  ;;  %v3266_v13 = vld [vmem:[%s4878_s6 + $0x18] sm:$0xff] }
 0xbb6   :  { %v1735_v58 = vadd.f32 %v1730_v8, %v1726_v39  ;;  %v4398_v38 = vmax.f32 %v1734_v56, 0.0  ;;  %v3270_v14 = vld [vmem:[%s4881_s10 + $0x18] sm:$0xff] }
 0xbb7   :  { %v4396_v27 = vmax.f32 %v1733_v63, 0.0  ;;  %v3269_v56 = vld [vmem:[%s4879_s9 + $0x18] sm:$0xff] }
 0xbb8   :  { %v4400_v19 = vmax.f32 %v1735_v58, 0.0 }
 0xbb9   :  { %v3545_v23 = vpack.i.bf16 %v4396_v27, %v4394_v0 }
 0xbba   :  { %v3550_v4 = vpack.i.bf16 %v4400_v19, %v4398_v38 }
 0xbbb   :  { %3546 = vrot.lane.b32.xlu1 %v3545_v23, %s3664_s0 }
 0xbbc   :  { %3551 = vrot.lane.b32.xlu0 %v3550_v4, %s3664_s0 }
 0xbbf   :  { %3556 = vrot.lane.b32.xlu1 %v3545_v23, %s3663_s26 }
 0xbc0   :  { %3561 = vrot.lane.b32.xlu0 %v3550_v4, %s3663_s26 }
 0xc2d   :  { %v3547_v41 = vpop.permute.xlu1 %3546 }
 0xc2e   :  { %v3552_v42 = vpop.permute.xlu0 %3551  ;;  %v3549_v6 = vunpack.i.h.bf16 %v3547_v41  ;;  %v3548_v43 = vunpack.i.l.bf16 %v3547_v41 }
 0xc2f   :  { %v3554_v45 = vunpack.i.h.bf16 %v3552_v42  ;;  %v3553_v54 = vunpack.i.l.bf16 %v3552_v42 }
 0xc30   :  { %v1768_v5 = vsel %vm182_vm7, %v3548_v43, %v3549_v6 }
 0xc31   :  { %v3557_v57 = vpop.permute.xlu1 %3556  ;;  %v1766_v44 = vsel %vm182_vm7, %v3553_v54, %v3554_v45  ;;  %v1767_v32 = vsel %vm182_vm7, %v3549_v6, %v3553_v54  ;;  %v1769_v15 = vsel %vm182_vm7, %v3554_v45, %v3548_v43 }
 0xc32   :  { %v3562_v34 = vpop.permute.xlu0 %3561  ;;  %v3559_v36 = vunpack.i.h.bf16 %v3557_v57  ;;  %v3558_v46 = vunpack.i.l.bf16 %v3557_v57 }
 0xc33   :  { %v3564_v31 = vunpack.i.h.bf16 %v3562_v34  ;;  %v3563_v28 = vunpack.i.l.bf16 %v3562_v34 }
 0xc34   :  { %v1780_v16 = vsel %vm165_vm1, %v3558_v46, %v3559_v36 }
 0xc35   :  { %v1778_v21 = vsel %vm165_vm1, %v3563_v28, %v3564_v31  ;;  %v1779_v22 = vsel %vm165_vm1, %v3559_v36, %v3563_v28  ;;  %v1781_v24 = vsel %vm165_vm1, %v3564_v31, %v3558_v46  ;;  %v1783_v25 = vsel %vm3997_vm3, %v1767_v32, %v1780_v16 }
 0xc36   :  { %v1785_v37 = vsel %vm3989_vm0, %v1769_v15, %v1778_v21  ;;  %v1784_v11 = vsel %vm4001_vm4, %v1766_v44, %v1779_v22  ;;  %v1782_v10 = vsel %vm3993_vm2, %v1768_v5, %v1781_v24  ;;  %v1787_v49 = vmax.f32 %v4396_v27, %v1783_v25 }
 0xc37   :  { %v1788_v7 = vmax.f32 %v4398_v38, %v1784_v11  ;;  %v1789_v8 = vmax.f32 %v4400_v19, %v1785_v37  ;;  %v1786_v9 = vmax.f32 %v4394_v0, %v1782_v10  ;;  %vm3190_vm0 = vcmask 9216  }
 0xc39   :  { %v3570_v12 = vpack.i.bf16 %v1789_v8, %v1788_v7  ;;  %v3565_v52 = vpack.i.bf16 %v1787_v49, %v1786_v9 }
 0xc3b   :  { %3571 = vrot.lane.b32.xlu0 %v3570_v12, %s3667_s17  ;;  %3566 = vrot.lane.b32.xlu1 %v3565_v52, %s3667_s17 }
 0xc3f   :  { %3581 = vrot.lane.b32.xlu0 %v3570_v12, %s3666_s1  ;;  %3576 = vrot.lane.b32.xlu1 %v3565_v52, %s3666_s1 }
 0xc43   :  { %1833 = vperm.xlu0 %3464, %v3264_v26   ;;  %1828 = vperm.xlu1 %3423, %v3263_v50  }
 0xc47   :  { %2050 = vperm.xlu0 %3464, %v3268_v53   ;;  %1956 = vperm.xlu1 %3423, %v3266_v13  }
 0xc4b   :  { %2185 = vperm.xlu0 %3464, %v3270_v14   ;;  %2176 = vperm.xlu1 %3423, %v3269_v56  }
 0xcad   :  { %v3572_v39 = vpop.permute.xlu0 %3571  ;;  %v3567_v63 = vpop.permute.xlu1 %3566 }
 0xcae   :  { %v3574_v58 = vunpack.i.h.bf16 %v3572_v39  ;;  %v3573_v23 = vunpack.i.l.bf16 %v3572_v39  ;;  %v3569_v4 = vunpack.i.h.bf16 %v3567_v63  ;;  %v3568_v41 = vunpack.i.l.bf16 %v3567_v63 }
 0xcb0   :  { %v1798_v34 = vsel %vm351_vm15, %v3573_v23, %v3574_v58  ;;  %v1799_v36 = vsel %vm351_vm15, %v3569_v4, %v3573_v23  ;;  %v1800_v46 = vsel %vm351_vm15, %v3568_v41, %v3569_v4  ;;  %v1801_v5 = vsel %vm351_vm15, %v3574_v58, %v3568_v41 }
 0xcb1   :  { %v3582_v42 = vpop.permute.xlu0 %3581  ;;  %v3577_v6 = vpop.permute.xlu1 %3576 }
 0xcb2   :  { %v3584_v43 = vunpack.i.h.bf16 %v3582_v42  ;;  %v3583_v45 = vunpack.i.l.bf16 %v3582_v42  ;;  %v3579_v54 = vunpack.i.h.bf16 %v3577_v6  ;;  %v3578_v57 = vunpack.i.l.bf16 %v3577_v6 }
 0xcb4   :  { %v1810_v31 = vsel %vm330_vm11, %v3583_v45, %v3584_v43  ;;  %v1811_v28 = vsel %vm330_vm11, %v3579_v54, %v3583_v45  ;;  %v1812_v44 = vsel %vm330_vm11, %v3578_v57, %v3579_v54  ;;  %v1813_v32 = vsel %vm330_vm11, %v3584_v43, %v3578_v57 }
 0xcb5   :  { %v1817_v15 = vsel %vm4066_vm6, %v1801_v5, %v1810_v31  ;;  %v1815_v16 = vsel %vm4062_vm5, %v1799_v36, %v1812_v44  ;;  %v1814_v21 = vsel %vm4070_vm8, %v1800_v46, %v1813_v32  ;;  %v1816_v22 = vsel %vm4074_vm9, %v1798_v34, %v1811_v28 }
 0xcb6   :  { %v1819_v24 = vmax.f32 %v1787_v49, %v1815_v16  ;;  %v1821_v25 = vmax.f32 %v1789_v8, %v1817_v15  ;;  %v1818_v37 = vmax.f32 %v1786_v9, %v1814_v21  ;;  %v1820_v11 = vmax.f32 %v1788_v7, %v1816_v22  ;;  %v3265_v15 = vld [vmem:[%s4882_s5 + $0xc] sm:$0xf] }
 0xcb8   :  { %v1823_v10 = vpack.c.bf16 %v1819_v24, %v1819_v24  ;;  %v1825_v12 = vpack.c.bf16 %v1821_v25, %v1821_v25  ;;  %v1822_v52 = vpack.c.bf16 %v1818_v37, %v1818_v37  ;;  %v1824_v26 = vpack.c.bf16 %v1820_v11, %v1820_v11 }
 0xcba   :  { %3272 = vmatprep.subr.msk.bf16.mxu0 %vm474_vm10, %v1823_v10  ;;  %3274 = vmatprep.subr.msk.bf16.mxu1 %vm474_vm10, %v1825_v12  ;;  %v1845_v62 = vsel %vm474_vm10, %v1822_v52, 0  ;;  %v1851_v2 = vsel %vm474_vm10, %v1824_v26, 0 }
 0xcbb   :  { %1871 = vmatpush1.bf16.msra.mxu0 %v1845_v62  ;;  %1914 = vmatpush1.bf16.msra.mxu1 %v1851_v2 }
 0xcbe   :  { %3273 = vmatmul.mubr.msk.bf16.vlgmr.msra.gmra.mxu0 %vm470_vm12, %v3588_v18  ;;  %3275 = vmatmul.mubr.msk.bf16.vlgmr.msra.gmra.mxu1 %vm470_vm12, %v3588_v18  ;;  %v1834_v9 = vpop.permute.xlu0 %1833  ;;  %v1829_v50 = vpop.permute.xlu1 %1828 }
 0xcbf   :  { %1994 = vmatprep.mubr.bf16.mxu0 %v3661_v3  ;;  %2035 = vmatprep.mubr.bf16.mxu1 %v3661_v3 }
 0xcc2   :  { %v1957_v16 = vpop.permute.xlu1 %1956 }
 0xd7e   :  { %v1890_v20 = vpop.f32.mrf.mxu0  ;;  %v1933_v49 = vpop.f32.mrf.mxu1 }
 0xd7f   :  { %v1891_v58 = vadd.f32 %v1890_v20, %v1829_v50  ;;  %v1934_v23 = vadd.f32 %v1933_v49, %v1829_v50 }
 0xd80   :  { %v1892_v7 = vpop.f32.mrf.mxu0  ;;  %v1935_v8 = vpop.f32.mrf.mxu1 }
 0xd81   :  { %v1893_v14 = vadd.f32 %v1892_v7, %v1829_v50  ;;  %v1936_v56 = vadd.f32 %v1935_v8, %v1829_v50  ;;  %v1942_v46 = vmax.f32 %v1891_v58, 0.0  ;;  %v1944_v5 = vmax.f32 %v1934_v23, 0.0  ;;  %v3267_v50 = vld [vmem:[%s4883_s7 + $0xc] sm:$0xf] }
 0xd82   :  { %v1894_v53 = vpop.f32.mrf.mxu0  ;;  %v1937_v13 = vpop.f32.mrf.mxu1 }
 0xd83   :  { %v1895_v39 = vadd.f32 %v1894_v53, %v1834_v9  ;;  %v1938_v63 = vadd.f32 %v1937_v13, %v1834_v9  ;;  %v1943_v54 = vmax.f32 %v1893_v14, 0.0  ;;  %v1945_v57 = vmax.f32 %v1936_v56, 0.0  ;;  %v2051_v53 = vpop.permute.xlu0 %2050 }
 0xd84   :  { %v1896_v4 = vpop.f32.mrf.mxu0  ;;  %v1939_v41 = vpop.f32.mrf.mxu1 }
 0xd85   :  { %v1897_v42 = vadd.f32 %v1896_v4, %v1834_v9  ;;  %v1940_v6 = vadd.f32 %v1939_v41, %v1834_v9  ;;  %v1946_v43 = vmax.f32 %v1895_v39, 0.0  ;;  %v1948_v45 = vmax.f32 %v1938_v63, 0.0 }
 0xd87   :  { %v1947_v34 = vmax.f32 %v1897_v42, 0.0  ;;  %v1949_v36 = vmax.f32 %v1940_v6, 0.0  ;;  %v1950_v44 = vpack.c.bf16 %v1946_v43, %v1942_v46  ;;  %v1952_v32 = vpack.c.bf16 %v1948_v45, %v1944_v5 }
 0xd89   :  { %v1951_v31 = vpack.c.bf16 %v1947_v34, %v1943_v54  ;;  %v1953_v28 = vpack.c.bf16 %v1949_v36, %v1945_v57 }
 0xd8b   :  { %1976 = vmatprep.subr.bf16.mxu0 %v1951_v31  ;;  %2017 = vmatprep.subr.bf16.mxu1 %v1953_v28 }
 0xd8c   :  { %1977 = vmatpush1.bf16.msra.mxu0 %v1950_v44  ;;  %2018 = vmatpush1.bf16.msra.mxu1 %v1952_v32 }
 0xd8f   :  { %3276 = vmatmul.mubr.msk.bf16.vlgmr.msra.gmra.mxu0 %vm590_vm13, %v3265_v15  ;;  %3277 = vmatmul.mubr.msk.bf16.vlgmr.msra.gmra.mxu1 %vm590_vm13, %v3265_v15 }
 0xd90   :  { %2100 = vmatprep.mubr.bf16.mxu0 %v3661_v3  ;;  %2141 = vmatprep.mubr.bf16.mxu1 %v3661_v3 }
 0xe4f   :  { %v1996_v21 = vpop.f32.mrf.mxu0  ;;  %v2037_v22 = vpop.f32.mrf.mxu1 }
 0xe50   :  { %v1997_v24 = vadd.f32 %v1996_v21, %v1957_v16  ;;  %v2038_v25 = vadd.f32 %v2037_v22, %v1957_v16 }
 0xe51   :  { %v1998_v37 = vpop.f32.mrf.mxu0  ;;  %v2039_v11 = vpop.f32.mrf.mxu1 }
 0xe52   :  { %v2044_v10 = vpack.c.bf16 %v1997_v24, %v1997_v24  ;;  %v2046_v12 = vpack.c.bf16 %v2038_v25, %v2038_v25  ;;  %v1999_v52 = vadd.f32 %v1998_v37, %v1957_v16  ;;  %v2040_v26 = vadd.f32 %v2039_v11, %v1957_v16 }
 0xe53   :  { %v2000_v62 = vpop.f32.mrf.mxu0  ;;  %v2041_v2 = vpop.f32.mrf.mxu1 }
 0xe54   :  { %v2045_v18 = vpack.c.bf16 %v1999_v52, %v1999_v52  ;;  %v2047_v20 = vpack.c.bf16 %v2040_v26, %v2040_v26  ;;  %v2057_v8 = vsel %vm474_vm10, %v2044_v10, 0  ;;  %v2063_v9 = vsel %vm474_vm10, %v2046_v12, 0  ;;  %v2177_v12 = vpop.permute.xlu1 %2176 }
 0xe55   :  { %v2001_v49 = vpop.f32.mrf.mxu0  ;;  %v2042_v7 = vpop.f32.mrf.mxu1 }
 0xe56   :  { %3278 = vmatprep.subr.msk.bf16.mxu0 %vm474_vm10, %v2045_v18  ;;  %3280 = vmatprep.subr.msk.bf16.mxu1 %vm474_vm10, %v2047_v20  ;;  %v2186_v18 = vpop.permute.xlu0 %2185 }
 0xe57   :  { %2083 = vmatpush1.bf16.msra.mxu0 %v2057_v8  ;;  %2124 = vmatpush1.bf16.msra.mxu1 %v2063_v9 }
 0xe5a   :  { %3279 = vmatmul.mubr.msk.bf16.vlgmr.msra.gmra.mxu0 %vm470_vm12, %v3267_v50  ;;  %3281 = vmatmul.mubr.msk.bf16.vlgmr.msra.gmra.mxu1 %vm470_vm12, %v3267_v50 }
 0xe5b   :  { %2307 = vmatprep.mubr.bf16.mxu0 %v3661_v3  ;;  %2358 = vmatprep.mubr.bf16.mxu1 %v3661_v3 }
 0xf1a   :  { %v2102_v13 = vpop.f32.mrf.mxu0  ;;  %v2143_v14 = vpop.f32.mrf.mxu1 }
 0xf1b   :  { %v2103_v56 = vadd.f32 %v2102_v13, %v2051_v53  ;;  %v2144_v39 = vadd.f32 %v2143_v14, %v2051_v53 }
 0xf1c   :  { %v2104_v63 = vpop.f32.mrf.mxu0  ;;  %v2145_v58 = vpop.f32.mrf.mxu1 }
 0xf1d   :  { %v2150_v23 = vmul.f32 0.5, %v2103_v56  ;;  %v2152_v4 = vmul.f32 0.5, %v2144_v39  ;;  %v2105_v41 = vadd.f32 %v2104_v63, %v2051_v53  ;;  %v2146_v42 = vadd.f32 %v2145_v58, %v2051_v53  ;;  %v2206_v56 = vld [vmem:[%s4885_s12 + $0x8] sm:$0xff] }
 0xf1e   :  { %v2106_v6 = vpop.f32.mrf.mxu0  ;;  %v2147_v43 = vpop.f32.mrf.mxu1 }
 0xf1f   :  { %3652 = vtanh.f32 %v2150_v23  ;;  %v2151_v45 = vmul.f32 0.5, %v2105_v41  ;;  %v2153_v54 = vmul.f32 0.5, %v2146_v42 }
 0xf20   :  { %3654 = vtanh.f32 %v2152_v4  ;;  %v2107_v57 = vpop.f32.mrf.mxu0  ;;  %v2148_v34 = vpop.f32.mrf.mxu1 }
 0xf21   :  { %3656 = vtanh.f32 %v2151_v45 }
 0xf22   :  { %3658 = vtanh.f32 %v2153_v54 }
 0xf2c   :  { %v3653_v36 = vpop.eup %3652 }
 0xf2d   :  { %v3655_v46 = vpop.eup %3654  ;;  %v2158_v5 = vadd.f32 1.0, %v3653_v36 }
 0xf2e   :  { %v3657_v31 = vpop.eup %3656  ;;  %v2160_v28 = vadd.f32 1.0, %v3655_v46 }
 0xf2f   :  { %v3659_v44 = vpop.eup %3658  ;;  %v2162_v32 = vmul.f32 0.5, %v2158_v5  ;;  %v2159_v15 = vadd.f32 1.0, %v3657_v31 }
 0xf30   :  { %v2164_v16 = vmul.f32 0.5, %v2160_v28  ;;  %v2161_v21 = vadd.f32 1.0, %v3659_v44 }
 0xf31   :  { %v2166_v22 = vmul.f32 %v2162_v32, %v4394_v0  ;;  %v2163_v24 = vmul.f32 0.5, %v2159_v15 }
 0xf32   :  { %v2168_v25 = vmul.f32 %v2164_v16, %v4398_v38  ;;  %v2165_v37 = vmul.f32 0.5, %v2161_v21 }
 0xf33   :  { %v2167_v11 = vmul.f32 %v2163_v24, %v4396_v27  ;;  %v2170_v10 = vadd.f32 %v2166_v22, %v4394_v0 }
 0xf34   :  { %v2169_v52 = vmul.f32 %v2165_v37, %v4400_v19  ;;  %v2172_v26 = vadd.f32 %v2168_v25, %v4398_v38 }
 0xf35   :  { %v2179_v62 = vmul.f32 %v2177_v12, %v2170_v10  ;;  %v2171_v2 = vadd.f32 %v2167_v11, %v4396_v27 }
 0xf36   :  { %v2181_v20 = vmul.f32 %v2177_v12, %v2172_v26  ;;  %v2173_v49 = vadd.f32 %v2169_v52, %v4400_v19  ;;  %v2205_v19 = vld [vmem:[%s4885_s12] sm:$0xff]  ;;  %v3593_v52 = vld [vmem:[%s4884_s11 + $0xc] sm:$0xff]   ;;  %v3594_v26 = vld [vmem:[%s4884_s11 + $0x14] ss:$0 sps:$4 sm:$0x11]  }
 0xf37   :  { %v2188_v7 = vadd.f32 %v2186_v18, %v2179_v62  ;;  %v2180_v8 = vmul.f32 %v2177_v12, %v2171_v2 }
 0xf38   :  { %v2182_v9 = vmul.f32 %v2177_v12, %v2173_v49  ;;  %v2190_v13 = vadd.f32 %v2186_v18, %v2181_v20  ;;  %v3589_v12 = vld [vmem:[%s4884_s11] sm:$0xff]   ;;  %v3595_v49 = vld [vmem:[%s4886_s13 + $0x78] sm:$0xff]  }
 0xf39   :  { %v2192_v50 = vmax.f32 %v2188_v7, 0.0  ;;  %v2189_v53 = vadd.f32 %v2186_v18, %v2180_v8  ;;  %v3596_v8 = vld [vmem:[%s4886_s13 + $0x38] sm:$0xff]  }
 0xf3a   :  { %v2191_v14 = vadd.f32 %v2186_v18, %v2182_v9  ;;  %v2194_v38 = vmax.f32 %v2190_v13, 0.0  ;;  %v3597_v13 = vld [vmem:[%s4886_s13 + $0x70] sm:$0xff]  }
 0xf3b   :  { %2224 = vrot.lane.b32.xlu1 %v2192_v50, %s3664_s0  ;;  %v2193_v0 = vmax.f32 %v2189_v53, 0.0 }
 0xf3c   :  { %v2195_v27 = vmax.f32 %v2191_v14, 0.0 }
 0xf3d   :  { %2226 = vrot.lane.b32.xlu0 %v2193_v0, %s3664_s0 }
 0xf3f   :  { %2228 = vrot.lane.b32.xlu1 %v2194_v38, %s3664_s0 }
 0xf41   :  { %2230 = vrot.lane.b32.xlu0 %v2195_v27, %s3664_s0 }
 0xf43   :  { %2208 = vrot.lane.b32.xlu1 %v2192_v50, %s3663_s26 }
 0xf45   :  { %2210 = vrot.lane.b32.xlu0 %v2193_v0, %s3663_s26 }
 0xf47   :  { %2212 = vrot.lane.b32.xlu1 %v2194_v38, %s3663_s26 }
 0xf49   :  { %2214 = vrot.lane.b32.xlu0 %v2195_v27, %s3663_s26 }
 0xf4b   :  { %2719 = vperm.xlu1 %3423, %v2205_v19   ;;  %v3600_v19 = vld [vmem:[%s4886_s13 + $0xb8] sm:$0xff]  }
 0xf4d   :  { %2724 = vperm.xlu0 %3464, %v2206_v56  }
 0xfad   :  { %v2225_v39 = vpop.permute.xlu1 %2224 }
 0xfaf   :  { %v2227_v63 = vpop.permute.xlu0 %2226 }
 0xfb0   :  { %v2234_v58 = vsel %vm182_vm7, %v2225_v39, %v2227_v63 }
 0xfb1   :  { %v2236_v23 = vmul.f32 %v3849_v47, %v2234_v58  ;;  %v2229_v4 = vpop.permute.xlu1 %2228  ;;  %v3602_v58 = vld [vmem:[%s4886_s13 + $0xf0] sm:$0xff]  }
 0xfb2   :  { %v2233_v41 = vsel %vm182_vm7, %v2227_v63, %v2229_v4  ;;  %v3601_v63 = vld [vmem:[%s4886_s13 + $0x68] sm:$0xff]  }
 0xfb3   :  { %v2244_v42 = vpack.c.bf16 %v2236_v23, %v2236_v23  ;;  %v2237_v6 = vmul.f32 %v3852_v48, %v2233_v41  ;;  %v2231_v43 = vpop.permute.xlu0 %2230 }
 0xfb4   :  { %v2232_v45 = vsel %vm182_vm7, %v2229_v4, %v2231_v43  ;;  %v2235_v54 = vsel %vm182_vm7, %v2231_v43, %v2225_v39  ;;  %vm2256_vm7 = vcmask 195584   ;;  %v3603_v4 = vld [vmem:[%s4886_s13 + $0x28] sm:$0xff]  }
 0xfb5   :  { %v2245_v57 = vpack.c.bf16 %v2237_v6, %v2237_v6  ;;  %v2238_v34 = vmul.f32 %v3869_v59, %v2232_v45  ;;  %v2239_v36 = vmul.f32 %v3872_v60, %v2235_v54  ;;  %v2209_v47 = vpop.permute.xlu1 %2208  ;;  %v2264_v48 = vsel %vm474_vm10, %v2244_v42, 0  ;;  %v3604_v42 = vld [vmem:[%s4886_s13 + $0xb0] sm:$0xff]   ;;  %v3605_v45 = vld [vmem:[%s4886_s13 + $0x60] sm:$0xff]   ;;  %v3606_v54 = vld [vmem:[%s4886_s13 + $0xe8] sm:$0xff]  }
 0xfb7   :  { %v2246_v46 = vpack.c.bf16 %v2238_v34, %v2238_v34  ;;  %v2247_v5 = vpack.c.bf16 %v2239_v36, %v2239_v36  ;;  %v2211_v31 = vpop.permute.xlu0 %2210  ;;  %3284 = vmatprep.subr.msk.bf16.mxu0 %vm474_vm10, %v2245_v57  ;;  %v3607_v34 = vld [vmem:[%s4886_s13 + $0x20] sm:$0xff]  }
 0xfb8   :  { %v2218_v28 = vsel %vm165_vm1, %v2209_v47, %v2211_v31  ;;  %2288 = vmatpush1.bf16.msra.mxu0 %v2264_v48 }
 0xfb9   :  { %v2221_v44 = vmul.f32 %v3823_v33, %v2218_v28  ;;  %3287 = vmatprep.subr.msk.bf16.mxu1 %vm474_vm10, %v2247_v5  ;;  %v2213_v32 = vpop.permute.xlu1 %2212  ;;  %v2270_v59 = vsel %vm474_vm10, %v2246_v46, 0  ;;  %v3608_v46 = vld [vmem:[%s4886_s13 + $0xa8] sm:$0xff]   ;;  %v3610_v28 = vld [vmem:[%s4886_s13 + $0xe0] sm:$0xff]  }
 0xfba   :  { %v2217_v60 = vsel %vm165_vm1, %v2211_v31, %v2213_v32  ;;  %2339 = vmatpush1.bf16.msra.mxu1 %v2270_v59  ;;  %v3609_v31 = vld [vmem:[%s4886_s13 + $0x58] sm:$0xff]  }
 0xfbb   :  { %v2215_v15 = vpop.permute.xlu0 %2214  ;;  %v2241_v16 = vpack.c.bf16 %v2193_v0, %v2221_v44  ;;  %v2222_v21 = vmul.f32 %v3835_v40, %v2217_v60  ;;  %v3592_v40 = vld [vmem:[%s4884_s11 + $0x20] ss:$0 sps:$4 sm:$0x11]   ;;  %v3598_v0 = vld [vmem:[%s4886_s13 + $0xf8] sm:$0xff]  }
 0xfbc   :  { %v2216_v22 = vsel %vm165_vm1, %v2213_v32, %v2215_v15  ;;  %v2219_v24 = vsel %vm165_vm1, %v2215_v15, %v2209_v47  ;;  %v3611_v32 = vld [vmem:[%s4886_s13 + $0x18] sm:$0xff]   ;;  %v3612_v60 = vld [vmem:[%s4886_s13 + $0xa0] sm:$0xff]   ;;  %vm3668_vm1 = vmmov 0  }
 0xfbd   :  { %v2220_v33 = vmul.f32 %v3818_v30, %v2219_v24  ;;  %v2223_v25 = vmul.f32 %v3828_v35, %v2216_v22  ;;  %2289 = vmatprep.subr.bf16.mxu0 %v2241_v16  ;;  %v2242_v10 = vpack.c.bf16 %v2194_v38, %v2222_v21  ;;  %v3590_v30 = vld [vmem:[%s4884_s11 + $0x8] ss:$0 sps:$4 sm:$0x11]   ;;  %v3591_v35 = vld [vmem:[%s4884_s11 + $0x18] sm:$0xff]   ;;  %v3599_v38 = vld [vmem:[%s4886_s13 + $0x30] sm:$0xff]  }
 0xfbe   :  { %v3614_v22 = vld [vmem:[%s4886_s13 + $0xd8] sm:$0xff]  }
 0xfbf   :  { %v2240_v37 = vpack.c.bf16 %v2192_v50, %v2220_v33  ;;  %v2243_v11 = vpack.c.bf16 %v2195_v27, %v2223_v25  ;;  %v3615_v33 = vld [vmem:[%s4886_s13 + $0x10] sm:$0xff]  }
 0xfc1   :  { %2290 = vmatpush1.bf16.msra.mxu0 %v2240_v37  ;;  %2340 = vmatprep.subr.bf16.mxu1 %v2243_v11 }
 0xfc2   :  { %2341 = vmatpush1.bf16.msra.mxu1 %v2242_v10  ;;  %3292 = vmatprep.subr.msk.bf16.mxu0 %vm474_vm10, %v2245_v57 }
 0xfc3   :  { %3295 = vmatprep.subr.msk.bf16.mxu1 %vm474_vm10, %v2247_v5 }
 0xfc4   :  { %3285 = vmatmul.mubr.msk.bf16.vlgmr.msra.gmra.mxu0 %vm2256_vm7, %v3589_v12 }
 0xfc5   :  { %3288 = vmatmul.mubr.msk.bf16.vlgmr.msra.gmra.mxu1 %vm2256_vm7, %v3589_v12  ;;  %2404 = vmatpush1.bf16.msra.mxu0 %v2264_v48 }
 0xfc6   :  { %2405 = vmatprep.subr.bf16.mxu0 %v2241_v16  ;;  %2455 = vmatpush1.bf16.msra.mxu1 %v2270_v59 }
 0xfc7   :  { %2456 = vmatprep.subr.bf16.mxu1 %v2243_v11  ;;  %2317 = vmatprep.mubr.bf16.mxu0 %v3661_v3 }
 0xfc8   :  { %2368 = vmatprep.mubr.bf16.mxu1 %v3661_v3 }
 0xfc9   :  { %2406 = vmatpush1.bf16.msra.mxu0 %v2240_v37 }
 0xfca   :  { %2457 = vmatpush1.bf16.msra.mxu1 %v2242_v10  ;;  %3300 = vmatprep.subr.msk.bf16.mxu0 %vm474_vm10, %v2245_v57 }
 0xfcb   :  { %3303 = vmatprep.subr.msk.bf16.mxu1 %vm474_vm10, %v2247_v5 }
 0xfcc   :  { %3286 = vmatmul.mubr.msk.bf16.gmra.mxu0 %vm2256_vm7, %v3590_v30 }
 0xfcd   :  { %3289 = vmatmul.mubr.msk.bf16.gmra.mxu1 %vm2256_vm7, %v3590_v30  ;;  %2423 = vmatprep.mubr.bf16.mxu0 %v3661_v3  ;;  %v3618_v30 = vld [vmem:[%s4886_s13 + $0xd0] sm:$0xff]  }
 0xfce   :  { %2474 = vmatprep.mubr.bf16.mxu1 %v3661_v3 }
 0xfd4   :  { %3293 = vmatmul.mubr.msk.bf16.vlgmr.msra.gmra.mxu0 %vm2256_vm7, %v3591_v35 }
 0xfd5   :  { %2568 = vmatpush1.bf16.msra.mxu0 %v2264_v48  ;;  %3296 = vmatmul.mubr.msk.bf16.vlgmr.msra.gmra.mxu1 %vm2256_vm7, %v3591_v35 }
 0xfd6   :  { %2569 = vmatprep.subr.bf16.mxu0 %v2241_v16  ;;  %2619 = vmatpush1.bf16.msra.mxu1 %v2270_v59  ;;  %v3613_v16 = vld [vmem:[%s4886_s13 + $0x50] sm:$0xff]  }
 0xfd7   :  { %2620 = vmatprep.subr.bf16.mxu1 %v2243_v11  ;;  %2433 = vmatprep.mubr.bf16.mxu0 %v3661_v3 }
 0xfd8   :  { %2484 = vmatprep.mubr.bf16.mxu1 %v3661_v3 }
 0xfd9   :  { %2570 = vmatpush1.bf16.msra.mxu0 %v2240_v37  ;;  %v3616_v37 = vld [vmem:[%s4886_s13 + $0x98] sm:$0xff]  }
 0xfda   :  { %2621 = vmatpush1.bf16.msra.mxu1 %v2242_v10  ;;  %3340 = vmatprep.subr.bf16.mxu0 %v3595_v49  ;;  %v3617_v10 = vld [vmem:[%s4886_s13 + $0x48] sm:$0xff]  }
 0xfdb   :  { %3368 = vmatprep.subr.bf16.mxu1 %v3598_v0  ;;  %v3622_v49 = vld [vmem:[%s4886_s13 + $0xc8] sm:$0xff]  }
 0xfdc   :  { %3294 = vmatmul.mubr.msk.bf16.gmra.mxu0 %vm2256_vm7, %v3592_v40 }
 0xfdd   :  { %3297 = vmatmul.mubr.msk.bf16.gmra.mxu1 %vm2256_vm7, %v3592_v40  ;;  %2587 = vmatprep.mubr.bf16.mxu0 %v3661_v3 }
 0xfde   :  { %2638 = vmatprep.mubr.bf16.mxu1 %v3661_v3 }
 0xfe4   :  { %3301 = vmatmul.mubr.msk.bf16.vlgmr.msra.gmra.mxu0 %vm2256_vm7, %v3593_v52 }
 0xfe5   :  { %3304 = vmatmul.mubr.msk.bf16.vlgmr.msra.gmra.mxu1 %vm2256_vm7, %v3593_v52  ;;  %2597 = vmatprep.mubr.bf16.mxu0 %v3661_v3  ;;  %v3619_v52 = vld [vmem:[%s4886_s13 + $0x8] sm:$0xff]  }
 0xfe6   :  { %2648 = vmatprep.mubr.bf16.mxu1 %v3661_v3  ;;  %3341 = vmatpush3.bf16.msra.mxu0 %v3596_v8  ;;  %v3623_v8 = vld [vmem:[%s4886_s13] sm:$0xff]  }
 0xfe7   :  { %3342 = vmatprep.subr.bf16.mxu0 %v3597_v13  ;;  %3369 = vmatpush3.bf16.msra.mxu1 %v3600_v19  ;;  %v3625_v13 = vld [vmem:[%s4886_s13 + $0xc0] sm:$0xff]  }
 0xfe8   :  { %3370 = vmatprep.subr.bf16.mxu1 %v3602_v58 }
 0xfea   :  { %3343 = vmatpush3.bf16.msra.mxu0 %v3599_v38  ;;  %v3626_v38 = vld [vmem:[%s4886_s13 + $0x80] sm:$0xff]  }
 0xfeb   :  { %3344 = vmatprep.subr.bf16.mxu0 %v3601_v63  ;;  %3371 = vmatpush3.bf16.msra.mxu1 %v3604_v42 }
 0xfec   :  { %3302 = vmatmul.mubr.msk.bf16.gmra.mxu0 %vm2256_vm7, %v3594_v26  ;;  %3372 = vmatprep.subr.bf16.mxu1 %v3606_v54  ;;  %v4763_v54 = vpop.permute.xlu0 %2724 }
 0xfed   :  { %3305 = vmatmul.mubr.msk.bf16.gmra.mxu1 %vm2256_vm7, %v3594_v26 }
 0xfee   :  { %3345 = vmatpush3.bf16.msra.mxu0 %v3603_v4  ;;  %v2207_v4 = vld [vmem:[%s4885_s12 + $0x10] sm:$0x1] }
 0xfef   :  { %3346 = vmatprep.subr.bf16.mxu0 %v3605_v45  ;;  %3373 = vmatpush3.bf16.msra.mxu1 %v3608_v46  ;;  %v4761_v45 = vpop.permute.xlu1 %2719 }
 0xff0   :  { %3374 = vmatprep.subr.bf16.mxu1 %v3610_v28 }
 0xff2   :  { %3347 = vmatpush3.bf16.msra.mxu0 %v3607_v34 }
 0xff3   :  { %3348 = vmatprep.subr.bf16.mxu0 %v3609_v31  ;;  %3375 = vmatpush3.bf16.msra.mxu1 %v3612_v60 }
 0xff4   :  { %3376 = vmatprep.subr.bf16.mxu1 %v3614_v22 }
 0xff6   :  { %3349 = vmatpush3.bf16.msra.mxu0 %v3611_v32 }
 0xff7   :  { %3350 = vmatprep.subr.bf16.mxu0 %v3613_v16  ;;  %3377 = vmatpush3.bf16.msra.mxu1 %v3616_v37 }
 0xff8   :  { %3378 = vmatprep.subr.bf16.mxu1 %v3618_v30 }
 0xffa   :  { %3351 = vmatpush3.bf16.msra.mxu0 %v3615_v33 }
 0xffb   :  { %3352 = vmatprep.subr.bf16.mxu0 %v3617_v10 }
 0xffe   :  { %3353 = vmatpush3.bf16.msra.mxu0 %v3619_v52 }
0x1084   :  { %v2309_v62 = vpop.f32.mrf.mxu0 }
0x1085   :  { %2493 = vrot.lane.b32.xlu1 %v2309_v62, %s3666_s1  ;;  %v2360_v2 = vpop.f32.mrf.mxu1  ;;  %v3620_v62 = vld [vmem:[%s4886_s13 + $0x90] sm:$0xff]  }
0x1086   :  { %v2311_v18 = vpop.f32.mrf.mxu0  ;;  %3379 = vmatpush3.bf16.msra.mxu1 %v3620_v62 }
0x1087   :  { %v2362_v20 = vpop.f32.mrf.mxu1  ;;  %3380 = vmatprep.subr.bf16.mxu1 %v3622_v49 }
0x1088   :  { %v2313_v7 = vpop.f32.mrf.mxu0 }
0x1089   :  { %2495 = vrot.lane.b32.xlu0 %v2313_v7, %s3666_s1  ;;  %2505 = vrot.lane.b32.xlu1 %v2360_v2, %s3666_s1  ;;  %v2364_v9 = vpop.f32.mrf.mxu1 }
0x108a   :  { %v2315_v50 = vpop.f32.mrf.mxu0 }
0x108b   :  { %v2366_v53 = vpop.f32.mrf.mxu1 }
0x108c   :  { %v2319_v14 = vpop.f32.mrf.mxu0 }
0x108d   :  { %2499 = vrot.lane.b32.xlu1 %v2311_v18, %s3666_s1  ;;  %2507 = vrot.lane.b32.xlu0 %v2364_v9, %s3666_s1  ;;  %v2370_v27 = vpop.f32.mrf.mxu1  ;;  %v3621_v18 = vld [vmem:[%s4886_s13 + $0x40] sm:$0xff]  }
0x108e   :  { %v2321_v56 = vpop.f32.mrf.mxu0  ;;  %3354 = vmatprep.subr.bf16.mxu0 %v3621_v18 }
0x108f   :  { %v2372_v39 = vpop.f32.mrf.mxu1  ;;  %3355 = vmatpush3.bf16.msra.mxu0 %v3623_v8 }
0x1090   :  { %v2323_v23 = vpop.f32.mrf.mxu0  ;;  %3399 = vmatprep.subr.bf16.mxu0 %v3665_v29 }
0x1091   :  { %2511 = vrot.lane.b32.xlu1 %v2362_v20, %s3666_s1  ;;  %2501 = vrot.lane.b32.xlu0 %v2315_v50, %s3666_s1  ;;  %v2374_v41 = vpop.f32.mrf.mxu1  ;;  %v3624_v50 = vld [vmem:[%s4886_s13 + $0x88] sm:$0xff]  }
0x1092   :  { %v2324_v6 = vpop.f32.mrf.mxu0  ;;  %3381 = vmatpush3.bf16.msra.mxu1 %v3624_v50 }
0x1093   :  { %v2375_v43 = vpop.f32.mrf.mxu1  ;;  %3382 = vmatprep.subr.bf16.mxu1 %v3625_v13  ;;  %v3121_v6 = vld [vmem:[%s4887_s15 + $0x8] sm:$0x3] }
0x1094   :  { %v2425_v57 = vpop.f32.mrf.mxu0  ;;  %v3120_v43 = vld [vmem:[%s4887_s15] sm:$0xff] }
0x1095   :  { %2497 = vrot.lane.b32.xlu1 %v2319_v14, %s3666_s1  ;;  %2513 = vrot.lane.b32.xlu0 %v2366_v53, %s3666_s1  ;;  %v2476_v36 = vpop.f32.mrf.mxu1 }
0x1096   :  { %v2427_v47 = vpop.f32.mrf.mxu0  ;;  %3383 = vmatpush3.bf16.msra.mxu1 %v3626_v38 }
0x1097   :  { %v2478_v5 = vpop.f32.mrf.mxu1 }
0x1098   :  { %v2429_v48 = vpop.f32.mrf.mxu0 }
0x1099   :  { %2503 = vrot.lane.b32.xlu0 %v2321_v56, %s3666_s1  ;;  %2509 = vrot.lane.b32.xlu1 %v2370_v27, %s3666_s1  ;;  %v2480_v44 = vpop.f32.mrf.mxu1 }
0x109a   :  { %v2431_v59 = vpop.f32.mrf.mxu0 }
0x109b   :  { %v2482_v15 = vpop.f32.mrf.mxu1 }
0x109c   :  { %v2435_v21 = vpop.f32.mrf.mxu0 }
0x109d   :  { %2657 = vrot.lane.b32.xlu1 %v2425_v57, %s3667_s17  ;;  %2515 = vrot.lane.b32.xlu0 %v2372_v39, %s3666_s1  ;;  %v2486_v24 = vpop.f32.mrf.mxu1 }
0x109e   :  { %v2437_v25 = vpop.f32.mrf.mxu0 }
0x109f   :  { %v2488_v11 = vpop.f32.mrf.mxu1 }
0x10a0   :  { %v2439_v12 = vpop.f32.mrf.mxu0 }
0x10a1   :  { %2659 = vrot.lane.b32.xlu0 %v2429_v48, %s3667_s17  ;;  %2669 = vrot.lane.b32.xlu1 %v2476_v36, %s3667_s17  ;;  %v2490_v35 = vpop.f32.mrf.mxu1 }
0x10a2   :  { %v2440_v40 = vpop.f32.mrf.mxu0 }
0x10a3   :  { %v2491_v26 = vpop.f32.mrf.mxu1 }
0x10a4   :  { %v4700_v2 = vpop.f32.mrf.mxu0 }
0x10a5   :  { %2663 = vrot.lane.b32.xlu1 %v2427_v47, %s3667_s17  ;;  %2671 = vrot.lane.b32.xlu0 %v2480_v44, %s3667_s17  ;;  %v4707_v20 = vpop.f32.mrf.mxu1 }
0x10a6   :  { %v4712_v7 = vpop.f32.mrf.mxu0 }
0x10a7   :  { %v4717_v9 = vpop.f32.mrf.mxu1 }
0x10a8   :  { %v4722_v53 = vpop.f32.mrf.mxu0 }
0x10a9   :  { %2675 = vrot.lane.b32.xlu1 %v2478_v5, %s3667_s17  ;;  %2665 = vrot.lane.b32.xlu0 %v2431_v59, %s3667_s17  ;;  %v4729_v0 = vpop.f32.mrf.mxu1 }
0x10aa   :  { %v4731_v14 = vpop.f32.mrf.mxu0 }
0x10ab   :  { %v4737_v27 = vpop.f32.mrf.mxu1 }
0x10ac   :  { %v4739_v19 = vpop.f32.mrf.mxu0 }
0x10ad   :  { %2661 = vrot.lane.b32.xlu1 %v2435_v21, %s3667_s17  ;;  %2677 = vrot.lane.b32.xlu0 %v2482_v15, %s3667_s17  ;;  %v4743_v56 = vpop.f32.mrf.mxu1 }
0x10ae   :  { %v4745_v39 = vpop.f32.mrf.mxu0 }
0x10af   :  { %v4747_v63 = vpop.f32.mrf.mxu1 }
0x10b0   :  { %v2603_v58 = vpop.f32.mrf.mxu0 }
0x10b1   :  { %2667 = vrot.lane.b32.xlu0 %v2437_v25, %s3667_s17  ;;  %2673 = vrot.lane.b32.xlu1 %v2486_v24, %s3667_s17  ;;  %v2654_v23 = vpop.f32.mrf.mxu1 }
0x10b2   :  { %v2604_v41 = vpop.f32.mrf.mxu0 }
0x10b3   :  { %v2655_v42 = vpop.f32.mrf.mxu1 }
0x10b5   :  { %2729 = vperm.xlu1 %3423, %v2207_v4   ;;  %2679 = vrot.lane.b32.xlu0 %v2488_v11, %s3667_s17 }
0x10b9   :  { %3129 = vperm.xlu1 %3423, %v3121_v6   ;;  %3124 = vperm.xlu0 %3464, %v3120_v43  }
0x10f7   :  { %v2494_v57 = vpop.permute.xlu1 %2493 }
0x10fb   :  { %v2496_v34 = vpop.permute.xlu0 %2495  ;;  %v2506_v36 = vpop.permute.xlu1 %2505 }
0x10ff   :  { %v2508_v47 = vpop.permute.xlu0 %2507  ;;  %v2500_v46 = vpop.permute.xlu1 %2499 }
0x1100   :  { %v2523_v24 = vsel %vm330_vm11, %v2494_v57, %v2500_v46  ;;  %v2520_v25 = vsel %vm330_vm11, %v2500_v46, %v2506_v36 }
0x1101   :  { %v2592_v35 = vadd.f32 %v4712_v7, %v2523_v24  ;;  %v2531_v26 = vmul.f32 %v3942_v55, %v2520_v25 }
0x1103   :  { %v2502_v5 = vpop.permute.xlu0 %2501  ;;  %v2512_v31 = vpop.permute.xlu1 %2511 }
0x1104   :  { %v2526_v15 = vsel %vm330_vm11, %v2512_v31, %v2494_v57  ;;  %v2521_v37 = vsel %vm330_vm11, %v2502_v5, %v2508_v47  ;;  %v2524_v62 = vsel %vm330_vm11, %v2496_v34, %v2502_v5  ;;  %v2517_v8 = vsel %vm330_vm11, %v2506_v36, %v2512_v31 }
0x1105   :  { %v2529_v33 = vmul.f32 %v3937_v51, %v2526_v15  ;;  %v2535_v18 = vmul.f32 %v3942_v55, %v2521_v37  ;;  %v2596_v42 = vadd.f32 %v4731_v14, %v2524_v62 }
0x1107   :  { %v2514_v48 = vpop.permute.xlu0 %2513  ;;  %v4765_v28 = vpop.permute.xlu1 %2497  ;;  %v2590_v49 = vadd.f32 %v4700_v2, %v2529_v33  ;;  %v2645_v36 = vadd.f32 %v4729_v0, %v2535_v18 }
0x1108   :  { %v2527_v22 = vsel %vm330_vm11, %v2514_v48, %v2496_v34  ;;  %v2518_v7 = vsel %vm330_vm11, %v2508_v47, %v2514_v48  ;;  %v2643_v34 = vadd.f32 %v4717_v9, %v2517_v8 }
0x1109   :  { %v2533_v11 = vmul.f32 %v3937_v51, %v2527_v22  ;;  %v2647_v46 = vadd.f32 %v4737_v27, %v2518_v7 }
0x110b   :  { %v4767_v44 = vpop.permute.xlu0 %2503  ;;  %v4769_v32 = vpop.permute.xlu1 %2509  ;;  %v2594_v13 = vadd.f32 %v4722_v53, %v2533_v11  ;;  %v2641_v53 = vadd.f32 %v4707_v20, %v2531_v26 }
0x110c   :  { %v2522_v26 = vsel %vm330_vm11, %v4767_v44, %v4769_v32 }
0x110f   :  { %v4771_v59 = vpop.permute.xlu0 %2515  ;;  %v2658_v60 = vpop.permute.xlu1 %2657 }
0x1110   :  { %v2528_v62 = vsel %vm330_vm11, %v4771_v59, %v4765_v28 }
0x1113   :  { %v2660_v16 = vpop.permute.xlu0 %2659  ;;  %v2670_v21 = vpop.permute.xlu1 %2669 }
0x1117   :  { %v2672_v10 = vpop.permute.xlu0 %2671  ;;  %v2664_v12 = vpop.permute.xlu1 %2663 }
0x1118   :  { %v2684_v30 = vsel %vm351_vm15, %v2664_v12, %v2670_v21  ;;  %v2687_v40 = vsel %vm351_vm15, %v2658_v60, %v2664_v12 }
0x1119   :  { %v2694_v52 = vmul.f32 %v3954_v1, %v2684_v30  ;;  %v2705_v23 = vadd.f32 %v2687_v40, %v2590_v49 }
0x111b   :  { %v2706_v50 = vadd.f32 %v2694_v52, %v2592_v35  ;;  %v2666_v38 = vpop.permute.xlu0 %2665  ;;  %v2676_v58 = vpop.permute.xlu1 %2675  ;;  %v2732_v15 = vadd.f32 %v4761_v45, %v2705_v23  ;;  %v2537_v23 = vmul.f32 %v3937_v51, %v2528_v62 }
0x111c   :  { %v2685_v4 = vsel %vm351_vm15, %v2666_v38, %v2672_v10  ;;  %v2688_v41 = vsel %vm351_vm15, %v2660_v16, %v2666_v38  ;;  %v2690_v2 = vsel %vm351_vm15, %v2676_v58, %v2658_v60  ;;  %v2681_v47 = vsel %vm351_vm15, %v2670_v21, %v2676_v58 }
0x111d   :  { %v2698_v6 = vmul.f32 %v3954_v1, %v2685_v4  ;;  %v2709_v43 = vadd.f32 %v2688_v41, %v2594_v13  ;;  %v2696_v57 = vmul.f32 %v3949_v61, %v2690_v2  ;;  %v2733_v60 = vadd.f32 %v4761_v45, %v2706_v50 }
0x111e   :  { %v2707_v0 = vadd.f32 %v2681_v47, %v2641_v53  ;;  %v2744_v35 = vmax.f32 %v2732_v15, 0.0  ;;  %v2539_v58 = vmul.f32 %v3942_v55, %v2522_v26  ;;  %v2519_v41 = vsel %vm330_vm11, %v4769_v32, %v4771_v59 }
0x111f   :  { %v2710_v5 = vadd.f32 %v2698_v6, %v2596_v42  ;;  %v2736_v31 = vadd.f32 %v4763_v54, %v2709_v43  ;;  %v2678_v14 = vpop.permute.xlu0 %2677  ;;  %v2662_v48 = vpop.permute.xlu1 %2661  ;;  %v2708_v22 = vadd.f32 %v2696_v57, %v2643_v34  ;;  %v2745_v12 = vmax.f32 %v2733_v60, 0.0 }
0x1120   :  { %v2682_v20 = vsel %vm351_vm15, %v2672_v10, %v2678_v14  ;;  %v2691_v9 = vsel %vm351_vm15, %v2678_v14, %v2660_v16  ;;  %v2734_v10 = vadd.f32 %v4761_v45, %v2707_v0  ;;  %v2653_v57 = vadd.f32 %v4747_v63, %v2519_v41 }
0x1121   :  { %v2700_v21 = vmul.f32 %v3949_v61, %v2691_v9  ;;  %v2711_v27 = vadd.f32 %v2682_v20, %v2645_v36  ;;  %v2737_v24 = vadd.f32 %v4763_v54, %v2710_v5  ;;  %v2748_v33 = vmax.f32 %v2736_v31, 0.0 }
0x1122   :  { %v2735_v40 = vadd.f32 %v4761_v45, %v2708_v22  ;;  %v2746_v4 = vmax.f32 %v2734_v10, 0.0  ;;  %v2600_v32 = vadd.f32 %v4739_v19, %v2537_v23 }
0x1123   :  { %v2712_v25 = vadd.f32 %v2700_v21, %v2647_v46  ;;  %v2738_v37 = vadd.f32 %v4763_v54, %v2711_v27  ;;  %v2668_v11 = vpop.permute.xlu0 %2667  ;;  %v2749_v30 = vmax.f32 %v2737_v24, 0.0  ;;  %v2674_v52 = vpop.permute.xlu1 %2673  ;;  %v2820_v18 = vpack.c.bf16 %v2748_v33, %v2744_v35 }
0x1124   :  { %v2686_v45 = vsel %vm351_vm15, %v2668_v11, %v2674_v52  ;;  %v2747_v13 = vmax.f32 %v2735_v40, 0.0  ;;  %v2689_v51 = vsel %vm351_vm15, %v2662_v48, %v2668_v11 }
0x1125   :  { %v2821_v16 = vpack.c.bf16 %v2749_v30, %v2745_v12  ;;  %v2739_v49 = vadd.f32 %v4763_v54, %v2712_v25  ;;  %v2750_v8 = vmax.f32 %v2738_v37, 0.0  ;;  %v2525_v54 = vsel %vm330_vm11, %v4765_v28, %v4767_v44 }
0x1126   :  { %v2702_v6 = vmul.f32 %v3954_v1, %v2686_v45  ;;  %v2602_v28 = vadd.f32 %v4745_v39, %v2525_v54  ;;  %v2651_v44 = vadd.f32 %v4743_v56, %v2539_v58  ;;  %v2713_v59 = vadd.f32 %v2689_v51, %v2600_v32 }
0x1127   :  { %v2680_v7 = vpop.permute.xlu0 %2679  ;;  %3052 = vmatprep.mubr.bf16.mxu0 %v2821_v16  ;;  %v2751_v38 = vmax.f32 %v2739_v49, 0.0  ;;  %v2822_v42 = vpack.c.bf16 %v2750_v8, %v2746_v4  ;;  %vm3141_vm11 = vcmask 1040384  }
0x1128   :  { %v2692_v50 = vsel %vm351_vm15, %v2680_v7, %v2662_v48  ;;  %3053 = vmatmul.mubr.bf16.vlgmr.msra.gmra.mxu0 %v2820_v18  ;;  %v2683_v55 = vsel %vm351_vm15, %v2674_v52, %v2680_v7  ;;  %v2714_v1 = vadd.f32 %v2702_v6, %v2602_v28  ;;  %v3143_v52 = vsel %vm3141_vm11, 65535, %v3661_v3 }
0x1129   :  { %v2823_v2 = vpack.c.bf16 %v2751_v38, %v2747_v13  ;;  %v2704_v43 = vmul.f32 %v3949_v61, %v2692_v50  ;;  %v2715_v53 = vadd.f32 %v2683_v55, %v2651_v44  ;;  %v3627_v38 = vld [vmem:[%s4888_s14] sm:$0x1f]   ;;  %vm3188_vm15 = vcmask 15360  }
0x112b   :  { %3100 = vmatprep.mubr.bf16.mxu1 %v2823_v2  ;;  %v2716_v61 = vadd.f32 %v2704_v43, %v2653_v57 }
0x112c   :  { %3101 = vmatmul.mubr.bf16.vlgmr.msra.gmra.mxu1 %v2822_v42 }
0x1130   :  { %v2730_v34 = vpop.permute.xlu1 %2729 }
0x1131   :  { %v2741_v36 = vadd.f32 %v2730_v34, %v2714_v1  ;;  %v2743_v47 = vadd.f32 %v2730_v34, %v2716_v61  ;;  %v2740_v46 = vadd.f32 %v2730_v34, %v2713_v59  ;;  %v2742_v17 = vadd.f32 %v2730_v34, %v2715_v53 }
0x1133   :  { %v2753_v5 = vmax.f32 %v2741_v36, 0.0  ;;  %v2755_v31 = vmax.f32 %v2743_v47, 0.0  ;;  %v2752_v14 = vmax.f32 %v2740_v46, 0.0  ;;  %v2754_v39 = vmax.f32 %v2742_v17, 0.0 }
0x1134   :  { %v3125_v3 = vpop.permute.xlu0 %3124  ;;  %v3130_v54 = vpop.permute.xlu1 %3129 }
0x1135   :  { %v2825_v48 = vpack.c.bf16 %v2753_v5, %v2753_v5  ;;  %v2827_v56 = vpack.c.bf16 %v2755_v31, %v2755_v31  ;;  %v2824_v60 = vpack.c.bf16 %v2752_v14, %v2752_v14  ;;  %v2826_v63 = vpack.c.bf16 %v2754_v39, %v2754_v39 }
0x1137   :  { %3060 = vmatprep.mubr.bf16.mxu0 %v2825_v48  ;;  %3108 = vmatprep.mubr.bf16.mxu1 %v2827_v56 }
0x1138   :  { %3061 = vmatmul.mubr.bf16.gmra.mxu0 %v2824_v60  ;;  %3109 = vmatmul.mubr.bf16.gmra.mxu1 %v2826_v63 }
0x1139   :  { %3403 = vmatprep.mubr.msk.bf16.mxu0 %vm3668_vm1, %v3665_v29 }
0x11e8   :  { %v3356_v19 = vpop.f32.mrf.mxu0 }
0x11ea   :  { %v3357_v22 = vpop.f32.mrf.mxu0 }
0x11eb   :  { %v3358_v8 = vadd.f32 %v3357_v22, %v3356_v19 }
0x11ec   :  { %v3384_v15 = vpop.f32.mrf.mxu1  ;;  %v3359_v9 = vpop.f32.mrf.mxu0 }
0x11ee   :  { %v3385_v20 = vpop.f32.mrf.mxu1  ;;  %v3360_v21 = vpop.f32.mrf.mxu0 }
0x11ef   :  { %v3361_v62 = vadd.f32 %v3360_v21, %v3359_v9  ;;  %v3386_v18 = vadd.f32 %v3385_v20, %v3384_v15 }
0x11f0   :  { %v3387_v0 = vpop.f32.mrf.mxu1 }
0x11f1   :  { %v3103_v50 = vadd.f32 %v3386_v18, %v3358_v8 }
0x11f2   :  { %v3388_v27 = vpop.f32.mrf.mxu1 }
0x11f3   :  { %v3389_v40 = vadd.f32 %v3388_v27, %v3387_v0 }
0x11f5   :  { %v3106_v7 = vadd.f32 %v3389_v40, %v3361_v62 }
0x11f7   :  { %v3118_v13 = vpack.c.bf16 %v3106_v7, %v3103_v50 }
0x11f8   :  { %v3362_v24 = vpop.f32.mrf.mxu0  ;;  %v3390_v33 = vpop.f32.mrf.mxu1 }
0x11fa   :  { %v3363_v25 = vpop.f32.mrf.mxu0  ;;  %v3391_v37 = vpop.f32.mrf.mxu1 }
0x11fb   :  { %v3364_v11 = vadd.f32 %v3363_v25, %v3362_v24  ;;  %v3392_v12 = vadd.f32 %v3391_v37, %v3390_v33 }
0x11fc   :  { %v3365_v30 = vpop.f32.mrf.mxu0  ;;  %v3393_v35 = vpop.f32.mrf.mxu1 }
0x11fd   :  { %v3111_v10 = vadd.f32 %v3392_v12, %v3364_v11 }
0x11fe   :  { %v3366_v16 = vpop.f32.mrf.mxu0  ;;  %v3394_v26 = vpop.f32.mrf.mxu1 }
0x11ff   :  { %v3119_v49 = vpack.c.bf16 %v3111_v10, %v3111_v10 }
0x1201   :  { %v3145_v45 = vand.u32 %v3143_v52, %v3119_v49 }
0x1203   :  { %3400 = vmatpush3.bf16.msra.mxu0 %v3145_v45 }
0x1204   :  { %3401 = vmatprep.subr.bf16.mxu0 %v3665_v29 }
0x1207   :  { %3402 = vmatpush3.bf16.msra.mxu0 %v3118_v13 }
0x120a   :  { %3404 = vmatmul.mubr.msk.bf16.vlgmr.msra.gmra.mxu0 %vm3137_vm14, %v3627_v38 }
0x12ca   :  { %v3181_v58 = vpop.f32.mrf.mxu0 }
0x12cb   :  { %v3182_v23 = vadd.f32 %v3181_v58, %v3125_v3 }
0x12cc   :  { %v3405_v4 = vpop.f32.mrf.mxu0 }
0x12cd   :  { %3189 = vst.msk [vmem:[%s4889_s16] sm:$0xff] %vm3188_vm15, %v3182_v23 }
0x12ce   :  { %v3184_v41 = vpop.f32.mrf.mxu0 }
0x12cf   :  { %v3185_v29 = vadd.f32 %v3184_v41, %v3130_v54 }
0x12d0   :  { %v3406_v2 = vpop.f32.mrf.mxu0 }
0x12d1   :  { %3191 = vst.msk [vmem:[%s4889_s16 + $0x8] sm:$0x3] %vm3190_vm0, %v3185_v29 }

</bundles_post_ra>
